<compile_context>
chip_gen: v7x
topology: tpu7x:2x2x1
jax: 0.10.0
libtpu: 0.0.40
codegen_flags: <defaults>
</compile_context>

<pallas_src>
import jax
import jax.numpy as jnp
from jax.experimental import pallas as pl
from jax.experimental.pallas import tpu as pltpu

LN_EPS = 1e-5  # PyTorch nn.LayerNorm default


# --------------------------------------------------------------------------------------
# Fused kernel: ChannelAttention + SelectiveStateSpaces + 3x3 conv + ReLU, per batch image.
# Channel-last layout, channels padded to Cp (multiple of 128).
# --------------------------------------------------------------------------------------
def _make_fused_kernel(H, W, C_true, Cp):
    HW = H * W
    inv_hw = 1.0 / HW
    inv_c = 1.0 / C_true  # LayerNorm / pooling stats use the TRUE channel count

    def kernel(x_ref, w_ref, vec_ref, out_ref, xp_ref):
        # x_ref:   (1, HW, Cp)       activations (padded channel lanes are zero)
        # w_ref:   (14*Cp, Cp)       [wa | wb | w1 | wssm | w2 | 9 im2col conv taps]
        # vec_ref: (8, Cp)           [gamma, beta, b1, bssm, b2, 0, 0, 0]
        # out_ref: (1, H, W, Cp)
        # xp_ref:  (H+2, W+2, Cp)    VMEM scratch (zero-padded image for the 3x3 conv)
        x = x_ref[0]                                               # (HW, Cp) f32

        # ---- ChannelAttention: global avg pool + 2 tiny 1x1 "convs" ----
        avg = jnp.sum(x, axis=0, keepdims=True) * inv_hw           # (1, Cp)
        h = jnp.maximum(
            jnp.dot(avg, w_ref[0 * Cp:1 * Cp, :], preferred_element_type=jnp.float32), 0.0)
        ca = jax.nn.sigmoid(
            jnp.dot(h, w_ref[1 * Cp:2 * Cp, :], preferred_element_type=jnp.float32))
        local = x * ca                                             # padded lanes stay 0 (x == 0)

        # ---- SelectiveStateSpaces ----
        # LayerNorm over the TRUE channels; padded lanes of x are zero, so sums are exact.
        mu = jnp.sum(x, axis=-1, keepdims=True) * inv_c
        ex2 = jnp.sum(x * x, axis=-1, keepdims=True) * inv_c
        var = ex2 - mu * mu
        gamma = vec_ref[0:1, :]
        beta = vec_ref[1:2, :]
        xn = (x - mu) * jax.lax.rsqrt(var + LN_EPS) * gamma + beta  # padded lanes -> 0

        x1 = jax.nn.silu(
            jnp.dot(xn, w_ref[2 * Cp:3 * Cp, :], preferred_element_type=jnp.float32)
            + vec_ref[2:3, :])
        x2 = jnp.dot(jax.nn.silu(x1), w_ref[3 * Cp:4 * Cp, :],
                     preferred_element_type=jnp.float32) + vec_ref[3:4, :]
        g = jnp.dot(x1 * x2, w_ref[4 * Cp:5 * Cp, :],
                    preferred_element_type=jnp.float32) + vec_ref[4:5, :]

        fused = local + g                                          # (HW, Cp)

        # ---- zero-init padded scratch, write interior (in-VMEM "jnp.pad") ----
        xp_ref[...] = jnp.zeros_like(xp_ref)
        xp_ref[1:1 + H, 1:1 + W, :] = fused.reshape(H, W, Cp)

        # ---- 3x3 conv (padding=1, no bias) as ONE im2col matmul, then ReLU ----
        xp = xp_ref[...]                                           # (H+2, W+2, Cp)
        patches = jnp.concatenate(
            [xp[ky:ky + H, kx:kx + W, :].reshape(HW, Cp)
             for ky in range(3) for kx in range(3)], axis=-1)      # (HW, 9*Cp)
        conv = jnp.dot(patches, w_ref[5 * Cp:14 * Cp, :],
                       preferred_element_type=jnp.float32)         # (HW, Cp)
        out_ref[0] = jnp.maximum(conv, 0.0).reshape(H, W, Cp)

    return kernel


# --------------------------------------------------------------------------------------
# Parameter packing: pad channel dims to Cp, coalesce into 2 arrays.
# --------------------------------------------------------------------------------------
def _pack_params(params, C, Cp):
    f32 = jnp.float32

    def pad2(w):
        return jnp.pad(w.astype(f32), ((0, Cp - w.shape[0]), (0, Cp - w.shape[1])))

    # conv weight OIHW (Co, Ci, 3, 3) -> (3, 3, Ci, Co) -> pad -> (9*Cp, Cp);
    # row block t = ky*3 + kx holds w[ci, co] = wconv[co, ci, ky, kx],
    # matching the im2col concatenation order inside the kernel.
    wc = jnp.transpose(params['wconv'].astype(f32), (2, 3, 1, 0))
    wc = jnp.pad(wc, ((0, 0), (0, 0), (0, Cp - C), (0, Cp - C))).reshape(9 * Cp, Cp)

    w_slab = jnp.concatenate(
        [pad2(params['wa']), pad2(params['wb']), pad2(params['w1']),
         pad2(params['wssm']), pad2(params['w2']), wc], axis=0)    # (14*Cp, Cp)

    vecs = jnp.concatenate(
        [params[n].astype(f32) for n in ('gamma', 'beta', 'b1', 'bssm', 'b2')],
        axis=0)                                                    # (5, C)
    vecs = jnp.pad(vecs, ((0, 3), (0, Cp - C)))                    # (8, Cp)
    return w_slab, vecs


# --------------------------------------------------------------------------------------
# Wrapper (public API matches the PyTorch module: NCHW in, NCHW out)
# --------------------------------------------------------------------------------------
@jax.jit
def alg_block(x_nchw, params):
    B, C, H, W = x_nchw.shape
    HW = H * W
    Cp = ((C + 127) // 128) * 128                                  # lane-dense channel axis

    w_slab, vecs = _pack_params(params, C, Cp)

    # NCHW -> (B, HW, Cp) channel-last, zero-padded channels
    x_nhwc = jnp.transpose(x_nchw, (0, 2, 3, 1)).astype(jnp.float32)
    x_seq = jnp.pad(x_nhwc, ((0, 0), (0, 0), (0, 0), (0, Cp - C))).reshape(B, HW, Cp)

    kernel = _make_fused_kernel(H, W, C, Cp)
    out_nhwc = pl.pallas_call(
        kernel,
        out_shape=jax.ShapeDtypeStruct((B, H, W, Cp), jnp.float32),
        grid_spec=pltpu.PrefetchScalarGridSpec(
            num_scalar_prefetch=0,
            grid=(B,),
            in_specs=[
                pl.BlockSpec((1, HW, Cp), lambda b: (b, 0, 0)),
                pl.BlockSpec((14 * Cp, Cp), lambda b: (0, 0)),     # constant block index ->
                pl.BlockSpec((8, Cp), lambda b: (0, 0)),           # weights DMA'd once, resident
            ],
            out_specs=pl.BlockSpec((1, H, W, Cp), lambda b: (b, 0, 0, 0)),
            scratch_shapes=[pltpu.VMEM((H + 2, W + 2, Cp), jnp.float32)],
        ),
        compiler_params=pltpu.CompilerParams(dimension_semantics=("parallel",)),
    )(x_seq, w_slab, vecs)

    # drop padded channels, back to NCHW
    return jnp.transpose(out_nhwc[..., :C], (0, 3, 1, 2))


# --------------------------------------------------------------------------------------
# Pure-JAX reference (mirrors the PyTorch forward exactly)
# --------------------------------------------------------------------------------------
def alg_reference(x_nchw, params):
    B, C, H, W = x_nchw.shape
    # ChannelAttention
    avg = jnp.mean(x_nchw, axis=(2, 3))                            # (B, C)
    h = jnp.maximum(avg @ params['wa'], 0.0)
    ca = jax.nn.sigmoid(h @ params['wb'])                          # (B, C)
    local = x_nchw * ca[:, :, None, None]
    # SelectiveStateSpaces
    xs = x_nchw.reshape(B, C, H * W).transpose(0, 2, 1)            # (B, HW, C)
    mu = xs.mean(-1, keepdims=True)
    var = ((xs - mu) ** 2).mean(-1, keepdims=True)
    xn = (xs - mu) / jnp.sqrt(var + LN_EPS) * params['gamma'] + params['beta']
    x1 = jax.nn.silu(xn @ params['w1'] + params['b1'])
    x2 = jax.nn.silu(x1) @ params['wssm'] + params['bssm']
    g = (x1 * x2) @ params['w2'] + params['b2']
    g = g.transpose(0, 2, 1).reshape(B, C, H, W)
    out = local + g
    # 3x3 conv + relu
    out = jax.lax.conv_general_dilated(
        out, params['wconv'], window_strides=(1, 1), padding='SAME',
        dimension_numbers=('NCHW', 'OIHW', 'NCHW'))
    return jnp.maximum(out, 0.0)


# --------------------------------------------------------------------------------------
def make_params(key, C, reduction=13):
    Cr = C // reduction
    ks = jax.random.split(key, 9)
    scale_c = 1.0 / jnp.sqrt(C)
    # ChannelAttention fc weights (stored transposed for y = x @ W)
    wa = jax.random.normal(ks[0], (C, Cr), jnp.float32) * scale_c
    wb = jax.random.normal(ks[1], (Cr, C), jnp.float32) / jnp.sqrt(Cr)
    # LayerNorm(C)
    gamma = jnp.ones((1, C), jnp.float32) + 0.1 * jax.random.normal(ks[2], (1, C), jnp.float32)
    beta = 0.1 * jax.random.normal(ks[3], (1, C), jnp.float32)
    # Linear layers (W = torch_weight.T)
    w1 = jax.random.normal(ks[4], (C, C), jnp.float32) * scale_c
    b1 = 0.1 * jax.random.normal(ks[5], (1, C), jnp.float32)
    wssm = jax.random.normal(ks[6], (C, C), jnp.float32) * scale_c
    bssm = 0.1 * jax.random.normal(ks[7], (1, C), jnp.float32)
    w2 = jax.random.normal(ks[8], (C, C), jnp.float32) * scale_c
    b2 = jnp.zeros((1, C), jnp.float32)
    # 3x3 conv weight, OIHW (Cout, Cin, 3, 3), no bias
    wconv = jax.random.normal(jax.random.fold_in(key, 99), (C, C, 3, 3),
                              jnp.float32) * (1.0 / jnp.sqrt(9 * C))
    return dict(wa=wa, wb=wb, gamma=gamma, beta=beta, w1=w1, b1=b1,
                wssm=wssm, bssm=bssm, w2=w2, b2=b2, wconv=wconv)


if __name__ == "__main__":
    # C must be >= reduction(=13) for the PyTorch module to be valid.
    B, C, H, W = 2, 26, 16, 16
    key = jax.random.PRNGKey(0)
    kx, kp = jax.random.split(key)
    x = jax.random.normal(kx, (B, C, H, W), jnp.float32)
    params = make_params(kp, C)

    out = jax.block_until_ready(alg_block(x, params))
    ref = jax.block_until_ready(alg_reference(x, params))

    assert out.shape == (B, C, H, W)
    err = float(jnp.max(jnp.abs(out - ref)))
    assert jnp.allclose(out, ref, atol=5e-4, rtol=5e-4), err
    print("KERNEL_OK")
</pallas_src>

<mosaic_0001>
module attributes {stable_mosaic.version = 11 : i64} {
  func.func @kernel(%arg0: i32, %arg1: memref<1x256x128xf32, #tpu.memory_space<vmem>>, %arg2: memref<1792x128xf32, #tpu.memory_space<vmem>>, %arg3: memref<8x128xf32, #tpu.memory_space<vmem>>, %arg4: memref<1x16x16x128xf32, #tpu.memory_space<vmem>>, %arg5: memref<18x18x128xf32, #tpu.memory_space<vmem>>) attributes {dimension_semantics = [#tpu.dimension_semantics<parallel>], iteration_bounds = array<i64: 2>, scalar_prefetch = 0 : i64, scratch_operands = 1 : i64, tpu.core_type = #tpu.core_type<tc>, window_params = [{transform_indices = @transform_0, window_bounds = array<i64: 1, 256, 128>}, {pipeline_mode = #tpu.pipeline_mode<synchronous>, transform_indices = @transform_1, window_bounds = array<i64: 1792, 128>}, {pipeline_mode = #tpu.pipeline_mode<synchronous>, transform_indices = @transform_2, window_bounds = array<i64: 8, 128>}, {transform_indices = @transform_3, window_bounds = array<i64: 1, 16, 16, 128>}]} {
    %c0 = arith.constant 0 : index
    %c0_0 = arith.constant 0 : index
    %c0_1 = arith.constant 0 : index
    %0 = vector.load %arg1[%c0, %c0_0, %c0_1] : memref<1x256x128xf32, #tpu.memory_space<vmem>>, vector<1x256x128xf32>
    %1 = vector.shape_cast %0 : vector<1x256x128xf32> to vector<256x128xf32>
    %cst = arith.constant dense<0.000000e+00> : vector<128xf32>
    %2 = vector.multi_reduction <add>, %1, %cst [0] : vector<256x128xf32> to vector<128xf32>
    %3 = vector.shape_cast %2 : vector<128xf32> to vector<1x128xf32>
    %cst_2 = arith.constant 3.906250e-03 : f32
    %4 = vector.broadcast %cst_2 : f32 to vector<1x128xf32>
    %5 = arith.mulf %3, %4 : vector<1x128xf32>
    %c0_3 = arith.constant 0 : index
    %c0_4 = arith.constant 0 : index
    %6 = vector.load %arg2[%c0_3, %c0_4] : memref<1792x128xf32, #tpu.memory_space<vmem>>, vector<128x128xf32>
    %cst_5 = arith.constant dense<0.000000e+00> : vector<1x128xf32>
    %7 = tpu.matmul %5, %6, %cst_5 {dimension_numbers = #tpu.dot_dimension_numbers<[1], [0], [0], [1], [0, 0, 1, 1], [], []>} : vector<1x128xf32>, vector<128x128xf32>, vector<1x128xf32> -> vector<1x128xf32>
    %cst_6 = arith.constant 0.000000e+00 : f32
    %8 = vector.broadcast %cst_6 : f32 to vector<1x128xf32>
    %9 = arith.maximumf %7, %8 : vector<1x128xf32>
    %c128 = arith.constant 128 : index
    %c0_7 = arith.constant 0 : index
    %10 = vector.load %arg2[%c128, %c0_7] : memref<1792x128xf32, #tpu.memory_space<vmem>>, vector<128x128xf32>
    %cst_8 = arith.constant dense<0.000000e+00> : vector<1x128xf32>
    %11 = tpu.matmul %9, %10, %cst_8 {dimension_numbers = #tpu.dot_dimension_numbers<[1], [0], [0], [1], [0, 0, 1, 1], [], []>} : vector<1x128xf32>, vector<128x128xf32>, vector<1x128xf32> -> vector<1x128xf32>
    %12 = arith.negf %11 : vector<1x128xf32>
    %13 = math.exp %12 : vector<1x128xf32>
    %cst_9 = arith.constant 1.000000e+00 : f32
    %14 = vector.broadcast %cst_9 : f32 to vector<1x128xf32>
    %15 = arith.addf %14, %13 : vector<1x128xf32>
    %16 = arith.divf %14, %15 : vector<1x128xf32>
    %17 = vector.broadcast %16 : vector<1x128xf32> to vector<256x128xf32>
    %18 = arith.mulf %1, %17 : vector<256x128xf32>
    %cst_10 = arith.constant dense<0.000000e+00> : vector<256xf32>
    %19 = vector.multi_reduction <add>, %1, %cst_10 [1] : vector<256x128xf32> to vector<256xf32>
    %20 = vector.shape_cast %19 : vector<256xf32> to vector<256x1xf32>
    %cst_11 = arith.constant 0.0384615399 : f32
    %21 = vector.broadcast %cst_11 : f32 to vector<256x1xf32>
    %22 = arith.mulf %20, %21 : vector<256x1xf32>
    %23 = arith.mulf %1, %1 : vector<256x128xf32>
    %cst_12 = arith.constant dense<0.000000e+00> : vector<256xf32>
    %24 = vector.multi_reduction <add>, %23, %cst_12 [1] : vector<256x128xf32> to vector<256xf32>
    %25 = vector.shape_cast %24 : vector<256xf32> to vector<256x1xf32>
    %cst_13 = arith.constant 0.0384615399 : f32
    %26 = vector.broadcast %cst_13 : f32 to vector<256x1xf32>
    %27 = arith.mulf %25, %26 : vector<256x1xf32>
    %28 = arith.mulf %22, %22 : vector<256x1xf32>
    %29 = arith.subf %27, %28 : vector<256x1xf32>
    %c0_14 = arith.constant 0 : index
    %c0_15 = arith.constant 0 : index
    %30 = vector.load %arg3[%c0_14, %c0_15] : memref<8x128xf32, #tpu.memory_space<vmem>>, vector<1x128xf32>
    %c1 = arith.constant 1 : index
    %c0_16 = arith.constant 0 : index
    %31 = vector.load %arg3[%c1, %c0_16] : memref<8x128xf32, #tpu.memory_space<vmem>>, vector<1x128xf32>
    %32 = vector.broadcast %22 : vector<256x1xf32> to vector<256x128xf32>
    %33 = arith.subf %1, %32 : vector<256x128xf32>
    %cst_17 = arith.constant 9.99999974E-6 : f32
    %34 = vector.broadcast %cst_17 : f32 to vector<256x1xf32>
    %35 = arith.addf %29, %34 : vector<256x1xf32>
    %36 = math.rsqrt %35 : vector<256x1xf32>
    %37 = vector.broadcast %36 : vector<256x1xf32> to vector<256x128xf32>
    %38 = arith.mulf %33, %37 : vector<256x128xf32>
    %39 = vector.broadcast %30 : vector<1x128xf32> to vector<256x128xf32>
    %40 = arith.mulf %38, %39 : vector<256x128xf32>
    %41 = vector.broadcast %31 : vector<1x128xf32> to vector<256x128xf32>
    %42 = arith.addf %40, %41 : vector<256x128xf32>
    %c256 = arith.constant 256 : index
    %c0_18 = arith.constant 0 : index
    %43 = vector.load %arg2[%c256, %c0_18] : memref<1792x128xf32, #tpu.memory_space<vmem>>, vector<128x128xf32>
    %cst_19 = arith.constant dense<0.000000e+00> : vector<256x128xf32>
    %44 = tpu.matmul %42, %43, %cst_19 {dimension_numbers = #tpu.dot_dimension_numbers<[1], [0], [0], [1], [0, 0, 1, 1], [], []>} : vector<256x128xf32>, vector<128x128xf32>, vector<256x128xf32> -> vector<256x128xf32>
    %c2 = arith.constant 2 : index
    %c0_20 = arith.constant 0 : index
    %45 = vector.load %arg3[%c2, %c0_20] : memref<8x128xf32, #tpu.memory_space<vmem>>, vector<1x128xf32>
    %46 = vector.broadcast %45 : vector<1x128xf32> to vector<256x128xf32>
    %47 = arith.addf %44, %46 : vector<256x128xf32>
    %48 = arith.negf %47 : vector<256x128xf32>
    %49 = math.exp %48 : vector<256x128xf32>
    %cst_21 = arith.constant 1.000000e+00 : f32
    %50 = vector.broadcast %cst_21 : f32 to vector<256x128xf32>
    %51 = arith.addf %50, %49 : vector<256x128xf32>
    %52 = arith.divf %50, %51 : vector<256x128xf32>
    %53 = arith.mulf %47, %52 : vector<256x128xf32>
    %54 = arith.negf %53 : vector<256x128xf32>
    %55 = math.exp %54 : vector<256x128xf32>
    %cst_22 = arith.constant 1.000000e+00 : f32
    %56 = vector.broadcast %cst_22 : f32 to vector<256x128xf32>
    %57 = arith.addf %56, %55 : vector<256x128xf32>
    %58 = arith.divf %56, %57 : vector<256x128xf32>
    %59 = arith.mulf %53, %58 : vector<256x128xf32>
    %c384 = arith.constant 384 : index
    %c0_23 = arith.constant 0 : index
    %60 = vector.load %arg2[%c384, %c0_23] : memref<1792x128xf32, #tpu.memory_space<vmem>>, vector<128x128xf32>
    %cst_24 = arith.constant dense<0.000000e+00> : vector<256x128xf32>
    %61 = tpu.matmul %59, %60, %cst_24 {dimension_numbers = #tpu.dot_dimension_numbers<[1], [0], [0], [1], [0, 0, 1, 1], [], []>} : vector<256x128xf32>, vector<128x128xf32>, vector<256x128xf32> -> vector<256x128xf32>
    %c3 = arith.constant 3 : index
    %c0_25 = arith.constant 0 : index
    %62 = vector.load %arg3[%c3, %c0_25] : memref<8x128xf32, #tpu.memory_space<vmem>>, vector<1x128xf32>
    %63 = vector.broadcast %62 : vector<1x128xf32> to vector<256x128xf32>
    %64 = arith.addf %61, %63 : vector<256x128xf32>
    %65 = arith.mulf %53, %64 : vector<256x128xf32>
    %c512 = arith.constant 512 : index
    %c0_26 = arith.constant 0 : index
    %66 = vector.load %arg2[%c512, %c0_26] : memref<1792x128xf32, #tpu.memory_space<vmem>>, vector<128x128xf32>
    %cst_27 = arith.constant dense<0.000000e+00> : vector<256x128xf32>
    %67 = tpu.matmul %65, %66, %cst_27 {dimension_numbers = #tpu.dot_dimension_numbers<[1], [0], [0], [1], [0, 0, 1, 1], [], []>} : vector<256x128xf32>, vector<128x128xf32>, vector<256x128xf32> -> vector<256x128xf32>
    %c4 = arith.constant 4 : index
    %c0_28 = arith.constant 0 : index
    %68 = vector.load %arg3[%c4, %c0_28] : memref<8x128xf32, #tpu.memory_space<vmem>>, vector<1x128xf32>
    %69 = vector.broadcast %68 : vector<1x128xf32> to vector<256x128xf32>
    %70 = arith.addf %67, %69 : vector<256x128xf32>
    %71 = arith.addf %18, %70 : vector<256x128xf32>
    %cst_29 = arith.constant 0.000000e+00 : f32
    %72 = vector.broadcast %cst_29 : f32 to vector<18x18x128xf32>
    %c0_30 = arith.constant 0 : index
    %c0_31 = arith.constant 0 : index
    %c0_32 = arith.constant 0 : index
    %73 = vector.load %arg5[%c0_30, %c0_31, %c0_32] : memref<18x18x128xf32, #tpu.memory_space<vmem>>, vector<18x18x128xf32>
    tpu.vector_store %arg5[%c0_30, %c0_31, %c0_32], %72 {strides = array<i32>} : memref<18x18x128xf32, #tpu.memory_space<vmem>>, vector<18x18x128xf32>,
    %74 = vector.shape_cast %71 : vector<256x128xf32> to vector<16x16x128xf32>
    %c1_33 = arith.constant 1 : index
    %c1_34 = arith.constant 1 : index
    %c0_35 = arith.constant 0 : index
    %75 = vector.load %arg5[%c1_33, %c1_34, %c0_35] : memref<18x18x128xf32, #tpu.memory_space<vmem>>, vector<16x16x128xf32>
    tpu.vector_store %arg5[%c1_33, %c1_34, %c0_35], %74 {strides = array<i32>} : memref<18x18x128xf32, #tpu.memory_space<vmem>>, vector<16x16x128xf32>,
    %c0_36 = arith.constant 0 : index
    %c0_37 = arith.constant 0 : index
    %c0_38 = arith.constant 0 : index
    %76 = vector.load %arg5[%c0_36, %c0_37, %c0_38] : memref<18x18x128xf32, #tpu.memory_space<vmem>>, vector<18x18x128xf32>
    %77 = vector.extract_strided_slice %76 {offsets = [0, 0, 0], sizes = [16, 16, 128], strides = [1, 1, 1]} : vector<18x18x128xf32> to vector<16x16x128xf32>
    %78 = vector.shape_cast %77 : vector<16x16x128xf32> to vector<256x128xf32>
    %79 = vector.extract_strided_slice %76 {offsets = [0, 1, 0], sizes = [16, 16, 128], strides = [1, 1, 1]} : vector<18x18x128xf32> to vector<16x16x128xf32>
    %80 = vector.shape_cast %79 : vector<16x16x128xf32> to vector<256x128xf32>
    %81 = vector.extract_strided_slice %76 {offsets = [0, 2, 0], sizes = [16, 16, 128], strides = [1, 1, 1]} : vector<18x18x128xf32> to vector<16x16x128xf32>
    %82 = vector.shape_cast %81 : vector<16x16x128xf32> to vector<256x128xf32>
    %83 = vector.extract_strided_slice %76 {offsets = [1, 0, 0], sizes = [16, 16, 128], strides = [1, 1, 1]} : vector<18x18x128xf32> to vector<16x16x128xf32>
    %84 = vector.shape_cast %83 : vector<16x16x128xf32> to vector<256x128xf32>
    %85 = vector.extract_strided_slice %76 {offsets = [1, 1, 0], sizes = [16, 16, 128], strides = [1, 1, 1]} : vector<18x18x128xf32> to vector<16x16x128xf32>
    %86 = vector.shape_cast %85 : vector<16x16x128xf32> to vector<256x128xf32>
    %87 = vector.extract_strided_slice %76 {offsets = [1, 2, 0], sizes = [16, 16, 128], strides = [1, 1, 1]} : vector<18x18x128xf32> to vector<16x16x128xf32>
    %88 = vector.shape_cast %87 : vector<16x16x128xf32> to vector<256x128xf32>
    %89 = vector.extract_strided_slice %76 {offsets = [2, 0, 0], sizes = [16, 16, 128], strides = [1, 1, 1]} : vector<18x18x128xf32> to vector<16x16x128xf32>
    %90 = vector.shape_cast %89 : vector<16x16x128xf32> to vector<256x128xf32>
    %91 = vector.extract_strided_slice %76 {offsets = [2, 1, 0], sizes = [16, 16, 128], strides = [1, 1, 1]} : vector<18x18x128xf32> to vector<16x16x128xf32>
    %92 = vector.shape_cast %91 : vector<16x16x128xf32> to vector<256x128xf32>
    %93 = vector.extract_strided_slice %76 {offsets = [2, 2, 0], sizes = [16, 16, 128], strides = [1, 1, 1]} : vector<18x18x128xf32> to vector<16x16x128xf32>
    %94 = vector.shape_cast %93 : vector<16x16x128xf32> to vector<256x128xf32>
    %95 = tpu.concatenate %78, %80, %82, %84, %86, %88, %90, %92, %94 in 1 : vector<256x128xf32>, vector<256x128xf32>, vector<256x128xf32>, vector<256x128xf32>, vector<256x128xf32>, vector<256x128xf32>, vector<256x128xf32>, vector<256x128xf32>, vector<256x128xf32> -> vector<256x1152xf32>
    %c640 = arith.constant 640 : index
    %c0_39 = arith.constant 0 : index
    %96 = vector.load %arg2[%c640, %c0_39] : memref<1792x128xf32, #tpu.memory_space<vmem>>, vector<1152x128xf32>
    %cst_40 = arith.constant dense<0.000000e+00> : vector<256x128xf32>
    %97 = tpu.matmul %95, %96, %cst_40 {dimension_numbers = #tpu.dot_dimension_numbers<[1], [0], [0], [1], [0, 0, 1, 1], [], []>} : vector<256x1152xf32>, vector<1152x128xf32>, vector<256x128xf32> -> vector<256x128xf32>
    %cst_41 = arith.constant 0.000000e+00 : f32
    %98 = vector.broadcast %cst_41 : f32 to vector<256x128xf32>
    %99 = arith.maximumf %97, %98 : vector<256x128xf32>
    %100 = vector.shape_cast %99 : vector<256x128xf32> to vector<16x16x128xf32>
    %c0_42 = arith.constant 0 : index
    %c0_43 = arith.constant 0 : index
    %c0_44 = arith.constant 0 : index
    %c0_45 = arith.constant 0 : index
    %101 = vector.load %arg4[%c0_42, %c0_43, %c0_44, %c0_45] : memref<1x16x16x128xf32, #tpu.memory_space<vmem>>, vector<1x16x16x128xf32>
    %102 = vector.shape_cast %101 : vector<1x16x16x128xf32> to vector<16x16x128xf32>
    %103 = vector.shape_cast %100 : vector<16x16x128xf32> to vector<1x16x16x128xf32>
    tpu.vector_store %arg4[%c0_42, %c0_43, %c0_44, %c0_45], %103 {strides = array<i32>} : memref<1x16x16x128xf32, #tpu.memory_space<vmem>>, vector<1x16x16x128xf32>,
    return
  }
  func.func @transform_0(%arg0: i32) -> (i32, i32, i32) {
    %c0_i32 = arith.constant 0 : i32
    %c0_i32_0 = arith.constant 0 : i32
    %c0_i32_1 = arith.constant 0 : i32
    return %arg0, %c0_i32, %c0_i32_0 : i32, i32, i32
  }
  func.func @transform_1(%arg0: i32) -> (i32, i32) {
    %c0_i32 = arith.constant 0 : i32
    %c0_i32_0 = arith.constant 0 : i32
    %c0_i32_1 = arith.constant 0 : i32
    return %c0_i32, %c0_i32_0 : i32, i32
  }
  func.func @transform_2(%arg0: i32) -> (i32, i32) {
    %c0_i32 = arith.constant 0 : i32
    %c0_i32_0 = arith.constant 0 : i32
    %c0_i32_1 = arith.constant 0 : i32
    return %c0_i32, %c0_i32_0 : i32, i32
  }
  func.func @transform_3(%arg0: i32) -> (i32, i32, i32, i32) {
    %c0_i32 = arith.constant 0 : i32
    %c0_i32_0 = arith.constant 0 : i32
    %c0_i32_1 = arith.constant 0 : i32
    %c0_i32_2 = arith.constant 0 : i32
    return %arg0, %c0_i32, %c0_i32_0, %c0_i32_1 : i32, i32, i32, i32
  }
}

</mosaic_0001>

<bundles_post_ra>
// kernel: alg_block.1
= control target key start
LH: loop header
LB: loop body
LE: loop exit
PB: predicated region body
PF: predicated region fallthrough
CT: control target
= control target key end

     0   :  { %s5731_s12 = smov 0   ;;  %s8254_s0 = inlined_call_operand.vmem [shape: f32[2,256,128], index: 0, kind: input, shape index: {}]   ;;  %s8255_s1 = inlined_call_operand.vmem [shape: f32[1792,128], index: 1, kind: input, shape index: {}]   ;;  %s8256_s2 = inlined_call_operand.vmem [shape: f32[8,128], index: 2, kind: input, shape index: {}]   ;;  %s8257_s3 = inlined_call_operand.vmem [shape: f32[2,16,16,128], index: 3, kind: output, shape index: {}]  }
   0x1 LB: > { %s4033_s13 = sadd.s32 4294967295, %s5706_s12   ;;  %p4037_p0 = scmp.ge.s32.totalorder %s5706_s12, 1  ;;  %s5706_s12 = sphi %s5731_s12, %s13_s12  }
   0x2   : > { %p137_p1 = scmp.lt.s32.totalorder %s5706_s12, 3 }
   0x4   : > { %p138_p2 = pnand %p4037_p0, %p137_p1 }
   0x6   : > { %141 = sbr.rel (%p138_p2) target bundleno = 1518 (0x5ee), region = 32 }
   0xd   : > { %p161_p3 = scmp.lt.s32.totalorder %s4033_s13, 1  ;;  %v241_v0 = vld [vmem:[%s8255_s1] sm:$0xff]  ;;  %v242_v1 = vld [vmem:[%s8255_s1 + $0x8] sm:$0xff]  ;;  %v8258_v2 = vmov 0.0|0.0   ;;  %v5749_v4 = vld [vmem:[%s8255_s1 + $0x10] sm:$0xff]  ;;  %vm5709_vm0 = vmmov 0  }
   0xe   : > { %4732 = vmatprep.subr.bf16.mxu0 %v8258_v2  ;;  %v4733_v3 = vpack.c.bf16 %v242_v1, %v241_v0  ;;  %v5754_v5 = vld [vmem:[%s8255_s1 + $0x18] sm:$0xff]  ;;  %4756 = vmatprep.subr.bf16.mxu1 %v8258_v2  ;;  %v5710_v7 = vmov 0.0   ;;  %v245_v8 = vld [vmem:[%s8255_s1 + $0x20] sm:$0xff]  ;;  %v246_v9 = vld [vmem:[%s8255_s1 + $0x28] sm:$0xff]  ;;  %vm2385_vm1 = vcmask 1046528   ;;  %vm2498_vm2 = vcmask 1045504  }
   0xf   : > { %s8352_s13 = smov (!%p161_p3, %s4033_s13), 1  ;;  %v4736_v6 = vpack.c.bf16 %v5754_v5, %v5749_v4  ;;  %4374 = vmatprep.mubr.msk.f32.mxu0 %vm5709_vm0, %v5710_v7  ;;  %2196 = vst [vmem:[#allocation2] sm:$0xff] %v5710_v7  ;;  %2198 = vst [vmem:[#allocation2 + $0x10] sm:$0x3] %v5710_v7  ;;  %4409 = vmatprep.mubr.msk.f32.mxu1 %vm5709_vm0, %v5710_v7  ;;  %v4739_v16 = vpack.c.bf16 %v246_v9, %v245_v8  ;;  %v247_v18 = vld [vmem:[%s8255_s1 + $0x30] sm:$0xff]  ;;  %v248_v19 = vld [vmem:[%s8255_s1 + $0x38] sm:$0xff] }
  0x10   : > { %4734 = vmatpush3.bf16.msra.mxu0 %v4733_v3  ;;  %s4114_s22 = sshll.u32 %s8352_s13, 8  ;;  %2199 = vst [vmem:[#allocation2 + $0x18] sm:$0xff] %v5710_v7  ;;  %2200 = vst [vmem:[#allocation2 + $0x20] sm:$0xff] %v5710_v7  ;;  %v4742_v23 = vpack.c.bf16 %v248_v19, %v247_v18  ;;  %v249_v25 = vld [vmem:[%s8255_s1 + $0x40] sm:$0xff]  ;;  %v250_v26 = vld [vmem:[%s8255_s1 + $0x48] sm:$0xff] }
  0x11   : > { %4735 = vmatprep.subr.bf16.mxu0 %v8258_v2  ;;  %2201 = vst [vmem:[#allocation2 + $0x28] sm:$0x3] %v5710_v7  ;;  %2202 = vst [vmem:[#allocation2 + $0x30] sm:$0xff] %v5710_v7  ;;  %s5769_s25 = scalar_lea.vmem %s8254_s0, %s4114_s22  ;;  %v4745_v32 = vpack.c.bf16 %v250_v26, %v249_v25  ;;  %v251_v34 = vld [vmem:[%s8255_s1 + $0x50] sm:$0xff]  ;;  %v252_v35 = vld [vmem:[%s8255_s1 + $0x58] sm:$0xff]  ;;  %s8160_s9 = scalar_lea.vmem %s8257_s3, %s4114_s22 }
  0x12   : > { %2203 = vst [vmem:[#allocation2 + $0x38] sm:$0xff] %v5710_v7  ;;  %2204 = vst [vmem:[#allocation2 + $0x40] sm:$0x3] %v5710_v7  ;;  %v5779_v10 = vld [vmem:[%s5769_s25 + $0x18] sm:$0xff]  ;;  %v5782_v11 = vld [vmem:[%s5769_s25] sm:$0xff]  ;;  %v4748_v39 = vpack.c.bf16 %v252_v35, %v251_v34 }
  0x13   : > { %2205 = vst [vmem:[#allocation2 + $0x48] sm:$0xff] %v5710_v7  ;;  %2206 = vst [vmem:[#allocation2 + $0x50] sm:$0xff] %v5710_v7  ;;  %v5785_v12 = vld [vmem:[%s5769_s25 + $0x8] sm:$0xff]  ;;  %462 = vadd.xlane.f32.xlu1 %v5779_v10  ;;  %456 = vadd.xlane.f32.xlu0 %v5782_v11  ;;  %v552_v14 = vmul.f32 %v5782_v11, %v5782_v11  ;;  %v5794_v15 = vld [vmem:[%s5769_s25 + $0x10] sm:$0xff]  ;;  %v555_v29 = vmul.f32 %v5779_v10, %v5779_v10 }
  0x14   : > { %2207 = vst [vmem:[#allocation2 + $0x58] sm:$0x3] %v5710_v7  ;;  %2208 = vst [vmem:[#allocation2 + $0x60] sm:$0xff] %v5710_v7  ;;  %v203_v13 = vadd.f32 %v5785_v12, %v5782_v11  ;;  %4737 = vmatpush3.bf16.msra.mxu0 %v4736_v6  ;;  %v553_v20 = vmul.f32 %v5785_v12, %v5785_v12  ;;  %v5812_v22 = vld [vmem:[%s5769_s25 + $0x20] sm:$0xff]  ;;  %v5823_v27 = vld [vmem:[%s5769_s25 + $0x28] sm:$0xff]  ;;  %v554_v28 = vmul.f32 %v5794_v15, %v5794_v15 }
  0x15   : > { %2209 = vst [vmem:[#allocation2 + $0x68] sm:$0xff] %v5710_v7  ;;  %2210 = vst [vmem:[#allocation2 + $0x70] sm:$0x3] %v5710_v7  ;;  %4738 = vmatprep.subr.bf16.mxu0 %v8258_v2  ;;  %v5832_v31 = vld [vmem:[%s5769_s25 + $0x30] sm:$0xff]  ;;  %v5843_v36 = vld [vmem:[%s5769_s25 + $0x38] sm:$0xff]  ;;  %v556_v44 = vmul.f32 %v5812_v22, %v5812_v22  ;;  %v557_v45 = vmul.f32 %v5823_v27, %v5823_v27 }
  0x16   : > { %2211 = vst [vmem:[#allocation2 + $0x78] sm:$0xff] %v5710_v7  ;;  %2212 = vst [vmem:[#allocation2 + $0x80] sm:$0xff] %v5710_v7  ;;  %v204_v17 = vadd.f32 %v203_v13, %v5794_v15  ;;  %v5847_v38 = vld [vmem:[%s5769_s25 + $0x40] sm:$0xff]  ;;  %v254_v42 = vld [vmem:[%s8255_s1 + $0x68] sm:$0xff]  ;;  %v558_v61 = vmul.f32 %v5832_v31, %v5832_v31  ;;  %v559_v62 = vmul.f32 %v5843_v36, %v5843_v36 }
  0x17   : > { %2213 = vst [vmem:[#allocation2 + $0x88] sm:$0x3] %v5710_v7  ;;  %2214 = vst [vmem:[#allocation2 + $0x90] sm:$0xff] %v5710_v7  ;;  %458 = vadd.xlane.f32.xlu0 %v5785_v12  ;;  %584 = vadd.xlane.f32.xlu1 %v552_v14  ;;  %v253_v41 = vld [vmem:[%s8255_s1 + $0x60] sm:$0xff]  ;;  %v5858_v43 = vld [vmem:[%s5769_s25 + $0x48] sm:$0xff]  ;;  %v560_v8 = vmul.f32 %v5847_v38, %v5847_v38 }
  0x18   : > { %2215 = vst [vmem:[#allocation2 + $0x98] sm:$0xff] %v5710_v7  ;;  %2216 = vst [vmem:[#allocation2 + $0xa0] sm:$0x3] %v5710_v7  ;;  %v205_v21 = vadd.f32 %v204_v17, %v5779_v10  ;;  %4740 = vmatpush3.bf16.msra.mxu0 %v4739_v16  ;;  %v5868_v47 = vld [vmem:[%s5769_s25 + $0x50] sm:$0xff]  ;;  %v4751_v48 = vpack.c.bf16 %v254_v42, %v253_v41  ;;  %v256_v51 = vld [vmem:[%s8255_s1 + $0x78] sm:$0xff]  ;;  %v561_v9 = vmul.f32 %v5858_v43, %v5858_v43 }
  0x19   : > { %2217 = vst [vmem:[#allocation2 + $0xa8] sm:$0xff] %v5710_v7  ;;  %2218 = vst [vmem:[#allocation2 + $0xb0] sm:$0xff] %v5710_v7  ;;  %4741 = vmatprep.subr.bf16.mxu0 %v8258_v2  ;;  %v255_v50 = vld [vmem:[%s8255_s1 + $0x70] sm:$0xff]  ;;  %v5879_v52 = vld [vmem:[%s5769_s25 + $0x58] sm:$0xff] }
  0x1a   : > { %2219 = vst [vmem:[#allocation2 + $0xb8] sm:$0x3] %v5710_v7  ;;  %2220 = vst [vmem:[#allocation2 + $0xc0] sm:$0xff] %v5710_v7  ;;  %v206_v24 = vadd.f32 %v205_v21, %v5812_v22  ;;  %v946_v53 = vld [vmem:[%s8255_s1 + $0x100] sm:$0xff]  ;;  %v947_v54 = vld [vmem:[%s8255_s1 + $0x108] sm:$0xff]  ;;  %v4754_v57 = vpack.c.bf16 %v256_v51, %v255_v50 }
  0x1b   : > { %2221 = vst [vmem:[#allocation2 + $0xc8] sm:$0xff] %v5710_v7  ;;  %2222 = vst [vmem:[#allocation2 + $0xd0] sm:$0x3] %v5710_v7  ;;  %460 = vadd.xlane.f32.xlu0 %v5794_v15  ;;  %586 = vadd.xlane.f32.xlu1 %v553_v20  ;;  %v5889_v56 = vld [vmem:[%s5769_s25 + $0x60] sm:$0xff]  ;;  %v5893_v59 = vpack.c.bf16 %v947_v54, %v946_v53  ;;  %v5896_v60 = vld [vmem:[%s5769_s25 + $0x68] sm:$0xff] }
  0x1c   : > { %2223 = vst [vmem:[#allocation2 + $0xd8] sm:$0xff] %v5710_v7  ;;  %2224 = vst [vmem:[#allocation2 + $0xe0] sm:$0xff] %v5710_v7  ;;  %v207_v30 = vadd.f32 %v206_v24, %v5823_v27  ;;  %4743 = vmatpush3.bf16.msra.mxu0 %v4742_v23  ;;  %v5906_v0 = vld [vmem:[%s5769_s25 + $0x70] sm:$0xff]  ;;  %v5911_v3 = vld [vmem:[%s5769_s25 + $0x78] sm:$0xff]  ;;  %v562_v23 = vmul.f32 %v5868_v47, %v5868_v47  ;;  %v563_v24 = vmul.f32 %v5879_v52, %v5879_v52 }
  0x1d   : > { %2225 = vst [vmem:[#allocation2 + $0xe8] sm:$0x3] %v5710_v7  ;;  %2226 = vst [vmem:[#allocation2 + $0xf0] sm:$0xff] %v5710_v7  ;;  %4744 = vmatprep.subr.bf16.mxu0 %v8258_v2  ;;  %v5915_v5 = vld [vmem:[%s5769_s25 + $0x80] sm:$0xff]  ;;  %v5929_v14 = vld [vmem:[%s5769_s25 + $0x90] sm:$0xff]  ;;  %v564_v35 = vmul.f32 %v5889_v56, %v5889_v56  ;;  %v567_v50 = vmul.f32 %v5911_v3, %v5911_v3 }
  0x1e   : > { %2227 = vst [vmem:[#allocation2 + $0xf8] sm:$0xff] %v5710_v7  ;;  %2228 = vst [vmem:[#allocation2 + $0x100] sm:$0x3] %v5710_v7  ;;  %v208_v33 = vadd.f32 %v207_v30, %v5832_v31  ;;  %v5933_v17 = vld [vmem:[%s5769_s25 + $0x98] sm:$0xff]  ;;  %v5937_v19 = vld [vmem:[%s5769_s25 + $0xa0] sm:$0xff] }
  0x1f   : > { %2229 = vst [vmem:[#allocation2 + $0x108] sm:$0xff] %v5710_v7  ;;  %2230 = vst [vmem:[#allocation2 + $0x110] sm:$0xff] %v5710_v7  ;;  %588 = vadd.xlane.f32.xlu0 %v554_v28  ;;  %590 = vadd.xlane.f32.xlu1 %v555_v29  ;;  %v5941_v21 = vld [vmem:[%s5769_s25 + $0xa8] sm:$0xff]  ;;  %v5951_v26 = vld [vmem:[%s5769_s25 + $0xb0] sm:$0xff] }
  0x20   : > { %2231 = vst [vmem:[#allocation2 + $0x118] sm:$0x3] %v5710_v7  ;;  %2232 = vst [vmem:[#allocation2 + $0x120] sm:$0xff] %v5710_v7  ;;  %v209_v37 = vadd.f32 %v208_v33, %v5843_v36  ;;  %4746 = vmatpush3.bf16.msra.mxu0 %v4745_v32  ;;  %v5955_v29 = vld [vmem:[%s5769_s25 + $0xb8] sm:$0xff]  ;;  %v5959_v32 = vld [vmem:[%s5769_s25 + $0xc0] sm:$0xff] }
  0x21   : > { %2233 = vst [vmem:[#allocation2 + $0x128] sm:$0xff] %v5710_v7  ;;  %2234 = vst [vmem:[#allocation2 + $0x130] sm:$0x3] %v5710_v7  ;;  %4747 = vmatprep.subr.bf16.mxu0 %v8258_v2  ;;  %v5963_v34 = vld [vmem:[%s5769_s25 + $0xc8] sm:$0xff]  ;;  %v5977_v42 = vld [vmem:[%s5769_s25 + $0xd8] sm:$0xff] }
  0x22   : > { %2235 = vst [vmem:[#allocation2 + $0x138] sm:$0xff] %v5710_v7  ;;  %2236 = vst [vmem:[#allocation2 + $0x140] sm:$0xff] %v5710_v7  ;;  %v210_v40 = vadd.f32 %v209_v37, %v5847_v38  ;;  %v565_v37 = vmul.f32 %v5896_v60, %v5896_v60  ;;  %v5995_v53 = vld [vmem:[%s5769_s25 + $0xf0] sm:$0xff] }
  0x23   : > { %2237 = vst [vmem:[#allocation2 + $0x148] sm:$0x3] %v5710_v7  ;;  %2238 = vst [vmem:[#allocation2 + $0x150] sm:$0xff] %v5710_v7  ;;  %464 = vadd.xlane.f32.xlu0 %v5812_v22  ;;  %466 = vadd.xlane.f32.xlu1 %v5823_v27 }
  0x24   : > { %2239 = vst [vmem:[#allocation2 + $0x158] sm:$0xff] %v5710_v7  ;;  %2240 = vst [vmem:[#allocation2 + $0x160] sm:$0x3] %v5710_v7  ;;  %v211_v46 = vadd.f32 %v210_v40, %v5858_v43  ;;  %4749 = vmatpush3.bf16.msra.mxu0 %v4748_v39  ;;  %v5973_v40 = vld [vmem:[%s5769_s25 + $0xd0] sm:$0xff] }
  0x25   : > { %2241 = vst [vmem:[#allocation2 + $0x168] sm:$0xff] %v5710_v7  ;;  %2242 = vst [vmem:[#allocation2 + $0x170] sm:$0xff] %v5710_v7  ;;  %4750 = vmatprep.subr.bf16.mxu0 %v8258_v2 }
  0x26   : > { %2243 = vst [vmem:[#allocation2 + $0x178] sm:$0x3] %v5710_v7  ;;  %2244 = vst [vmem:[#allocation2 + $0x180] sm:$0xff] %v5710_v7  ;;  %v212_v49 = vadd.f32 %v211_v46, %v5868_v47 }
  0x27   : > { %2245 = vst [vmem:[#allocation2 + $0x188] sm:$0xff] %v5710_v7  ;;  %2246 = vst [vmem:[#allocation2 + $0x190] sm:$0x3] %v5710_v7  ;;  %592 = vadd.xlane.f32.xlu0 %v556_v44  ;;  %594 = vadd.xlane.f32.xlu1 %v557_v45  ;;  %v5981_v45 = vld [vmem:[%s5769_s25 + $0xe0] sm:$0xff] }
  0x28   : > { %2249 = vst [vmem:[#allocation2 + $0x1a8] sm:$0x3] %v5710_v7  ;;  %v213_v55 = vadd.f32 %v212_v49, %v5879_v52  ;;  %4752 = vmatpush3.bf16.msra.mxu0 %v4751_v48  ;;  %v5919_v7 = vld [vmem:[%s5769_s25 + $0x88] sm:$0xff]  ;;  %v566_v49 = vmul.f32 %v5906_v0, %v5906_v0 }
  0x29   : > { %4753 = vmatprep.subr.bf16.mxu0 %v8258_v2  ;;  %v5985_v48 = vld [vmem:[%s5769_s25 + $0xe8] sm:$0xff] }
  0x2a   : > { %v214_v58 = vadd.f32 %v213_v55, %v5889_v56  ;;  %v5999_v55 = vld [vmem:[%s5769_s25 + $0xf8] sm:$0xff] }
  0x2b   : > { %468 = vadd.xlane.f32.xlu0 %v5832_v31  ;;  %470 = vadd.xlane.f32.xlu1 %v5843_v36 }
  0x2c   : > { %v215_v63 = vadd.f32 %v214_v58, %v5896_v60  ;;  %4755 = vmatpush3.bf16.msra.mxu0 %v4754_v57 }
  0x2d   : > { %4781 = vmatprep.subr.bf16.mxu0 %v5893_v59 }
  0x2e   : > { %v216_v1 = vadd.f32 %v215_v63, %v5906_v0 }
  0x2f   : > { %596 = vadd.xlane.f32.xlu0 %v558_v61  ;;  %598 = vadd.xlane.f32.xlu1 %v559_v62  ;;  %v568_v61 = vmul.f32 %v5915_v5, %v5915_v5  ;;  %v569_v62 = vmul.f32 %v5919_v7, %v5919_v7 }
  0x30   : > { %v217_v4 = vadd.f32 %v216_v1, %v5911_v3 }
  0x32   : > { %v218_v6 = vadd.f32 %v217_v4, %v5915_v5 }
  0x33   : > { %472 = vadd.xlane.f32.xlu0 %v5847_v38  ;;  %474 = vadd.xlane.f32.xlu1 %v5858_v43 }
  0x34   : > { %v219_v13 = vadd.f32 %v218_v6, %v5919_v7 }
  0x36   : > { %v220_v16 = vadd.f32 %v219_v13, %v5929_v14 }
  0x37   : > { %600 = vadd.xlane.f32.xlu0 %v560_v8  ;;  %602 = vadd.xlane.f32.xlu1 %v561_v9  ;;  %v570_v8 = vmul.f32 %v5929_v14, %v5929_v14  ;;  %v571_v9 = vmul.f32 %v5933_v17, %v5933_v17 }
  0x38   : > { %v221_v18 = vadd.f32 %v220_v16, %v5933_v17  ;;  %v948_v16 = vld [vmem:[%s8255_s1 + $0x110] sm:$0xff] }
  0x3a   : > { %v222_v20 = vadd.f32 %v221_v18, %v5937_v19  ;;  %v949_v18 = vld [vmem:[%s8255_s1 + $0x118] sm:$0xff] }
  0x3b   : > { %476 = vadd.xlane.f32.xlu0 %v5868_v47  ;;  %478 = vadd.xlane.f32.xlu1 %v5879_v52 }
  0x3c   : > { %v223_v25 = vadd.f32 %v222_v20, %v5941_v21 }
  0x3e   : > { %v224_v28 = vadd.f32 %v223_v25, %v5951_v26  ;;  %v951_v25 = vld [vmem:[%s8255_s1 + $0x128] sm:$0xff] }
  0x3f   : > { %604 = vadd.xlane.f32.xlu0 %v562_v23  ;;  %606 = vadd.xlane.f32.xlu1 %v563_v24  ;;  %v4784_v23 = vpack.c.bf16 %v949_v18, %v948_v16  ;;  %v950_v24 = vld [vmem:[%s8255_s1 + $0x120] sm:$0xff] }
  0x40   : > { %v225_v30 = vadd.f32 %v224_v28, %v5955_v29  ;;  %v4788_v28 = vpack.c.bf16 %v951_v25, %v950_v24 }
  0x42   : > { %v226_v33 = vadd.f32 %v225_v30, %v5959_v32  ;;  %v572_v30 = vmul.f32 %v5937_v19, %v5937_v19 }
  0x43   : > { %480 = vadd.xlane.f32.xlu0 %v5889_v56  ;;  %482 = vadd.xlane.f32.xlu1 %v5896_v60 }
  0x44   : > { %v227_v39 = vadd.f32 %v226_v33, %v5963_v34  ;;  %v573_v33 = vmul.f32 %v5941_v21, %v5941_v21 }
  0x46   : > { %v228_v41 = vadd.f32 %v227_v39, %v5973_v40  ;;  %v954_v39 = vld [vmem:[%s8255_s1 + $0x140] sm:$0xff] }
  0x47   : > { %608 = vadd.xlane.f32.xlu0 %v564_v35  ;;  %610 = vadd.xlane.f32.xlu1 %v565_v37  ;;  %v952_v35 = vld [vmem:[%s8255_s1 + $0x130] sm:$0xff] }
  0x48   : > { %v229_v44 = vadd.f32 %v228_v41, %v5977_v42  ;;  %v955_v41 = vld [vmem:[%s8255_s1 + $0x148] sm:$0xff] }
  0x4a   : > { %v230_v46 = vadd.f32 %v229_v44, %v5981_v45  ;;  %v4796_v44 = vpack.c.bf16 %v955_v41, %v954_v39 }
  0x4b   : > { %484 = vadd.xlane.f32.xlu0 %v5906_v0  ;;  %486 = vadd.xlane.f32.xlu1 %v5911_v3 }
  0x4c   : > { %v231_v51 = vadd.f32 %v230_v46, %v5985_v48  ;;  %v574_v46 = vmul.f32 %v5951_v26, %v5951_v26 }
  0x4e   : > { %v232_v54 = vadd.f32 %v231_v51, %v5995_v53  ;;  %v957_v51 = vld [vmem:[%s8255_s1 + $0x158] sm:$0xff] }
  0x4f   : > { %612 = vadd.xlane.f32.xlu0 %v566_v49  ;;  %614 = vadd.xlane.f32.xlu1 %v567_v50  ;;  %v575_v49 = vmul.f32 %v5955_v29, %v5955_v29  ;;  %v956_v50 = vld [vmem:[%s8255_s1 + $0x150] sm:$0xff] }
  0x50   : > { %v233_v57 = vadd.f32 %v232_v54, %v5999_v55  ;;  %v4800_v54 = vpack.c.bf16 %v957_v51, %v956_v50 }
  0x52   : > { %v234_v58 = vrot.slane %v233_v57, 4 }
  0x53   : > { %488 = vadd.xlane.f32.xlu0 %v5915_v5  ;;  %490 = vadd.xlane.f32.xlu1 %v5919_v7 }
  0x54   : > { %v235_v63 = vadd.f32 %v234_v58, %v233_v57  ;;  %v958_v57 = vld [vmem:[%s8255_s1 + $0x160] sm:$0xff] }
  0x56   : > { %v236_v1 = vrot.slane %v235_v63, 2 }
  0x57   : > { %616 = vadd.xlane.f32.xlu0 %v568_v61  ;;  %618 = vadd.xlane.f32.xlu1 %v569_v62  ;;  %v576_v61 = vmul.f32 %v5959_v32, %v5959_v32  ;;  %v577_v62 = vmul.f32 %v5963_v34, %v5963_v34 }
  0x58   : > { %v237_v4 = vadd.f32 %v236_v1, %v235_v63  ;;  %v960_v63 = vld [vmem:[%s8255_s1 + $0x170] sm:$0xff]  ;;  %v961_v1 = vld [vmem:[%s8255_s1 + $0x178] sm:$0xff] }
  0x5a   : > { %v238_v6 = vrot.slane %v237_v4, 1 }
  0x5b   : > { %492 = vadd.xlane.f32.xlu0 %v5929_v14  ;;  %494 = vadd.xlane.f32.xlu1 %v5933_v17 }
  0x5c   : > { %v239_v13 = vadd.f32 %v238_v6, %v237_v4  ;;  %v4808_v4 = vpack.c.bf16 %v961_v1, %v960_v63  ;;  %v580_v6 = vmul.f32 %v5981_v45, %v5981_v45 }
  0x5e   : > { %v240_v20 = vmul.f32 0.00390625, %v239_v13 }
  0x5f   : > { %620 = vadd.xlane.f32.xlu0 %v570_v8  ;;  %622 = vadd.xlane.f32.xlu1 %v571_v9  ;;  %v581_v8 = vmul.f32 %v5985_v48, %v5985_v48 }
  0x60   : > { %4375 = vmatmul.mubr.f32.vlgmr.msra.gmra.mrb[0].mxu0 %v240_v20 }
  0x61   : > { %4783 = vmatpush3.bf16.msra.mxu0 %v5893_v59  ;;  %v953_v59 = vld [vmem:[%s8255_s1 + $0x138] sm:$0xff] }
  0x62   : > { %4785 = vmatprep.subr.bf16.mxu0 %v4784_v23  ;;  %v4792_v37 = vpack.c.bf16 %v953_v59, %v952_v35 }
  0x63   : > { %496 = vadd.xlane.f32.xlu0 %v5937_v19  ;;  %498 = vadd.xlane.f32.xlu1 %v5941_v21 }
  0x65   : > { %4787 = vmatpush3.bf16.msra.mxu0 %v4784_v23 }
  0x66   : > { %4789 = vmatprep.subr.bf16.mxu0 %v4788_v28 }
  0x67   : > { %624 = vadd.xlane.f32.xlu0 %v572_v30  ;;  %626 = vadd.xlane.f32.xlu1 %v573_v33 }
  0x69   : > { %4791 = vmatpush3.bf16.msra.mxu0 %v4788_v28 }
  0x6a   : > { %4793 = vmatprep.subr.bf16.mxu0 %v4792_v37 }
  0x6b   : > { %500 = vadd.xlane.f32.xlu0 %v5951_v26  ;;  %502 = vadd.xlane.f32.xlu1 %v5955_v29  ;;  %v959_v29 = vld [vmem:[%s8255_s1 + $0x168] sm:$0xff] }
  0x6c   : > { %v4804_v58 = vpack.c.bf16 %v959_v29, %v958_v57 }
  0x6d   : > { %4795 = vmatpush3.bf16.msra.mxu0 %v4792_v37 }
  0x6e   : > { %4797 = vmatprep.subr.bf16.mxu0 %v4796_v44 }
  0x6f   : > { %628 = vadd.xlane.f32.xlu0 %v574_v46  ;;  %630 = vadd.xlane.f32.xlu1 %v575_v49 }
  0x71   : > { %4799 = vmatpush3.bf16.msra.mxu0 %v4796_v44 }
  0x72   : > { %4801 = vmatprep.subr.bf16.mxu0 %v4800_v54 }
  0x73   : > { %504 = vadd.xlane.f32.xlu0 %v5959_v32  ;;  %506 = vadd.xlane.f32.xlu1 %v5963_v34  ;;  %v578_v32 = vmul.f32 %v5973_v40, %v5973_v40  ;;  %v579_v34 = vmul.f32 %v5977_v42, %v5977_v42 }
  0x75   : > { %4803 = vmatpush3.bf16.msra.mxu0 %v4800_v54 }
  0x76   : > { %4805 = vmatprep.subr.bf16.mxu0 %v4804_v58 }
  0x77   : > { %632 = vadd.xlane.f32.xlu0 %v576_v61  ;;  %634 = vadd.xlane.f32.xlu1 %v577_v62 }
  0x79   : > { %4807 = vmatpush3.bf16.msra.mxu0 %v4804_v58 }
  0x7a   : > { %4809 = vmatprep.subr.bf16.mxu0 %v4808_v4 }
  0x7b   : > { %508 = vadd.xlane.f32.xlu0 %v5973_v40  ;;  %510 = vadd.xlane.f32.xlu1 %v5977_v42  ;;  %v582_v40 = vmul.f32 %v5995_v53, %v5995_v53  ;;  %v583_v42 = vmul.f32 %v5999_v55, %v5999_v55 }
  0x7d   : > { %4811 = vmatpush3.bf16.msra.mxu0 %v4808_v4 }
  0x7f   : > { %636 = vadd.xlane.f32.xlu0 %v578_v32  ;;  %638 = vadd.xlane.f32.xlu1 %v579_v34 }
  0x83   : > { %512 = vadd.xlane.f32.xlu0 %v5981_v45  ;;  %514 = vadd.xlane.f32.xlu1 %v5985_v48 }
  0x87   : > { %640 = vadd.xlane.f32.xlu0 %v580_v6  ;;  %642 = vadd.xlane.f32.xlu1 %v581_v8  ;;  %v6115_v6 = vld [vmem:[%s8256_s2] ss:$0 sm:$0xff] }
  0x8b   : > { %516 = vadd.xlane.f32.xlu0 %v5995_v53  ;;  %518 = vadd.xlane.f32.xlu1 %v5999_v55 }
  0x8f   : > { %644 = vadd.xlane.f32.xlu0 %v582_v40  ;;  %646 = vadd.xlane.f32.xlu1 %v583_v42 }
  0xa0   : > { %v463_v9 = vpop.xlane.xlu1 %462  ;;  %v457_v13 = vpop.xlane.xlu0 %456 }
  0xa1   : > { %v520_v45 = vmul.f32 0.03846154, %v457_v13  ;;  %v6095_v25 = vmul.f32 0.03846154, %v463_v9  ;;  %v329_v13 = vld [vmem:[%s8255_s1 + $0x88] sm:$0xff] }
  0xa3   : > { %v680_v48 = vmul.f32 %v520_v45, %v520_v45  ;;  %v683_v37 = vmul.f32 %v6095_v25, %v6095_v25  ;;  %v746_v1 = vsub.f32 %v5782_v11, %v520_v45  ;;  %v328_v11 = vld [vmem:[%s8255_s1 + $0x80] sm:$0xff] }
  0xa4   : > { %v459_v16 = vpop.xlane.xlu0 %458  ;;  %v585_v18 = vpop.xlane.xlu1 %584 }
  0xa5   : > { %v6093_v20 = vmul.f32 0.03846154, %v459_v16  ;;  %v648_v23 = vmul.f32 0.03846154, %v585_v18  ;;  %v4757_v16 = vpack.c.bf16 %v329_v13, %v328_v11  ;;  %v330_v18 = vld [vmem:[%s8255_s1 + $0x90] sm:$0xff] }
  0xa7   : > { %v712_v24 = vsub.f32 %v648_v23, %v680_v48  ;;  %v681_v53 = vmul.f32 %v6093_v20, %v6093_v20  ;;  %v331_v48 = vld [vmem:[%s8255_s1 + $0x98] sm:$0xff]  ;;  %4758 = vmatpush3.bf16.msra.mxu1 %v4757_v16 }
  0xa8   : > { %v461_v28 = vpop.xlane.xlu0 %460  ;;  %v587_v30 = vpop.xlane.xlu1 %586  ;;  %4759 = vmatprep.subr.bf16.mxu1 %v8258_v2 }
  0xa9   : > { %v778_v55 = vadd.f32 1e-05, %v712_v24  ;;  %v6099_v33 = vmul.f32 0.03846154, %v461_v28  ;;  %v649_v35 = vmul.f32 0.03846154, %v587_v30  ;;  %v747_v30 = vsub.f32 %v5785_v12, %v6093_v20 }
  0xaa   : > { %v6134_v28 = vld [vmem:[%s8256_s2 + $0x1] ss:$0 sm:$0xff] }
  0xab   : > { %5303 = vrsqrt.f32 %v778_v55  ;;  %v713_v59 = vsub.f32 %v649_v35, %v681_v53  ;;  %v682_v44 = vmul.f32 %v6099_v33, %v6099_v33 }
  0xac   : > { %v589_v39 = vpop.xlane.xlu0 %588  ;;  %v591_v41 = vpop.xlane.xlu1 %590 }
  0xad   : > { %v779_v46 = vadd.f32 1e-05, %v713_v59  ;;  %v650_v49 = vmul.f32 0.03846154, %v589_v39  ;;  %v651_v50 = vmul.f32 0.03846154, %v591_v41  ;;  %v4760_v59 = vpack.c.bf16 %v331_v48, %v330_v18 }
  0xae   : > { %v333_v39 = vld [vmem:[%s8255_s1 + $0xa8] sm:$0xff]  ;;  %v336_v48 = vld [vmem:[%s8255_s1 + $0xc0] sm:$0xff] }
  0xaf   : > { %5305 = vrsqrt.f32 %v779_v46  ;;  %v714_v51 = vsub.f32 %v650_v49, %v682_v44  ;;  %v715_v54 = vsub.f32 %v651_v50, %v683_v37  ;;  %v332_v37 = vld [vmem:[%s8255_s1 + $0xa0] sm:$0xff]  ;;  %4761 = vmatpush3.bf16.msra.mxu1 %v4760_v59 }
  0xb0   : > { %v465_v57 = vpop.xlane.xlu0 %464  ;;  %v467_v29 = vpop.xlane.xlu1 %466  ;;  %4762 = vmatprep.subr.bf16.mxu1 %v8258_v2 }
  0xb1   : > { %v780_v58 = vadd.f32 1e-05, %v714_v51  ;;  %v781_v61 = vadd.f32 1e-05, %v715_v54  ;;  %v6105_v62 = vmul.f32 0.03846154, %v465_v57  ;;  %v748_v51 = vsub.f32 %v5794_v15, %v6099_v33 }
  0xb2   : > { %v6107_v63 = vmul.f32 0.03846154, %v467_v29 }
  0xb3   : > { %5307 = vrsqrt.f32 %v780_v58  ;;  %v684_v40 = vmul.f32 %v6105_v62, %v6105_v62 }
  0xb4   : > { %5309 = vrsqrt.f32 %v781_v61  ;;  %v685_v4 = vmul.f32 %v6107_v63, %v6107_v63  ;;  %v593_v32 = vpop.xlane.xlu0 %592  ;;  %v595_v34 = vpop.xlane.xlu1 %594  ;;  %v4763_v61 = vpack.c.bf16 %v333_v39, %v332_v37  ;;  %v750_v39 = vsub.f32 %v5812_v22, %v6105_v62  ;;  %v338_v22 = vld [vmem:[%s8255_s1 + $0xd0] sm:$0xff]  ;;  %v339_v62 = vld [vmem:[%s8255_s1 + $0xd8] sm:$0xff] }
  0xb5   : > { %v5304_v8 = vpop.eup %5303  ;;  %v652_v42 = vmul.f32 0.03846154, %v593_v32  ;;  %v653_v9 = vmul.f32 0.03846154, %v595_v34  ;;  %v334_v34 = vld [vmem:[%s8255_s1 + $0xb0] sm:$0xff] }
  0xb6   : > { %v842_v45 = vmul.f32 %v5304_v8, %v746_v1  ;;  %v335_v8 = vld [vmem:[%s8255_s1 + $0xb8] sm:$0xff]  ;;  %4764 = vmatpush3.bf16.msra.mxu1 %v4763_v61 }
  0xb7   : > { %v716_v23 = vsub.f32 %v652_v42, %v684_v40  ;;  %v717_v24 = vsub.f32 %v653_v9, %v685_v4  ;;  %v749_v4 = vsub.f32 %v5779_v10, %v6095_v25  ;;  %v4766_v18 = vpack.c.bf16 %v335_v8, %v334_v34  ;;  %4765 = vmatprep.subr.bf16.mxu1 %v8258_v2  ;;  %v340_v34 = vld [vmem:[%s8255_s1 + $0xe0] sm:$0xff]  ;;  %v341_v8 = vld [vmem:[%s8255_s1 + $0xe8] sm:$0xff] }
  0xb8   : > { %v469_v53 = vpop.xlane.xlu0 %468  ;;  %v471_v55 = vpop.xlane.xlu1 %470  ;;  %v878_v35 = vmul.f32 %v6115_v6, %v842_v45 }
  0xb9   : > { %v5306_v41 = vpop.eup %5305  ;;  %v782_v44 = vadd.f32 1e-05, %v716_v23  ;;  %v783_v46 = vadd.f32 1e-05, %v717_v24  ;;  %v6145_v49 = vmul.f32 0.03846154, %v469_v53 }
  0xba   : > { %v6148_v12 = vmul.f32 0.03846154, %v471_v55  ;;  %v914_v20 = vadd.f32 %v6134_v28, %v878_v35  ;;  %v843_v50 = vmul.f32 %v5306_v41, %v747_v30  ;;  %v337_v23 = vld [vmem:[%s8255_s1 + $0xc8] sm:$0xff]  ;;  %4767 = vmatpush3.bf16.msra.mxu1 %v4766_v18 }
  0xbb   : > { %5311 = vrsqrt.f32 %v782_v44  ;;  %v686_v32 = vmul.f32 %v6145_v49, %v6145_v49  ;;  %4768 = vmatprep.subr.bf16.mxu1 %v8258_v2 }
  0xbc   : > { %5313 = vrsqrt.f32 %v783_v46  ;;  %v687_v54 = vmul.f32 %v6148_v12, %v6148_v12  ;;  %v597_v57 = vpop.xlane.xlu0 %596  ;;  %v599_v29 = vpop.xlane.xlu1 %598  ;;  %4444 = vmatprep.mubr.f32.mxu0 %v914_v20  ;;  %v879_v58 = vmul.f32 %v6115_v6, %v843_v50  ;;  %v4769_v20 = vpack.c.bf16 %v337_v23, %v336_v48 }
  0xbd   : > { %v5308_v1 = vpop.eup %5307  ;;  %v654_v15 = vmul.f32 0.03846154, %v597_v57  ;;  %v655_v33 = vmul.f32 0.03846154, %v599_v29  ;;  %v4775_v23 = vpack.c.bf16 %v341_v8, %v340_v34 }
  0xbe   : > { %v5310_v40 = vpop.eup %5309  ;;  %v915_v42 = vadd.f32 %v6134_v28, %v879_v58  ;;  %v844_v9 = vmul.f32 %v5308_v1, %v748_v51  ;;  %v751_v51 = vsub.f32 %v5823_v27, %v6107_v63  ;;  %4770 = vmatpush3.bf16.msra.mxu1 %v4769_v20 }
  0xbf   : > { %v718_v10 = vsub.f32 %v654_v15, %v686_v32  ;;  %v719_v25 = vsub.f32 %v655_v33, %v687_v54  ;;  %v845_v11 = vmul.f32 %v5310_v40, %v749_v4  ;;  %v4772_v33 = vpack.c.bf16 %v339_v62, %v338_v22  ;;  %4771 = vmatprep.subr.bf16.mxu1 %v8258_v2 }
  0xc0   : > { %v473_v13 = vpop.xlane.xlu0 %472  ;;  %v475_v45 = vpop.xlane.xlu1 %474  ;;  %4445 = vmatmul.mubr.f32.vlgmr.msra.gmra.mrb[2].mxu0 %v915_v42  ;;  %v880_v16 = vmul.f32 %v6115_v6, %v844_v9 }
  0xc1   : > { %v784_v24 = vadd.f32 1e-05, %v718_v10  ;;  %v785_v30 = vadd.f32 1e-05, %v719_v25  ;;  %v6175_v53 = vmul.f32 0.03846154, %v473_v13  ;;  %v881_v55 = vmul.f32 %v6115_v6, %v845_v11 }
  0xc2   : > { %v6179_v35 = vmul.f32 0.03846154, %v475_v45  ;;  %v916_v59 = vadd.f32 %v6134_v28, %v880_v16  ;;  %v752_v45 = vsub.f32 %v5832_v31, %v6145_v49  ;;  %4773 = vmatpush3.bf16.msra.mxu1 %v4772_v33  ;;  %v342_v31 = vld [vmem:[%s8255_s1 + $0xf0] sm:$0xff]  ;;  %v343_v49 = vld [vmem:[%s8255_s1 + $0xf8] sm:$0xff] }
  0xc3   : > { %5315 = vrsqrt.f32 %v784_v24  ;;  %v917_v37 = vadd.f32 %v6134_v28, %v881_v55  ;;  %v688_v54 = vmul.f32 %v6175_v53, %v6175_v53  ;;  %4774 = vmatprep.subr.bf16.mxu1 %v8258_v2 }
  0xc4   : > { %5317 = vrsqrt.f32 %v785_v30  ;;  %v689_v41 = vmul.f32 %v6179_v35, %v6179_v35  ;;  %v601_v44 = vpop.xlane.xlu0 %600  ;;  %v603_v46 = vpop.xlane.xlu1 %602  ;;  %4447 = vmatprep.mubr.f32.mxu0 %v916_v59  ;;  %v753_v30 = vsub.f32 %v5843_v36, %v6148_v12 }
  0xc5   : > { %v5312_v50 = vpop.eup %5311  ;;  %v656_v57 = vmul.f32 0.03846154, %v601_v44  ;;  %v657_v29 = vmul.f32 0.03846154, %v603_v46  ;;  %4448 = vmatmul.mubr.f32.gmra.mrb[4].mxu0 %v917_v37 }
  0xc6   : > { %v5314_v58 = vpop.eup %5313  ;;  %v846_v61 = vmul.f32 %v5312_v50, %v750_v39  ;;  %4776 = vmatpush3.bf16.msra.mxu1 %v4775_v23 }
  0xc7   : > { %v720_v1 = vsub.f32 %v656_v57, %v688_v54  ;;  %v721_v27 = vsub.f32 %v657_v29, %v689_v41  ;;  %v847_v63 = vmul.f32 %v5314_v58, %v751_v51  ;;  %v4778_v51 = vpack.c.bf16 %v343_v49, %v342_v31  ;;  %4777 = vmatprep.subr.bf16.mxu1 %v8258_v2 }
  0xc8   : > { %v477_v4 = vpop.xlane.xlu0 %476  ;;  %v479_v32 = vpop.xlane.xlu1 %478  ;;  %v882_v15 = vmul.f32 %v6115_v6, %v846_v61 }
  0xc9   : > { %v786_v40 = vadd.f32 1e-05, %v720_v1  ;;  %v787_v42 = vadd.f32 1e-05, %v721_v27  ;;  %v6205_v9 = vmul.f32 0.03846154, %v477_v4  ;;  %v883_v10 = vmul.f32 %v6115_v6, %v847_v63 }
  0xca   : > { %v6209_v25 = vmul.f32 0.03846154, %v479_v32  ;;  %v918_v11 = vadd.f32 %v6134_v28, %v882_v15  ;;  %v754_v1 = vsub.f32 %v5847_v38, %v6175_v53  ;;  %4779 = vmatpush3.bf16.msra.mxu1 %v4778_v51  ;;  %v755_v15 = vsub.f32 %v5858_v43, %v6179_v35 }
  0xcb   : > { %5319 = vrsqrt.f32 %v786_v40  ;;  %v919_v13 = vadd.f32 %v6134_v28, %v883_v10  ;;  %v690_v55 = vmul.f32 %v6205_v9, %v6205_v9 }
  0xcc   : > { %5321 = vrsqrt.f32 %v787_v42  ;;  %v691_v16 = vmul.f32 %v6209_v25, %v6209_v25  ;;  %v605_v18 = vpop.xlane.xlu0 %604  ;;  %v607_v48 = vpop.xlane.xlu1 %606  ;;  %4450 = vmatprep.mubr.f32.mxu0 %v918_v11  ;;  %v757_v49 = vsub.f32 %v5879_v52, %v6209_v25 }
  0xcd   : > { %v5316_v24 = vpop.eup %5315  ;;  %v658_v59 = vmul.f32 0.03846154, %v605_v18  ;;  %v659_v37 = vmul.f32 0.03846154, %v607_v48  ;;  %4451 = vmatmul.mubr.f32.gmra.mrb[6].mxu0 %v919_v13 }
  0xce   : > { %v5318_v39 = vpop.eup %5317  ;;  %v848_v41 = vmul.f32 %v5316_v24, %v752_v45 }
  0xcf   : > { %v722_v44 = vsub.f32 %v658_v59, %v690_v55  ;;  %v723_v36 = vsub.f32 %v659_v37, %v691_v16  ;;  %v849_v12 = vmul.f32 %v5318_v39, %v753_v30  ;;  %v756_v30 = vsub.f32 %v5868_v47, %v6205_v9 }
  0xd0   : > { %v481_v46 = vpop.xlane.xlu0 %480  ;;  %v483_v20 = vpop.xlane.xlu1 %482  ;;  %v884_v50 = vmul.f32 %v6115_v6, %v848_v41 }
  0xd1   : > { %v788_v54 = vadd.f32 1e-05, %v722_v44  ;;  %v789_v57 = vadd.f32 1e-05, %v723_v36  ;;  %v6229_v29 = vmul.f32 0.03846154, %v481_v46  ;;  %v885_v22 = vmul.f32 %v6115_v6, %v849_v12 }
  0xd2   : > { %v6233_v62 = vmul.f32 0.03846154, %v483_v20  ;;  %v920_v58 = vadd.f32 %v6134_v28, %v884_v50 }
  0xd3   : > { %5323 = vrsqrt.f32 %v788_v54  ;;  %v921_v61 = vadd.f32 %v6134_v28, %v885_v22  ;;  %v692_v33 = vmul.f32 %v6229_v29, %v6229_v29 }
  0xd4   : > { %5325 = vrsqrt.f32 %v789_v57  ;;  %v693_v27 = vmul.f32 %v6233_v62, %v6233_v62  ;;  %v609_v63 = vpop.xlane.xlu0 %608  ;;  %v611_v4 = vpop.xlane.xlu1 %610  ;;  %4453 = vmatprep.mubr.f32.mxu0 %v920_v58 }
  0xd5   : > { %v5320_v32 = vpop.eup %5319  ;;  %v660_v34 = vmul.f32 0.03846154, %v609_v63  ;;  %v661_v8 = vmul.f32 0.03846154, %v611_v4  ;;  %4454 = vmatmul.mubr.f32.gmra.mrb[8].mxu0 %v921_v61 }
  0xd6   : > { %v5322_v40 = vpop.eup %5321  ;;  %v850_v38 = vmul.f32 %v5320_v32, %v754_v1  ;;  %v758_v1 = vsub.f32 %v5889_v56, %v6229_v29 }
  0xd7   : > { %v724_v53 = vsub.f32 %v660_v34, %v692_v33  ;;  %v725_v42 = vsub.f32 %v661_v8, %v693_v27  ;;  %v851_v10 = vmul.f32 %v5322_v40, %v755_v15  ;;  %v759_v15 = vsub.f32 %v5896_v60, %v6233_v62 }
  0xd8   : > { %v485_v11 = vpop.xlane.xlu0 %484  ;;  %v487_v13 = vpop.xlane.xlu1 %486  ;;  %v886_v45 = vmul.f32 %v6115_v6, %v850_v38 }
  0xd9   : > { %v790_v16 = vadd.f32 1e-05, %v724_v53  ;;  %v791_v18 = vadd.f32 1e-05, %v725_v42  ;;  %v6246_v48 = vmul.f32 0.03846154, %v485_v11  ;;  %v887_v43 = vmul.f32 %v6115_v6, %v851_v10 }
  0xda   : > { %v6249_v35 = vmul.f32 0.03846154, %v487_v13  ;;  %v922_v23 = vadd.f32 %v6134_v28, %v886_v45 }
  0xdb   : > { %5327 = vrsqrt.f32 %v790_v16  ;;  %v923_v24 = vadd.f32 %v6134_v28, %v887_v43  ;;  %v694_v39 = vmul.f32 %v6246_v48, %v6246_v48 }
  0xdc   : > { %5329 = vrsqrt.f32 %v791_v18  ;;  %v695_v55 = vmul.f32 %v6249_v35, %v6249_v35  ;;  %v613_v59 = vpop.xlane.xlu0 %612  ;;  %v615_v37 = vpop.xlane.xlu1 %614  ;;  %4456 = vmatprep.mubr.f32.mxu0 %v922_v23  ;;  %v760_v23 = vsub.f32 %v5906_v0, %v6246_v48 }
  0xdd   : > { %v5324_v31 = vpop.eup %5323  ;;  %v662_v41 = vmul.f32 0.03846154, %v613_v59  ;;  %v663_v44 = vmul.f32 0.03846154, %v615_v37  ;;  %4457 = vmatmul.mubr.f32.gmra.mrb[10].mxu0 %v923_v24  ;;  %v761_v37 = vsub.f32 %v5911_v3, %v6249_v35 }
  0xde   : > { %v5326_v36 = vpop.eup %5325  ;;  %v852_v12 = vmul.f32 %v5324_v31, %v756_v30 }
  0xdf   : > { %v726_v47 = vsub.f32 %v662_v41, %v694_v39  ;;  %v727_v9 = vsub.f32 %v663_v44, %v695_v55  ;;  %v853_v46 = vmul.f32 %v5326_v36, %v757_v49 }
  0xe0   : > { %v489_v20 = vpop.xlane.xlu0 %488  ;;  %v491_v50 = vpop.xlane.xlu1 %490  ;;  %v888_v51 = vmul.f32 %v6115_v6, %v852_v12 }
  0xe1   : > { %v792_v54 = vadd.f32 1e-05, %v726_v47  ;;  %v793_v57 = vadd.f32 1e-05, %v727_v9  ;;  %v6262_v22 = vmul.f32 0.03846154, %v489_v20  ;;  %v889_v52 = vmul.f32 %v6115_v6, %v853_v46 }
  0xe2   : > { %v6265_v25 = vmul.f32 0.03846154, %v491_v50  ;;  %v924_v58 = vadd.f32 %v6134_v28, %v888_v51 }
  0xe3   : > { %5331 = vrsqrt.f32 %v792_v54  ;;  %v925_v61 = vadd.f32 %v6134_v28, %v889_v52  ;;  %v696_v33 = vmul.f32 %v6262_v22, %v6262_v22 }
  0xe4   : > { %5333 = vrsqrt.f32 %v793_v57  ;;  %v697_v27 = vmul.f32 %v6265_v25, %v6265_v25  ;;  %v617_v63 = vpop.xlane.xlu0 %616  ;;  %v619_v4 = vpop.xlane.xlu1 %618  ;;  %4459 = vmatprep.mubr.f32.mxu0 %v924_v58  ;;  %v762_v57 = vsub.f32 %v5915_v5, %v6262_v22 }
  0xe5   : > { %v5328_v32 = vpop.eup %5327  ;;  %v664_v34 = vmul.f32 0.03846154, %v617_v63  ;;  %v665_v8 = vmul.f32 0.03846154, %v619_v4  ;;  %4460 = vmatmul.mubr.f32.gmra.mrb[12].mxu0 %v925_v61 }
  0xe6   : > { %v5330_v40 = vpop.eup %5329  ;;  %v854_v38 = vmul.f32 %v5328_v32, %v758_v1 }
  0xe7   : > { %v728_v56 = vsub.f32 %v664_v34, %v696_v33  ;;  %v729_v29 = vsub.f32 %v665_v8, %v697_v27  ;;  %v855_v53 = vmul.f32 %v5330_v40, %v759_v15  ;;  %v763_v27 = vsub.f32 %v5919_v7, %v6265_v25 }
  0xe8   : > { %v493_v42 = vpop.xlane.xlu0 %492  ;;  %v495_v10 = vpop.xlane.xlu1 %494  ;;  %v890_v11 = vmul.f32 %v6115_v6, %v854_v38 }
  0xe9   : > { %v794_v13 = vadd.f32 1e-05, %v728_v56  ;;  %v795_v45 = vadd.f32 1e-05, %v729_v29  ;;  %v6278_v16 = vmul.f32 0.03846154, %v493_v42  ;;  %v891_v60 = vmul.f32 %v6115_v6, %v855_v53 }
  0xea   : > { %v6281_v62 = vmul.f32 0.03846154, %v495_v10  ;;  %v926_v18 = vadd.f32 %v6134_v28, %v890_v11 }
  0xeb   : > { %5335 = vrsqrt.f32 %v794_v13  ;;  %v927_v43 = vadd.f32 %v6134_v28, %v891_v60  ;;  %v698_v31 = vmul.f32 %v6278_v16, %v6278_v16  ;;  %v764_v11 = vsub.f32 %v5929_v14, %v6278_v16 }
  0xec   : > { %5337 = vrsqrt.f32 %v795_v45  ;;  %v699_v24 = vmul.f32 %v6281_v62, %v6281_v62  ;;  %v621_v30 = vpop.xlane.xlu0 %620  ;;  %v623_v55 = vpop.xlane.xlu1 %622  ;;  %4462 = vmatprep.mubr.f32.mxu0 %v926_v18 }
  0xed   : > { %v5332_v59 = vpop.eup %5331  ;;  %v666_v49 = vmul.f32 0.03846154, %v621_v30  ;;  %v667_v39 = vmul.f32 0.03846154, %v623_v55  ;;  %4463 = vmatmul.mubr.f32.gmra.mrb[14].mxu0 %v927_v43  ;;  %v765_v43 = vsub.f32 %v5933_v17, %v6281_v62 }
  0xee   : > { %v5334_v41 = vpop.eup %5333  ;;  %v856_v44 = vmul.f32 %v5332_v59, %v760_v23 }
  0xef   : > { %v730_v0 = vsub.f32 %v666_v49, %v698_v31  ;;  %v731_v48 = vsub.f32 %v667_v39, %v699_v24  ;;  %v857_v36 = vmul.f32 %v5334_v41, %v761_v37 }
  0xf0   : > { %v497_v12 = vpop.xlane.xlu0 %496  ;;  %v499_v47 = vpop.xlane.xlu1 %498  ;;  %v892_v9 = vmul.f32 %v6115_v6, %v856_v44 }
  0xf1   : > { %v796_v46 = vadd.f32 1e-05, %v730_v0  ;;  %v797_v20 = vadd.f32 1e-05, %v731_v48  ;;  %v6294_v50 = vmul.f32 0.03846154, %v497_v12  ;;  %v893_v3 = vmul.f32 %v6115_v6, %v857_v36 }
  0xf2   : > { %v6297_v35 = vmul.f32 0.03846154, %v499_v47  ;;  %v928_v51 = vadd.f32 %v6134_v28, %v892_v9 }
  0xf3   : > { %5339 = vrsqrt.f32 %v796_v46  ;;  %v929_v54 = vadd.f32 %v6134_v28, %v893_v3  ;;  %v700_v63 = vmul.f32 %v6294_v50, %v6294_v50  ;;  %v766_v12 = vsub.f32 %v5937_v19, %v6294_v50 }
  0xf4   : > { %5341 = vrsqrt.f32 %v797_v20  ;;  %v701_v52 = vmul.f32 %v6297_v35, %v6297_v35  ;;  %v625_v58 = vpop.xlane.xlu0 %624  ;;  %v627_v61 = vpop.xlane.xlu1 %626  ;;  %4465 = vmatprep.mubr.f32.mxu0 %v928_v51  ;;  %v767_v3 = vsub.f32 %v5941_v21, %v6297_v35 }
  0xf5   : > { %v5336_v1 = vpop.eup %5335  ;;  %v668_v4 = vmul.f32 0.03846154, %v625_v58  ;;  %v669_v32 = vmul.f32 0.03846154, %v627_v61  ;;  %4466 = vmatmul.mubr.f32.gmra.mrb[16].mxu0 %v929_v54 }
  0xf6   : > { %v5338_v15 = vpop.eup %5337  ;;  %v858_v33 = vmul.f32 %v5336_v1, %v762_v57 }
  0xf7   : > { %v732_v5 = vsub.f32 %v668_v4, %v700_v63  ;;  %v733_v22 = vsub.f32 %v669_v32, %v701_v52  ;;  %v859_v34 = vmul.f32 %v5338_v15, %v763_v27 }
  0xf8   : > { %v501_v8 = vpop.xlane.xlu0 %500  ;;  %v503_v40 = vpop.xlane.xlu1 %502  ;;  %v894_v38 = vmul.f32 %v6115_v6, %v858_v33 }
  0xf9   : > { %v798_v56 = vadd.f32 1e-05, %v732_v5  ;;  %v799_v29 = vadd.f32 1e-05, %v733_v22  ;;  %v6310_v53 = vmul.f32 0.03846154, %v501_v8  ;;  %v895_v7 = vmul.f32 %v6115_v6, %v859_v34 }
  0xfa   : > { %v6313_v25 = vmul.f32 0.03846154, %v503_v40  ;;  %v930_v42 = vadd.f32 %v6134_v28, %v894_v38 }
  0xfb   : > { %5343 = vrsqrt.f32 %v798_v56  ;;  %v931_v10 = vadd.f32 %v6134_v28, %v895_v7  ;;  %v702_v23 = vmul.f32 %v6310_v53, %v6310_v53  ;;  %v768_v22 = vsub.f32 %v5951_v26, %v6310_v53  ;;  %v5627_v56 = vld [vmem:[%s5769_s25 + $0xb8] sm:$0xff] }
  0xfc   : > { %5345 = vrsqrt.f32 %v799_v29  ;;  %v703_v13 = vmul.f32 %v6313_v25, %v6313_v25  ;;  %v629_v45 = vpop.xlane.xlu0 %628  ;;  %v631_v60 = vpop.xlane.xlu1 %630  ;;  %4468 = vmatprep.mubr.f32.mxu0 %v930_v42  ;;  %v769_v29 = vsub.f32 %v5627_v56, %v6313_v25 }
  0xfd   : > { %v5340_v18 = vpop.eup %5339  ;;  %v670_v24 = vmul.f32 0.03846154, %v629_v45  ;;  %v671_v30 = vmul.f32 0.03846154, %v631_v60  ;;  %4469 = vmatmul.mubr.f32.gmra.mrb[18].mxu0 %v931_v10 }
  0xfe   : > { %v5342_v55 = vpop.eup %5341  ;;  %v860_v59 = vmul.f32 %v5340_v18, %v764_v11 }
  0xff   : > { %v734_v14 = vsub.f32 %v670_v24, %v702_v23  ;;  %v735_v16 = vsub.f32 %v671_v30, %v703_v13  ;;  %v861_v37 = vmul.f32 %v5342_v55, %v765_v43 }
 0x100   : > { %v505_v31 = vpop.xlane.xlu0 %504  ;;  %v507_v49 = vpop.xlane.xlu1 %506  ;;  %v896_v39 = vmul.f32 %v6115_v6, %v860_v59 }
 0x101   : > { %v800_v41 = vadd.f32 1e-05, %v734_v14  ;;  %v801_v44 = vadd.f32 1e-05, %v735_v16  ;;  %v6326_v0 = vmul.f32 0.03846154, %v505_v31  ;;  %v897_v17 = vmul.f32 %v6115_v6, %v861_v37 }
 0x102   : > { %v6329_v62 = vmul.f32 0.03846154, %v507_v49  ;;  %v932_v48 = vadd.f32 %v6134_v28, %v896_v39  ;;  %v5628_v16 = vld [vmem:[%s5769_s25 + $0xc0] sm:$0xff] }
 0x103   : > { %5347 = vrsqrt.f32 %v800_v41  ;;  %v933_v36 = vadd.f32 %v6134_v28, %v897_v17  ;;  %v704_v51 = vmul.f32 %v6326_v0, %v6326_v0  ;;  %v770_v37 = vsub.f32 %v5628_v16, %v6326_v0 }
 0x104   : > { %5349 = vrsqrt.f32 %v801_v44  ;;  %v705_v47 = vmul.f32 %v6329_v62, %v6329_v62  ;;  %v633_v9 = vpop.xlane.xlu0 %632  ;;  %v635_v46 = vpop.xlane.xlu1 %634  ;;  %4471 = vmatprep.mubr.f32.mxu0 %v932_v48  ;;  %v5629_v44 = vld [vmem:[%s5769_s25 + $0xc8] sm:$0xff] }
 0x105   : > { %v5344_v20 = vpop.eup %5343  ;;  %v672_v54 = vmul.f32 0.03846154, %v633_v9  ;;  %v673_v57 = vmul.f32 0.03846154, %v635_v46  ;;  %4472 = vmatmul.mubr.f32.gmra.mrb[20].mxu0 %v933_v36  ;;  %v771_v17 = vsub.f32 %v5629_v44, %v6329_v62 }
 0x106   : > { %v5346_v52 = vpop.eup %5345  ;;  %v862_v58 = vmul.f32 %v5344_v20, %v766_v12 }
 0x107   : > { %v736_v19 = vsub.f32 %v672_v54, %v704_v51  ;;  %v737_v50 = vsub.f32 %v673_v57, %v705_v47  ;;  %v863_v61 = vmul.f32 %v5346_v52, %v767_v3 }
 0x108   : > { %v509_v1 = vpop.xlane.xlu0 %508  ;;  %v511_v27 = vpop.xlane.xlu1 %510  ;;  %v898_v63 = vmul.f32 %v6115_v6, %v862_v58 }
 0x109   : > { %v802_v4 = vadd.f32 1e-05, %v736_v19  ;;  %v803_v32 = vadd.f32 1e-05, %v737_v50  ;;  %v6342_v15 = vmul.f32 0.03846154, %v509_v1  ;;  %v899_v21 = vmul.f32 %v6115_v6, %v863_v61 }
 0x10a   : > { %v6345_v35 = vmul.f32 0.03846154, %v511_v27  ;;  %v934_v33 = vadd.f32 %v6134_v28, %v898_v63  ;;  %v5630_v1 = vld [vmem:[%s5769_s25 + $0xd0] sm:$0xff] }
 0x10b   : > { %5351 = vrsqrt.f32 %v802_v4  ;;  %v935_v5 = vadd.f32 %v6134_v28, %v899_v21  ;;  %v706_v7 = vmul.f32 %v6342_v15, %v6342_v15  ;;  %v772_v27 = vsub.f32 %v5630_v1, %v6342_v15 }
 0x10c   : > { %5353 = vrsqrt.f32 %v803_v32  ;;  %v707_v34 = vmul.f32 %v6345_v35, %v6345_v35  ;;  %v637_v8 = vpop.xlane.xlu0 %636  ;;  %v639_v40 = vpop.xlane.xlu1 %638  ;;  %4474 = vmatprep.mubr.f32.mxu0 %v934_v33  ;;  %v5631_v33 = vld [vmem:[%s5769_s25 + $0xd8] sm:$0xff] }
 0x10d   : > { %v5348_v38 = vpop.eup %5347  ;;  %v674_v42 = vmul.f32 0.03846154, %v637_v8  ;;  %v675_v10 = vmul.f32 0.03846154, %v639_v40  ;;  %4475 = vmatmul.mubr.f32.gmra.mrb[22].mxu0 %v935_v5  ;;  %v773_v5 = vsub.f32 %v5631_v33, %v6345_v35 }
 0x10e   : > { %v5350_v11 = vpop.eup %5349  ;;  %v864_v26 = vmul.f32 %v5348_v38, %v768_v22 }
 0x10f   : > { %v738_v53 = vsub.f32 %v674_v42, %v706_v7  ;;  %v739_v13 = vsub.f32 %v675_v10, %v707_v34  ;;  %v865_v45 = vmul.f32 %v5350_v11, %v769_v29 }
 0x110   : > { %v513_v60 = vpop.xlane.xlu0 %512  ;;  %v515_v18 = vpop.xlane.xlu1 %514  ;;  %v900_v43 = vmul.f32 %v6115_v6, %v864_v26 }
 0x111   : > { %v804_v23 = vadd.f32 1e-05, %v738_v53  ;;  %v805_v24 = vadd.f32 1e-05, %v739_v13  ;;  %v6358_v25 = vmul.f32 0.03846154, %v513_v60  ;;  %v901_v30 = vmul.f32 %v6115_v6, %v865_v45 }
 0x112   : > { %v6361_v55 = vmul.f32 0.03846154, %v515_v18  ;;  %v936_v59 = vadd.f32 %v6134_v28, %v900_v43  ;;  %v5632_v53 = vld [vmem:[%s5769_s25 + $0xe0] sm:$0xff]  ;;  %v5633_v60 = vld [vmem:[%s5769_s25 + $0xe8] sm:$0xff] }
 0x113   : > { %5355 = vrsqrt.f32 %v804_v23  ;;  %v937_v14 = vadd.f32 %v6134_v28, %v901_v30  ;;  %v708_v48 = vmul.f32 %v6358_v25, %v6358_v25  ;;  %v774_v13 = vsub.f32 %v5632_v53, %v6358_v25  ;;  %v5634_v25 = vld [vmem:[%s5769_s25 + $0xf0] sm:$0xff] }
 0x114   : > { %5357 = vrsqrt.f32 %v805_v24  ;;  %v709_v31 = vmul.f32 %v6361_v55, %v6361_v55  ;;  %v641_v49 = vpop.xlane.xlu0 %640  ;;  %v643_v39 = vpop.xlane.xlu1 %642  ;;  %4477 = vmatprep.mubr.f32.mxu0 %v936_v59  ;;  %v775_v18 = vsub.f32 %v5633_v60, %v6361_v55 }
 0x115   : > { %v5352_v41 = vpop.eup %5351  ;;  %v676_v36 = vmul.f32 0.03846154, %v641_v49  ;;  %v677_v12 = vmul.f32 0.03846154, %v643_v39  ;;  %4478 = vmatmul.mubr.f32.gmra.mrb[24].mxu0 %v937_v14  ;;  %v5635_v49 = vld [vmem:[%s5769_s25 + $0xf8] sm:$0xff] }
 0x116   : > { %v5354_v47 = vpop.eup %5353  ;;  %v866_v0 = vmul.f32 %v5352_v41, %v770_v37 }
 0x117   : > { %v740_v9 = vsub.f32 %v676_v36, %v708_v48  ;;  %v741_v46 = vsub.f32 %v677_v12, %v709_v31  ;;  %v867_v20 = vmul.f32 %v5354_v47, %v771_v17 }
 0x118   : > { %v517_v3 = vpop.xlane.xlu0 %516  ;;  %v519_v51 = vpop.xlane.xlu1 %518  ;;  %v902_v54 = vmul.f32 %v6115_v6, %v866_v0 }
 0x119   : > { %v806_v57 = vadd.f32 1e-05, %v740_v9  ;;  %v807_v52 = vadd.f32 1e-05, %v741_v46  ;;  %v550_v62 = vmul.f32 0.03846154, %v517_v3  ;;  %v903_v58 = vmul.f32 %v6115_v6, %v867_v20 }
 0x11a   : > { %v551_v19 = vmul.f32 0.03846154, %v519_v51  ;;  %v938_v50 = vadd.f32 %v6134_v28, %v902_v54  ;;  %v1640_v46 = vld [vmem:[%s8255_s1 + $0x180] sm:$0xff]  ;;  %v1641_v20 = vld [vmem:[%s8255_s1 + $0x188] sm:$0xff] }
 0x11b   : > { %5359 = vrsqrt.f32 %v806_v57  ;;  %v939_v61 = vadd.f32 %v6134_v28, %v903_v58  ;;  %v710_v22 = vmul.f32 %v550_v62, %v550_v62  ;;  %v776_v37 = vsub.f32 %v5634_v25, %v550_v62  ;;  %v1644_v54 = vld [vmem:[%s8255_s1 + $0x1a0] sm:$0xff]  ;;  %v1645_v57 = vld [vmem:[%s8255_s1 + $0x1a8] sm:$0xff]  ;;  %v1646_v62 = vld [vmem:[%s8255_s1 + $0x1b0] sm:$0xff] }
 0x11c   : > { %5361 = vrsqrt.f32 %v807_v52  ;;  %v711_v63 = vmul.f32 %v551_v19, %v551_v19  ;;  %v645_v4 = vpop.xlane.xlu0 %644  ;;  %v647_v32 = vpop.xlane.xlu1 %646  ;;  %4480 = vmatprep.mubr.f32.mxu0 %v938_v50  ;;  %v777_v39 = vsub.f32 %v5635_v49, %v551_v19  ;;  %v4812_v3 = vpack.c.bf16 %v1641_v20, %v1640_v46  ;;  %v1647_v58 = vld [vmem:[%s8255_s1 + $0x1b8] sm:$0xff]  ;;  %v1648_v50 = vld [vmem:[%s8255_s1 + $0x1c0] sm:$0xff] }
 0x11d   : > { %v5356_v21 = vpop.eup %5355  ;;  %v678_v34 = vmul.f32 0.03846154, %v645_v4  ;;  %v679_v8 = vmul.f32 0.03846154, %v647_v32  ;;  %4481 = vmatmul.mubr.f32.gmra.mrb[26].mxu0 %v939_v61  ;;  %v4820_v52 = vpack.c.bf16 %v1645_v57, %v1644_v54  ;;  %v4824_v19 = vpack.c.bf16 %v1647_v58, %v1646_v62  ;;  %v1649_v61 = vld [vmem:[%s8255_s1 + $0x1c8] sm:$0xff]  ;;  %v1652_v32 = vld [vmem:[%s8255_s1 + $0x1e0] sm:$0xff] }
 0x11e   : > { %v5358_v40 = vpop.eup %5357  ;;  %v868_v38 = vmul.f32 %v5356_v21, %v772_v27  ;;  %4813 = vmatprep.subr.bf16.mxu1 %v4812_v3  ;;  %v4828_v1 = vpack.c.bf16 %v1649_v61, %v1648_v50  ;;  %v1650_v27 = vld [vmem:[%s8255_s1 + $0x1d0] sm:$0xff]  ;;  %v1653_v21 = vld [vmem:[%s8255_s1 + $0x1e8] sm:$0xff] }
 0x11f   : > { %v742_v56 = vsub.f32 %v678_v34, %v710_v22  ;;  %v743_v29 = vsub.f32 %v679_v8, %v711_v63  ;;  %v869_v15 = vmul.f32 %v5358_v40, %v773_v5  ;;  %v1651_v63 = vld [vmem:[%s8255_s1 + $0x1d8] sm:$0xff]  ;;  %v4836_v33 = vpack.c.bf16 %v1653_v21, %v1652_v32  ;;  %v1654_v5 = vld [vmem:[%s8255_s1 + $0x1f0] sm:$0xff]  ;;  %v6451_v8 = vld [vmem:[%s8256_s2 + $0x2] ss:$0 sm:$0xff] }
 0x120   : > { %v904_v7 = vmul.f32 %v6115_v6, %v868_v38  ;;  %v4832_v4 = vpack.c.bf16 %v1651_v63, %v1650_v27  ;;  %v1655_v22 = vld [vmem:[%s8255_s1 + $0x1f8] sm:$0xff] }
 0x121   : > { %v808_v42 = vadd.f32 1e-05, %v742_v56  ;;  %v809_v10 = vadd.f32 1e-05, %v743_v29  ;;  %v905_v11 = vmul.f32 %v6115_v6, %v869_v15  ;;  %v4840_v34 = vpack.c.bf16 %v1655_v22, %v1654_v5 }
 0x122   : > { %v940_v26 = vadd.f32 %v6134_v28, %v904_v7 }
 0x123   : > { %5363 = vrsqrt.f32 %v808_v42  ;;  %v941_v35 = vadd.f32 %v6134_v28, %v905_v11 }
 0x124   : > { %5365 = vrsqrt.f32 %v809_v10  ;;  %4483 = vmatprep.mubr.f32.mxu0 %v940_v26 }
 0x125   : > { %v5360_v45 = vpop.eup %5359  ;;  %4484 = vmatmul.mubr.f32.gmra.mrb[28].mxu0 %v941_v35 }
 0x126   : > { %v5362_v43 = vpop.eup %5361  ;;  %v870_v23 = vmul.f32 %v5360_v45, %v774_v13 }
 0x127   : > { %v871_v24 = vmul.f32 %v5362_v43, %v775_v18 }
 0x128   : > { %v906_v30 = vmul.f32 %v6115_v6, %v870_v23 }
 0x129   : > { %v907_v59 = vmul.f32 %v6115_v6, %v871_v24 }
 0x12a   : > { %v942_v14 = vadd.f32 %v6134_v28, %v906_v30 }
 0x12b   : > { %v943_v16 = vadd.f32 %v6134_v28, %v907_v59 }
 0x12c   : > { %4486 = vmatprep.mubr.f32.mxu0 %v942_v14 }
 0x12d   : > { %v5364_v31 = vpop.eup %5363  ;;  %4487 = vmatmul.mubr.f32.gmra.mrb[30].mxu0 %v943_v16 }
 0x12e   : > { %v5366_v55 = vpop.eup %5365  ;;  %v872_v41 = vmul.f32 %v5364_v31, %v776_v37 }
 0x12f   : > { %v873_v44 = vmul.f32 %v5366_v55, %v777_v39 }
 0x130   : > { %v908_v17 = vmul.f32 %v6115_v6, %v872_v41 }
 0x131   : > { %v909_v48 = vmul.f32 %v6115_v6, %v873_v44  ;;  %v1642_v6 = vld [vmem:[%s8255_s1 + $0x190] sm:$0xff] }
 0x132   : > { %v944_v36 = vadd.f32 %v6134_v28, %v908_v17 }
 0x133   : > { %v945_v12 = vadd.f32 %v6134_v28, %v909_v48  ;;  %v323_v47 = vpop.f32.mrb[0].mxu0  ;;  %v1643_v28 = vld [vmem:[%s8255_s1 + $0x198] sm:$0xff] }
 0x134   : > { %4489 = vmatprep.mubr.f32.mxu0 %v944_v36  ;;  %v327_v0 = vmax.f32 %v323_v47, 0.0  ;;  %v4376_v9 = vpop.f32.mrb[1].mxu0  ;;  %v4816_v51 = vpack.c.bf16 %v1643_v28, %v1642_v6 }
 0x135   : > { %4490 = vmatmul.mubr.f32.gmra.mrb[32].mxu0 %v945_v12 }
 0x136   : > { %4410 = vmatmul.mubr.f32.vlgmr.msra.gmra.mrb[0].mxu1 %v327_v0 }
 0x137   : > { %4815 = vmatpush3.bf16.msra.mxu1 %v4812_v3 }
 0x138   : > { %4817 = vmatprep.subr.bf16.mxu1 %v4816_v51 }
 0x13b   : > { %4819 = vmatpush3.bf16.msra.mxu1 %v4816_v51 }
 0x13c   : > { %4821 = vmatprep.subr.bf16.mxu1 %v4820_v52 }
 0x13f   : > { %4823 = vmatpush3.bf16.msra.mxu1 %v4820_v52 }
 0x140   : > { %4825 = vmatprep.subr.bf16.mxu1 %v4824_v19 }
 0x143   : > { %4827 = vmatpush3.bf16.msra.mxu1 %v4824_v19 }
 0x144   : > { %4829 = vmatprep.subr.bf16.mxu1 %v4828_v1 }
 0x147   : > { %4831 = vmatpush3.bf16.msra.mxu1 %v4828_v1 }
 0x148   : > { %4833 = vmatprep.subr.bf16.mxu1 %v4832_v4 }
 0x14b   : > { %4835 = vmatpush3.bf16.msra.mxu1 %v4832_v4 }
 0x14c   : > { %4837 = vmatprep.subr.bf16.mxu1 %v4836_v33 }
 0x14f   : > { %4839 = vmatpush3.bf16.msra.mxu1 %v4836_v33 }
 0x150   : > { %4841 = vmatprep.subr.bf16.mxu1 %v4840_v34 }
 0x153   : > { %4843 = vmatpush3.bf16.msra.mxu1 %v4840_v34 }
 0x154   : > { %5100 = vmatprep.subr.bf16.mxu1 %v8258_v2 }
 0x193   : > { %v4446_v40 = vpop.f32.mrb[2].mxu0 }
 0x194   : > { %v1039_v38 = vadd.f32 %v4446_v40, %v6451_v8  ;;  %v1033_v56 = vpop.f32.mrb[3].mxu0 }
 0x195   : > { %v1034_v29 = vadd.f32 %v6451_v8, %v1033_v56 }
 0x196   : > { %v4047_v15 = vmul.f32 -1.442695, %v1039_v38 }
 0x197   : > { %v4046_v7 = vmul.f32 -1.442695, %v1034_v29 }
 0x198   : > { %5367 = vpow2.f32 %v4047_v15  ;;  %v4449_v42 = vpop.f32.mrb[4].mxu0 }
 0x199   : > { %5369 = vpow2.f32 %v4046_v7  ;;  %v1049_v10 = vadd.f32 %v4449_v42, %v6451_v8  ;;  %v1043_v11 = vpop.f32.mrb[5].mxu0 }
 0x19a   : > { %v1044_v26 = vadd.f32 %v6451_v8, %v1043_v11 }
 0x19b   : > { %v4049_v35 = vmul.f32 -1.442695, %v1049_v10 }
 0x19c   : > { %v4048_v53 = vmul.f32 -1.442695, %v1044_v26 }
 0x19d   : > { %5371 = vpow2.f32 %v4049_v35 }
 0x19e   : > { %5373 = vpow2.f32 %v4048_v53 }
 0x1a0   : > { %v4452_v13 = vpop.f32.mrb[6].mxu0 }
 0x1a1   : > { %v6458_v45 = vadd.f32 %v4452_v13, %v6451_v8  ;;  %v1053_v60 = vpop.f32.mrb[7].mxu0 }
 0x1a2   : > { %v5368_v18 = vpop.eup %5367  ;;  %v6461_v43 = vadd.f32 %v6451_v8, %v1053_v60 }
 0x1a3   : > { %v5370_v23 = vpop.eup %5369  ;;  %v1289_v24 = vadd.f32 1.0, %v5368_v18  ;;  %v4051_v30 = vmul.f32 -1.442695, %v6458_v45 }
 0x1a4   : > { %v1288_v59 = vadd.f32 1.0, %v5370_v23  ;;  %v4050_v14 = vmul.f32 -1.442695, %v6461_v43 }
 0x1a5   : > { %5375 = vrcp.f32 %v1289_v24 }
 0x1a6   : > { %5377 = vrcp.f32 %v1288_v59 }
 0x1a7   : > { %v5372_v16 = vpop.eup %5371  ;;  %5379 = vpow2.f32 %v4051_v30 }
 0x1a8   : > { %v5374_v25 = vpop.eup %5373  ;;  %v1291_v37 = vadd.f32 1.0, %v5372_v16  ;;  %5381 = vpow2.f32 %v4050_v14  ;;  %v4455_v31 = vpop.f32.mrb[8].mxu0 }
 0x1a9   : > { %v1290_v49 = vadd.f32 1.0, %v5374_v25  ;;  %v6466_v39 = vadd.f32 %v4455_v31, %v6451_v8  ;;  %v1063_v55 = vpop.f32.mrb[9].mxu0 }
 0x1aa   : > { %5383 = vrcp.f32 %v1291_v37  ;;  %v6469_v41 = vadd.f32 %v6451_v8, %v1063_v55 }
 0x1ab   : > { %5385 = vrcp.f32 %v1290_v49  ;;  %v4053_v44 = vmul.f32 -1.442695, %v6466_v39 }
 0x1ac   : > { %v4052_v17 = vmul.f32 -1.442695, %v6469_v41 }
 0x1ad   : > { %5387 = vpow2.f32 %v4053_v44 }
 0x1ae   : > { %5389 = vpow2.f32 %v4052_v17 }
 0x1af   : > { %v5376_v48 = vpop.eup %5375 }
 0x1b0   : > { %v5378_v36 = vpop.eup %5377  ;;  %v6473_v12 = vmul.f32 %v5376_v48, %v1039_v38  ;;  %v4458_v47 = vpop.f32.mrb[10].mxu0 }
 0x1b1   : > { %v5380_v0 = vpop.eup %5379  ;;  %v6475_v9 = vmul.f32 %v5378_v36, %v1034_v29  ;;  %v6478_v46 = vadd.f32 %v4458_v47, %v6451_v8  ;;  %v1073_v20 = vpop.f32.mrb[11].mxu0 }
 0x1b2   : > { %v5382_v3 = vpop.eup %5381  ;;  %v4079_v6 = vmul.f32 -1.442695, %v6473_v12  ;;  %v1293_v28 = vadd.f32 1.0, %v5380_v0  ;;  %v6486_v19 = vadd.f32 %v6451_v8, %v1073_v20 }
 0x1b3   : > { %v4078_v51 = vmul.f32 -1.442695, %v6475_v9  ;;  %v1292_v54 = vadd.f32 1.0, %v5382_v3  ;;  %v4055_v52 = vmul.f32 -1.442695, %v6478_v46 }
 0x1b4   : > { %v5384_v57 = vpop.eup %5383  ;;  %5391 = vpow2.f32 %v4079_v6  ;;  %v4054_v33 = vmul.f32 -1.442695, %v6486_v19 }
 0x1b5   : > { %v5386_v62 = vpop.eup %5385  ;;  %5393 = vpow2.f32 %v4078_v51  ;;  %v6483_v58 = vmul.f32 %v5384_v57, %v1049_v10  ;;  %v1918_v51 = vld [vmem:[%s8255_s1 + $0x200] sm:$0xff]  ;;  %v1920_v57 = vld [vmem:[%s8255_s1 + $0x210] sm:$0xff] }
 0x1b6   : > { %v6488_v50 = vmul.f32 %v5386_v62, %v1044_v26  ;;  %5395 = vrcp.f32 %v1293_v28 }
 0x1b7   : > { %v5388_v61 = vpop.eup %5387  ;;  %v4081_v1 = vmul.f32 -1.442695, %v6483_v58  ;;  %5397 = vrcp.f32 %v1292_v54  ;;  %v1919_v54 = vld [vmem:[%s8255_s1 + $0x208] sm:$0xff] }
 0x1b8   : > { %v5390_v27 = vpop.eup %5389  ;;  %v4080_v63 = vmul.f32 -1.442695, %v6488_v50  ;;  %v1295_v4 = vadd.f32 1.0, %v5388_v61  ;;  %5399 = vpow2.f32 %v4055_v52  ;;  %v4461_v32 = vpop.f32.mrb[12].mxu0  ;;  %v4844_v61 = vpack.c.bf16 %v1919_v54, %v1918_v51 }
 0x1b9   : > { %5401 = vpow2.f32 %v4081_v1  ;;  %v1294_v21 = vadd.f32 1.0, %v5390_v27  ;;  %v6494_v5 = vadd.f32 %v4461_v32, %v6451_v8  ;;  %v1083_v22 = vpop.f32.mrb[13].mxu0  ;;  %v1921_v1 = vld [vmem:[%s8255_s1 + $0x218] sm:$0xff]  ;;  %v1922_v32 = vld [vmem:[%s8255_s1 + $0x220] sm:$0xff] }
 0x1ba   : > { %5403 = vpow2.f32 %v4080_v63  ;;  %v6497_v34 = vadd.f32 %v6451_v8, %v1083_v22  ;;  %4845 = vmatprep.subr.bf16.mxu0 %v4844_v61 }
 0x1bb   : > { %5405 = vrcp.f32 %v1295_v4  ;;  %v4057_v40 = vmul.f32 -1.442695, %v6494_v5  ;;  %v4848_v4 = vpack.c.bf16 %v1921_v1, %v1920_v57  ;;  %4847 = vmatpush3.bf16.msra.mxu0 %v4844_v61 }
 0x1bc   : > { %5407 = vrcp.f32 %v1294_v21  ;;  %v4056_v38 = vmul.f32 -1.442695, %v6497_v34  ;;  %v1923_v21 = vld [vmem:[%s8255_s1 + $0x228] sm:$0xff] }
 0x1bd   : > { %5409 = vpow2.f32 %v4054_v33  ;;  %4849 = vmatprep.subr.bf16.mxu0 %v4848_v4 }
 0x1be   : > { %v5392_v56 = vpop.eup %5391  ;;  %5411 = vpow2.f32 %v4057_v40 }
 0x1bf   : > { %v5394_v29 = vpop.eup %5393  ;;  %v1513_v15 = vadd.f32 1.0, %v5392_v56  ;;  %5413 = vpow2.f32 %v4056_v38  ;;  %4851 = vmatpush3.bf16.msra.mxu0 %v4848_v4 }
 0x1c0   : > { %v5396_v7 = vpop.eup %5395  ;;  %v1512_v42 = vadd.f32 1.0, %v5394_v29  ;;  %v4464_v10 = vpop.f32.mrb[14].mxu0 }
 0x1c1   : > { %v5398_v11 = vpop.eup %5397  ;;  %5415 = vrcp.f32 %v1513_v15  ;;  %v6502_v26 = vmul.f32 %v5396_v7, %v6458_v45  ;;  %v1093_v35 = vpop.f32.mrb[15].mxu0  ;;  %v6516_v31 = vadd.f32 %v4464_v10, %v6451_v8  ;;  %v4852_v15 = vpack.c.bf16 %v1923_v21, %v1922_v32 }
 0x1c2   : > { %v5400_v53 = vpop.eup %5399  ;;  %5417 = vrcp.f32 %v1512_v42  ;;  %v6505_v13 = vmul.f32 %v5398_v11, %v6461_v43  ;;  %v6520_v17 = vadd.f32 %v6451_v8, %v1093_v35  ;;  %v1924_v11 = vld [vmem:[%s8255_s1 + $0x230] sm:$0xff]  ;;  %v1925_v35 = vld [vmem:[%s8255_s1 + $0x238] sm:$0xff] }
 0x1c3   : > { %v5402_v60 = vpop.eup %5401  ;;  %v4083_v18 = vmul.f32 -1.442695, %v6502_v26  ;;  %v1297_v16 = vadd.f32 1.0, %v5400_v53  ;;  %v4059_v6 = vmul.f32 -1.442695, %v6516_v31  ;;  %4853 = vmatprep.subr.bf16.mxu0 %v4852_v15 }
 0x1c4   : > { %v5404_v23 = vpop.eup %5403  ;;  %v1515_v24 = vadd.f32 1.0, %v5402_v60  ;;  %v4082_v30 = vmul.f32 -1.442695, %v6505_v13  ;;  %v4058_v62 = vmul.f32 -1.442695, %v6520_v17  ;;  %4855 = vmatpush3.bf16.msra.mxu0 %v4852_v15 }
 0x1c5   : > { %v5406_v59 = vpop.eup %5405  ;;  %v1514_v14 = vadd.f32 1.0, %v5404_v23  ;;  %5419 = vpow2.f32 %v4083_v18 }
 0x1c6   : > { %v5408_v25 = vpop.eup %5407  ;;  %5421 = vrcp.f32 %v1515_v24  ;;  %v6510_v45 = vmul.f32 %v5406_v59, %v6466_v39 }
 0x1c7   : > { %v5410_v37 = vpop.eup %5409  ;;  %5423 = vrcp.f32 %v1514_v14  ;;  %v6513_v43 = vmul.f32 %v5408_v25, %v6469_v41  ;;  %v4856_v25 = vpack.c.bf16 %v1925_v35, %v1924_v11 }
 0x1c8   : > { %v5412_v49 = vpop.eup %5411  ;;  %5425 = vpow2.f32 %v4082_v30  ;;  %v4085_v55 = vmul.f32 -1.442695, %v6510_v45  ;;  %v1296_v44 = vadd.f32 1.0, %v5410_v37  ;;  %v4467_v48 = vpop.f32.mrb[16].mxu0 }
 0x1c9   : > { %v5414_v36 = vpop.eup %5413  ;;  %v4084_v39 = vmul.f32 -1.442695, %v6513_v43  ;;  %5427 = vrcp.f32 %v1297_v16  ;;  %v1299_v47 = vadd.f32 1.0, %v5412_v49  ;;  %v6524_v41 = vadd.f32 %v4467_v48, %v6451_v8  ;;  %v1103_v0 = vpop.f32.mrb[17].mxu0  ;;  %4857 = vmatprep.subr.bf16.mxu0 %v4856_v25 }
 0x1ca   : > { %5429 = vpow2.f32 %v4085_v55  ;;  %v1298_v20 = vadd.f32 1.0, %v5414_v36  ;;  %v6528_v28 = vadd.f32 %v6451_v8, %v1103_v0  ;;  %v1926_v55 = vld [vmem:[%s8255_s1 + $0x240] sm:$0xff]  ;;  %4859 = vmatpush3.bf16.msra.mxu0 %v4856_v25 }
 0x1cb   : > { %v5416_v3 = vpop.eup %5415  ;;  %5431 = vpow2.f32 %v4084_v39  ;;  %v4061_v27 = vmul.f32 -1.442695, %v6524_v41 }
 0x1cc   : > { %v5418_v52 = vpop.eup %5417  ;;  %5433 = vrcp.f32 %v1296_v44  ;;  %v1609_v33 = vmul.f32 %v5416_v3, %v6473_v12  ;;  %v4060_v40 = vmul.f32 -1.442695, %v6528_v28  ;;  %v1927_v44 = vld [vmem:[%s8255_s1 + $0x248] sm:$0xff] }
 0x1cd   : > { %5435 = vrcp.f32 %v1299_v47  ;;  %v1608_v63 = vmul.f32 %v5418_v52, %v6475_v9  ;;  %v4860_v51 = vpack.c.bf16 %v1927_v44, %v1926_v55 }
 0x1ce   : > { %5437 = vrcp.f32 %v1298_v20 }
 0x1cf   : > { %v5420_v22 = vpop.eup %5419  ;;  %5439 = vpow2.f32 %v4059_v6  ;;  %4524 = vmatprep.mubr.f32.mxu1 %v1608_v63  ;;  %4861 = vmatprep.subr.bf16.mxu0 %v4860_v51 }
 0x1d0   : > { %v5422_v38 = vpop.eup %5421  ;;  %v1517_v56 = vadd.f32 1.0, %v5420_v22  ;;  %5441 = vpow2.f32 %v4058_v62  ;;  %v4470_v29 = vpop.f32.mrb[18].mxu0  ;;  %4525 = vmatmul.mubr.f32.vlgmr.msra.gmra.mrb[2].mxu1 %v1609_v33  ;;  %4863 = vmatpush3.bf16.msra.mxu0 %v4860_v51 }
 0x1d1   : > { %v5424_v7 = vpop.eup %5423  ;;  %5443 = vpow2.f32 %v4061_v27  ;;  %v6554_v42 = vadd.f32 %v4470_v29, %v6451_v8  ;;  %v1113_v10 = vpop.f32.mrb[19].mxu0  ;;  %v1611_v59 = vmul.f32 %v5422_v38, %v6483_v58  ;;  %v1930_v38 = vld [vmem:[%s8255_s1 + $0x260] sm:$0xff] }
 0x1d2   : > { %v5426_v53 = vpop.eup %5425  ;;  %v6563_v60 = vadd.f32 %v6451_v8, %v1113_v10  ;;  %v1610_v18 = vmul.f32 %v5424_v7, %v6488_v50  ;;  %5445 = vpow2.f32 %v4060_v40 }
 0x1d3   : > { %v5428_v23 = vpop.eup %5427  ;;  %v1516_v24 = vadd.f32 1.0, %v5426_v53  ;;  %v4063_v30 = vmul.f32 -1.442695, %v6554_v42  ;;  %5447 = vrcp.f32 %v1517_v56  ;;  %v1931_v56 = vld [vmem:[%s8255_s1 + $0x268] sm:$0xff] }
 0x1d4   : > { %v5430_v14 = vpop.eup %5429  ;;  %v6569_v16 = vmul.f32 %v5428_v23, %v6478_v46  ;;  %4527 = vmatprep.mubr.f32.mxu1 %v1610_v18  ;;  %v4062_v39 = vmul.f32 -1.442695, %v6563_v60  ;;  %v4868_v23 = vpack.c.bf16 %v1931_v56, %v1930_v38 }
 0x1d5   : > { %v5432_v37 = vpop.eup %5431  ;;  %5449 = vrcp.f32 %v1516_v24  ;;  %v1519_v49 = vadd.f32 1.0, %v5430_v14  ;;  %4528 = vmatmul.mubr.f32.gmra.mrb[4].mxu1 %v1611_v59 }
 0x1d6   : > { %v5434_v48 = vpop.eup %5433  ;;  %v1518_v36 = vadd.f32 1.0, %v5432_v37  ;;  %v4087_v46 = vmul.f32 -1.442695, %v6569_v16  ;;  %5451 = vpow2.f32 %v4063_v30 }
 0x1d7   : > { %v5436_v47 = vpop.eup %5435  ;;  %5453 = vrcp.f32 %v1519_v49  ;;  %v6580_v0 = vmul.f32 %v5434_v48, %v6486_v19  ;;  %v1928_v19 = vld [vmem:[%s8255_s1 + $0x250] sm:$0xff] }
 0x1d8   : > { %v5438_v20 = vpop.eup %5437  ;;  %5455 = vrcp.f32 %v1518_v36  ;;  %v6583_v3 = vmul.f32 %v5436_v47, %v6494_v5  ;;  %v4473_v6 = vpop.f32.mrb[20].mxu0  ;;  %v1929_v5 = vld [vmem:[%s8255_s1 + $0x258] sm:$0xff] }
 0x1d9   : > { %v5440_v54 = vpop.eup %5439  ;;  %5457 = vpow2.f32 %v4087_v46  ;;  %v4086_v57 = vmul.f32 -1.442695, %v6580_v0  ;;  %v6587_v52 = vmul.f32 %v5438_v20, %v6497_v34  ;;  %v1123_v62 = vpop.f32.mrb[21].mxu0  ;;  %v6597_v63 = vadd.f32 %v4473_v6, %v6451_v8 }
 0x1da   : > { %v5442_v61 = vpop.eup %5441  ;;  %v4089_v1 = vmul.f32 -1.442695, %v6583_v3  ;;  %v1301_v27 = vadd.f32 1.0, %v5440_v54  ;;  %5459 = vpow2.f32 %v4062_v39  ;;  %v6601_v33 = vadd.f32 %v6451_v8, %v1123_v62 }
 0x1db   : > { %v5444_v4 = vpop.eup %5443  ;;  %5461 = vpow2.f32 %v4086_v57  ;;  %v4088_v34 = vmul.f32 -1.442695, %v6587_v52  ;;  %v1300_v32 = vadd.f32 1.0, %v5442_v61  ;;  %v4864_v22 = vpack.c.bf16 %v1929_v5, %v1928_v19 }
 0x1dc   : > { %5463 = vpow2.f32 %v4089_v1  ;;  %v1303_v21 = vadd.f32 1.0, %v5444_v4  ;;  %v5446_v40 = vpop.eup %5445  ;;  %v4065_v7 = vmul.f32 -1.442695, %v6597_v63  ;;  %v4064_v35 = vmul.f32 -1.442695, %v6601_v33 }
 0x1dd   : > { %5465 = vpow2.f32 %v4088_v34  ;;  %v5448_v29 = vpop.eup %5447  ;;  %v1302_v15 = vadd.f32 1.0, %v5446_v40  ;;  %4865 = vmatprep.subr.bf16.mxu0 %v4864_v22 }
 0x1de   : > { %5467 = vrcp.f32 %v1301_v27  ;;  %v1613_v59 = vmul.f32 %v5448_v29, %v6502_v26  ;;  %4867 = vmatpush3.bf16.msra.mxu0 %v4864_v22 }
 0x1df   : > { %v5450_v10 = vpop.eup %5449  ;;  %5469 = vrcp.f32 %v1300_v32  ;;  %4869 = vmatprep.subr.bf16.mxu0 %v4868_v23 }
 0x1e0   : > { %v5452_v11 = vpop.eup %5451  ;;  %5471 = vrcp.f32 %v1303_v21  ;;  %v1612_v53 = vmul.f32 %v5450_v10, %v6505_v13  ;;  %v4476_v18 = vpop.f32.mrb[22].mxu0 }
 0x1e1   : > { %v5454_v24 = vpop.eup %5453  ;;  %5473 = vrcp.f32 %v1302_v15  ;;  %v1305_v30 = vadd.f32 1.0, %v5452_v11  ;;  %v6614_v14 = vadd.f32 %v4476_v18, %v6451_v8  ;;  %v1133_v25 = vpop.f32.mrb[23].mxu0 }
 0x1e2   : > { %v5456_v37 = vpop.eup %5455  ;;  %5475 = vpow2.f32 %v4065_v7  ;;  %4530 = vmatprep.mubr.f32.mxu1 %v1612_v53  ;;  %v6618_v44 = vadd.f32 %v6451_v8, %v1133_v25  ;;  %v1615_v20 = vmul.f32 %v5454_v24, %v6510_v45  ;;  %4871 = vmatpush3.bf16.msra.mxu0 %v4868_v23 }
 0x1e3   : > { %v5458_v49 = vpop.eup %5457  ;;  %5477 = vrcp.f32 %v1305_v30  ;;  %4531 = vmatmul.mubr.f32.gmra.mrb[6].mxu1 %v1613_v59  ;;  %v4067_v55 = vmul.f32 -1.442695, %v6614_v14  ;;  %v1614_v48 = vmul.f32 %v5456_v37, %v6513_v43 }
 0x1e4   : > { %v5460_v36 = vpop.eup %5459  ;;  %v1521_v46 = vadd.f32 1.0, %v5458_v49  ;;  %5479 = vpow2.f32 %v4064_v35  ;;  %v4066_v62 = vmul.f32 -1.442695, %v6618_v44 }
 0x1e5   : > { %v5462_v39 = vpop.eup %5461  ;;  %v1304_v47 = vadd.f32 1.0, %v5460_v36  ;;  %5481 = vpow2.f32 %v4067_v55  ;;  %4533 = vmatprep.mubr.f32.mxu1 %v1614_v48 }
 0x1e6   : > { %v5464_v6 = vpop.eup %5463  ;;  %5483 = vrcp.f32 %v1521_v46  ;;  %v1520_v51 = vadd.f32 1.0, %v5462_v39 }
 0x1e7   : > { %v5466_v54 = vpop.eup %5465  ;;  %v1523_v57 = vadd.f32 1.0, %v5464_v6  ;;  %5485 = vrcp.f32 %v1304_v47  ;;  %4534 = vmatmul.mubr.f32.gmra.mrb[8].mxu1 %v1615_v20 }
 0x1e8   : > { %v5468_v19 = vpop.eup %5467  ;;  %5487 = vrcp.f32 %v1520_v51  ;;  %v1522_v5 = vadd.f32 1.0, %v5466_v54  ;;  %v4479_v61 = vpop.f32.mrb[24].mxu0 }
 0x1e9   : > { %v5470_v1 = vpop.eup %5469  ;;  %5489 = vrcp.f32 %v1523_v57  ;;  %v6624_v27 = vmul.f32 %v5468_v19, %v6516_v31  ;;  %v1143_v4 = vpop.f32.mrb[25].mxu0 }
 0x1ea   : > { %v5472_v34 = vpop.eup %5471  ;;  %5491 = vrcp.f32 %v1522_v5  ;;  %v6627_v32 = vmul.f32 %v5470_v1, %v6520_v17  ;;  %v6639_v17 = vadd.f32 %v4479_v61, %v6451_v8 }
 0x1eb   : > { %v5474_v21 = vpop.eup %5473  ;;  %v4091_v22 = vmul.f32 -1.442695, %v6624_v27  ;;  %v6631_v40 = vmul.f32 %v5472_v34, %v6524_v41  ;;  %5493 = vpow2.f32 %v4066_v62 }
 0x1ec   : > { %v5476_v38 = vpop.eup %5475  ;;  %v4090_v56 = vmul.f32 -1.442695, %v6627_v32  ;;  %v6635_v29 = vmul.f32 %v5474_v21, %v6528_v28  ;;  %v6646_v28 = vadd.f32 %v6451_v8, %v1143_v4  ;;  %v4069_v25 = vmul.f32 -1.442695, %v6639_v17 }
 0x1ed   : > { %v5478_v31 = vpop.eup %5477  ;;  %5495 = vpow2.f32 %v4091_v22  ;;  %v4093_v15 = vmul.f32 -1.442695, %v6631_v40  ;;  %v1307_v7 = vadd.f32 1.0, %v5476_v38 }
 0x1ee   : > { %v5480_v10 = vpop.eup %5479  ;;  %5497 = vpow2.f32 %v4090_v56  ;;  %v4092_v41 = vmul.f32 -1.442695, %v6635_v29  ;;  %v6643_v11 = vmul.f32 %v5478_v31, %v6554_v42  ;;  %v4068_v36 = vmul.f32 -1.442695, %v6646_v28 }
 0x1ef   : > { %v5482_v35 = vpop.eup %5481  ;;  %5499 = vpow2.f32 %v4093_v15  ;;  %v1306_v53 = vadd.f32 1.0, %v5480_v10 }
 0x1f0   : > { %v5484_v18 = vpop.eup %5483  ;;  %5501 = vpow2.f32 %v4092_v41  ;;  %v4095_v23 = vmul.f32 -1.442695, %v6643_v11  ;;  %v1309_v24 = vadd.f32 1.0, %v5482_v35  ;;  %v4482_v30 = vpop.f32.mrb[26].mxu0 }
 0x1f1   : > { %v5486_v59 = vpop.eup %5485  ;;  %5503 = vrcp.f32 %v1307_v7  ;;  %v6651_v37 = vadd.f32 %v4482_v30, %v6451_v8  ;;  %v1153_v42 = vpop.f32.mrb[27].mxu0  ;;  %v1617_v20 = vmul.f32 %v5484_v18, %v6569_v16 }
 0x1f2   : > { %v5488_v49 = vpop.eup %5487  ;;  %5505 = vpow2.f32 %v4095_v23  ;;  %v6654_v55 = vmul.f32 %v5486_v59, %v6563_v60  ;;  %v6663_v57 = vadd.f32 %v6451_v8, %v1153_v42 }
 0x1f3   : > { %v5490_v48 = vpop.eup %5489  ;;  %5507 = vrcp.f32 %v1306_v53  ;;  %v1616_v46 = vmul.f32 %v5488_v49, %v6580_v0  ;;  %v4071_v51 = vmul.f32 -1.442695, %v6651_v37 }
 0x1f4   : > { %v5492_v39 = vpop.eup %5491  ;;  %v4094_v47 = vmul.f32 -1.442695, %v6654_v55  ;;  %5509 = vrcp.f32 %v1309_v24  ;;  %v1619_v61 = vmul.f32 %v5490_v48, %v6583_v3  ;;  %v4070_v31 = vmul.f32 -1.442695, %v6663_v57 }
 0x1f5   : > { %v5494_v6 = vpop.eup %5493  ;;  %5511 = vpow2.f32 %v4069_v25  ;;  %4536 = vmatprep.mubr.f32.mxu1 %v1616_v46  ;;  %v1618_v60 = vmul.f32 %v5492_v39, %v6587_v52 }
 0x1f6   : > { %5513 = vpow2.f32 %v4094_v47  ;;  %v1308_v54 = vadd.f32 1.0, %v5494_v6  ;;  %4537 = vmatmul.mubr.f32.gmra.mrb[10].mxu1 %v1617_v20 }
 0x1f7   : > { %v5496_v62 = vpop.eup %5495  ;;  %5515 = vpow2.f32 %v4068_v36  ;;  %4539 = vmatprep.mubr.f32.mxu1 %v1618_v60 }
 0x1f8   : > { %v5498_v19 = vpop.eup %5497  ;;  %v1525_v5 = vadd.f32 1.0, %v5496_v62  ;;  %5517 = vrcp.f32 %v1308_v54  ;;  %v4485_v1 = vpop.f32.mrb[28].mxu0 }
 0x1f9   : > { %v5500_v4 = vpop.eup %5499  ;;  %v1524_v34 = vadd.f32 1.0, %v5498_v19  ;;  %5519 = vpow2.f32 %v4071_v51  ;;  %v6667_v21 = vadd.f32 %v4485_v1, %v6451_v8  ;;  %v1163_v22 = vpop.f32.mrb[29].mxu0 }
 0x1fa   : > { %v5502_v38 = vpop.eup %5501  ;;  %5521 = vrcp.f32 %v1525_v5  ;;  %v1527_v56 = vadd.f32 1.0, %v5500_v4  ;;  %4540 = vmatmul.mubr.f32.gmra.mrb[12].mxu1 %v1619_v61  ;;  %v6683_v49 = vadd.f32 %v6451_v8, %v1163_v22 }
 0x1fb   : > { %v5504_v15 = vpop.eup %5503  ;;  %5523 = vrcp.f32 %v1524_v34  ;;  %v1526_v7 = vadd.f32 1.0, %v5502_v38  ;;  %v4073_v18 = vmul.f32 -1.442695, %v6667_v21 }
 0x1fc   : > { %v5506_v10 = vpop.eup %5505  ;;  %5525 = vrcp.f32 %v1527_v56  ;;  %v6671_v41 = vmul.f32 %v5504_v15, %v6597_v63  ;;  %v4072_v1 = vmul.f32 -1.442695, %v6683_v49 }
 0x1fd   : > { %v5508_v35 = vpop.eup %5507  ;;  %5527 = vrcp.f32 %v1526_v7  ;;  %v1529_v53 = vadd.f32 1.0, %v5506_v10 }
 0x1fe   : > { %v5510_v23 = vpop.eup %5509  ;;  %v4097_v24 = vmul.f32 -1.442695, %v6671_v41  ;;  %v6676_v30 = vmul.f32 %v5508_v35, %v6601_v33  ;;  %5529 = vpow2.f32 %v4070_v31 }
 0x1ff   : > { %v5512_v59 = vpop.eup %5511  ;;  %5531 = vrcp.f32 %v1529_v53  ;;  %v6679_v25 = vmul.f32 %v5510_v23, %v6614_v14 }
 0x200   : > { %v5514_v42 = vpop.eup %5513  ;;  %5533 = vpow2.f32 %v4097_v24  ;;  %v4096_v63 = vmul.f32 -1.442695, %v6676_v30  ;;  %v4488_v48 = vpop.f32.mrb[30].mxu0  ;;  %v1311_v33 = vadd.f32 1.0, %v5512_v59 }
 0x201   : > { %v5516_v36 = vpop.eup %5515  ;;  %v1528_v46 = vadd.f32 1.0, %v5514_v42  ;;  %v4099_v39 = vmul.f32 -1.442695, %v6679_v25  ;;  %5535 = vpow2.f32 %v4073_v18  ;;  %v1173_v47 = vpop.f32.mrb[31].mxu0  ;;  %v6687_v14 = vadd.f32 %v4488_v48, %v6451_v8 }
 0x202   : > { %v5518_v20 = vpop.eup %5517  ;;  %5537 = vpow2.f32 %v4096_v63  ;;  %v1310_v6 = vadd.f32 1.0, %v5516_v36  ;;  %v6693_v19 = vadd.f32 %v6451_v8, %v1173_v47 }
 0x203   : > { %v5520_v51 = vpop.eup %5519  ;;  %5539 = vrcp.f32 %v1528_v46  ;;  %v6690_v60 = vmul.f32 %v5518_v20, %v6618_v44  ;;  %v4075_v22 = vmul.f32 -1.442695, %v6687_v14 }
 0x204   : > { %v5522_v54 = vpop.eup %5521  ;;  %5541 = vpow2.f32 %v4099_v39  ;;  %v1313_v62 = vadd.f32 1.0, %v5520_v51  ;;  %v4074_v31 = vmul.f32 -1.442695, %v6693_v19 }
 0x205   : > { %v5524_v5 = vpop.eup %5523  ;;  %v4098_v61 = vmul.f32 -1.442695, %v6690_v60  ;;  %5543 = vrcp.f32 %v1311_v33  ;;  %v1621_v38 = vmul.f32 %v5522_v54, %v6624_v27 }
 0x206   : > { %v5526_v4 = vpop.eup %5525  ;;  %5545 = vrcp.f32 %v1310_v6  ;;  %v1620_v34 = vmul.f32 %v5524_v5, %v6627_v32 }
 0x207   : > { %v5528_v44 = vpop.eup %5527  ;;  %5547 = vpow2.f32 %v4098_v61  ;;  %v1623_v36 = vmul.f32 %v5526_v4, %v6631_v40 }
 0x208   : > { %v5530_v56 = vpop.eup %5529  ;;  %5549 = vrcp.f32 %v1313_v62  ;;  %4542 = vmatprep.mubr.f32.mxu1 %v1620_v34  ;;  %v1622_v15 = vmul.f32 %v5528_v44, %v6635_v29  ;;  %v4491_v7 = vpop.f32.mrb[32].mxu0 }
 0x209   : > { %v5532_v10 = vpop.eup %5531  ;;  %v1312_v35 = vadd.f32 1.0, %v5530_v56  ;;  %5551 = vpow2.f32 %v4072_v1  ;;  %4543 = vmatmul.mubr.f32.gmra.mrb[14].mxu1 %v1621_v38  ;;  %v6703_v53 = vadd.f32 %v4491_v7, %v6451_v8  ;;  %v1183_v18 = vpop.f32.mrb[33].mxu0 }
 0x20a   : > { %v6705_v23 = vpop.f32.mrb[0].mxu1  ;;  %v5534_v24 = vpop.eup %5533  ;;  %5553 = vpow2.f32 %v4075_v22  ;;  %4545 = vmatprep.mubr.f32.mxu1 %v1622_v15  ;;  %v6708_v59 = vadd.f32 %v6451_v8, %v1183_v18  ;;  %v1625_v5 = vmul.f32 %v5532_v10, %v6643_v11 }
 0x20b   : > { %v4411_v42 = vpop.f32.mrb[1].mxu1  ;;  %v5536_v63 = vpop.eup %5535  ;;  %v1531_v48 = vadd.f32 1.0, %v5534_v24  ;;  %5555 = vrcp.f32 %v1312_v35  ;;  %v4077_v33 = vmul.f32 -1.442695, %v6703_v53 }
 0x20c   : > { %v5538_v46 = vpop.eup %5537  ;;  %v1315_v39 = vadd.f32 1.0, %v5536_v63  ;;  %5557 = vpow2.f32 %v4074_v31  ;;  %v4076_v8 = vmul.f32 -1.442695, %v6708_v59 }
 0x20d   : > { %v5540_v47 = vpop.eup %5539  ;;  %5559 = vrcp.f32 %v1531_v48  ;;  %v1530_v20 = vadd.f32 1.0, %v5538_v46  ;;  %4546 = vmatmul.mubr.f32.gmra.mrb[16].mxu1 %v1623_v36 }
 0x20e   : > { %v5542_v6 = vpop.eup %5541  ;;  %5561 = vrcp.f32 %v1315_v39  ;;  %v1624_v51 = vmul.f32 %v5540_v47, %v6654_v55 }
 0x20f   : > { %v5544_v54 = vpop.eup %5543  ;;  %5563 = vrcp.f32 %v1530_v20  ;;  %v1533_v62 = vadd.f32 1.0, %v5542_v6 }
 0x210   : > { %v5546_v61 = vpop.eup %5545  ;;  %v6716_v1 = vmul.f32 %v5544_v54, %v6639_v17  ;;  %5565 = vpow2.f32 %v4077_v33  ;;  %4548 = vmatprep.mubr.f32.mxu1 %v1624_v51 }
 0x211   : > { %v5548_v4 = vpop.eup %5547  ;;  %v6719_v34 = vmul.f32 %v5546_v61, %v6646_v28  ;;  %4549 = vmatmul.mubr.f32.gmra.mrb[18].mxu1 %v1625_v5  ;;  %5567 = vpow2.f32 %v4076_v8 }
 0x212   : > { %v5550_v22 = vpop.eup %5549  ;;  %v1532_v44 = vadd.f32 1.0, %v5548_v4  ;;  %v4101_v38 = vmul.f32 -1.442695, %v6716_v1  ;;  %5569 = vrcp.f32 %v1533_v62 }
 0x213   : > { %v5552_v56 = vpop.eup %5551  ;;  %v4100_v31 = vmul.f32 -1.442695, %v6719_v34  ;;  %v6724_v15 = vmul.f32 %v5550_v22, %v6651_v37 }
 0x214   : > { %v5554_v17 = vpop.eup %5553  ;;  %5571 = vrcp.f32 %v1532_v44  ;;  %v1314_v7 = vadd.f32 1.0, %v5552_v56 }
 0x215   : > { %v5556_v10 = vpop.eup %5555  ;;  %5573 = vpow2.f32 %v4101_v38  ;;  %v4103_v28 = vmul.f32 -1.442695, %v6724_v15  ;;  %v1317_v35 = vadd.f32 1.0, %v5554_v17 }
 0x216   : > { %v5558_v18 = vpop.eup %5557  ;;  %5575 = vpow2.f32 %v4100_v31  ;;  %v6728_v24 = vmul.f32 %v5556_v10, %v6663_v57 }
 0x217   : > { %v5560_v42 = vpop.eup %5559  ;;  %5577 = vpow2.f32 %v4103_v28  ;;  %v1316_v63 = vadd.f32 1.0, %v5558_v18 }
 0x218   : > { %v5562_v48 = vpop.eup %5561  ;;  %v4102_v37 = vmul.f32 -1.442695, %v6728_v24  ;;  %5579 = vrcp.f32 %v1314_v7  ;;  %v1627_v57 = vmul.f32 %v5560_v42, %v6671_v41 }
 0x219   : > { %v5564_v36 = vpop.eup %5563  ;;  %v6732_v46 = vmul.f32 %v5562_v48, %v6667_v21  ;;  %5581 = vrcp.f32 %v1317_v35 }
 0x21a   : > { %v5566_v39 = vpop.eup %5565  ;;  %5583 = vpow2.f32 %v4102_v37  ;;  %v1626_v33 = vmul.f32 %v5564_v36, %v6676_v30 }
 0x21b   : > { %5585 = vrcp.f32 %v1316_v63  ;;  %v1319_v47 = vadd.f32 1.0, %v5566_v39  ;;  %v5568_v20 = vpop.eup %5567  ;;  %v4105_v8 = vmul.f32 -1.442695, %v6732_v46 }
 0x21c   : > { %4551 = vmatprep.mubr.f32.mxu1 %v1626_v33  ;;  %v5570_v6 = vpop.eup %5569  ;;  %v1318_v51 = vadd.f32 1.0, %v5568_v20 }
 0x21d   : > { %4552 = vmatmul.mubr.f32.gmra.mrb[20].mxu1 %v1627_v57  ;;  %5587 = vrcp.f32 %v1319_v47  ;;  %v1629_v4 = vmul.f32 %v5570_v6, %v6679_v25 }
 0x21e   : > { %v5572_v54 = vpop.eup %5571  ;;  %5589 = vrcp.f32 %v1318_v51 }
 0x21f   : > { %v5574_v21 = vpop.eup %5573  ;;  %v1628_v62 = vmul.f32 %v5572_v54, %v6690_v60  ;;  %5591 = vpow2.f32 %v4105_v8 }
 0x220   : > { %v5576_v5 = vpop.eup %5575  ;;  %v1535_v61 = vadd.f32 1.0, %v5574_v21 }
 0x221   : > { %v5578_v22 = vpop.eup %5577  ;;  %v1534_v44 = vadd.f32 1.0, %v5576_v5  ;;  %4554 = vmatprep.mubr.f32.mxu1 %v1628_v62 }
 0x222   : > { %v5580_v38 = vpop.eup %5579  ;;  %5593 = vrcp.f32 %v1535_v61  ;;  %v1537_v56 = vadd.f32 1.0, %v5578_v22  ;;  %4555 = vmatmul.mubr.f32.gmra.mrb[22].mxu1 %v1629_v4 }
 0x223   : > { %v5582_v31 = vpop.eup %5581  ;;  %5595 = vrcp.f32 %v1534_v44  ;;  %v6740_v17 = vmul.f32 %v5580_v38, %v6683_v49  ;;  %v1932_v49 = vld [vmem:[%s8255_s1 + $0x270] sm:$0xff] }
 0x224   : > { %v5584_v7 = vpop.eup %5583  ;;  %v6743_v10 = vmul.f32 %v5582_v31, %v6687_v14  ;;  %5597 = vrcp.f32 %v1537_v56  ;;  %v1933_v14 = vld [vmem:[%s8255_s1 + $0x278] sm:$0xff] }
 0x225   : > { %v5586_v28 = vpop.eup %5585  ;;  %v1536_v35 = vadd.f32 1.0, %v5584_v7  ;;  %v4104_v18 = vmul.f32 -1.442695, %v6740_v17  ;;  %v4872_v36 = vpack.c.bf16 %v1933_v14, %v1932_v49 }
 0x226   : > { %v4107_v42 = vmul.f32 -1.442695, %v6743_v10  ;;  %v6748_v63 = vmul.f32 %v5586_v28, %v6693_v19 }
 0x227   : > { %5599 = vrcp.f32 %v1536_v35  ;;  %v5588_v48 = vpop.eup %5587  ;;  %4873 = vmatprep.subr.bf16.mxu0 %v4872_v36 }
 0x228   : > { %5601 = vpow2.f32 %v4104_v18  ;;  %v4106_v37 = vmul.f32 -1.442695, %v6748_v63  ;;  %v5590_v39 = vpop.eup %5589  ;;  %v6758_v33 = vmul.f32 %v5588_v48, %v6703_v53  ;;  %4875 = vmatpush3.bf16.msra.mxu0 %v4872_v36 }
 0x229   : > { %5603 = vpow2.f32 %v4107_v42  ;;  %v6761_v19 = vmul.f32 %v5590_v39, %v6708_v59  ;;  %v5592_v47 = vpop.eup %5591  ;;  %4876 = vmatprep.subr.bf16.mxu0 %v8258_v2 }
 0x22a   : > { %5605 = vpow2.f32 %v4106_v37  ;;  %v4109_v57 = vmul.f32 -1.442695, %v6758_v33  ;;  %v1539_v54 = vadd.f32 1.0, %v5592_v47 }
 0x22b   : > { %v4108_v6 = vmul.f32 -1.442695, %v6761_v19 }
 0x22c   : > { %v5594_v20 = vpop.eup %5593  ;;  %5607 = vpow2.f32 %v4109_v57 }
 0x22d   : > { %v5596_v8 = vpop.eup %5595  ;;  %5609 = vpow2.f32 %v4108_v6  ;;  %v1631_v51 = vmul.f32 %v5594_v20, %v6716_v1 }
 0x22e   : > { %v1630_v53 = vmul.f32 %v5596_v8, %v6719_v34  ;;  %v5598_v59 = vpop.eup %5597  ;;  %5611 = vrcp.f32 %v1539_v54  ;;  %v6779_v8 = vld [vmem:[%s8256_s2 + $0x3] ss:$0 sm:$0xff] }
 0x22f   : > { %v1633_v22 = vmul.f32 %v5598_v59, %v6724_v15 }
 0x230   : > { %4557 = vmatprep.mubr.f32.mxu1 %v1630_v53 }
 0x231   : > { %v5600_v21 = vpop.eup %5599  ;;  %4558 = vmatmul.mubr.f32.gmra.mrb[24].mxu1 %v1631_v51 }
 0x232   : > { %v5602_v62 = vpop.eup %5601  ;;  %v1632_v5 = vmul.f32 %v5600_v21, %v6728_v24  ;;  %v2645_v21 = vld [vmem:[%s8255_s1 + $0x280] sm:$0xff] }
 0x233   : > { %v5604_v61 = vpop.eup %5603  ;;  %v1538_v4 = vadd.f32 1.0, %v5602_v62  ;;  %v2646_v62 = vld [vmem:[%s8255_s1 + $0x288] sm:$0xff] }
 0x234   : > { %v1541_v44 = vadd.f32 1.0, %v5604_v61  ;;  %4560 = vmatprep.mubr.f32.mxu1 %v1632_v5  ;;  %v5606_v38 = vpop.eup %5605  ;;  %v4877_v61 = vpack.c.bf16 %v2646_v62, %v2645_v21 }
 0x235   : > { %5613 = vrcp.f32 %v1538_v4  ;;  %4561 = vmatmul.mubr.f32.gmra.mrb[26].mxu1 %v1633_v22  ;;  %v1540_v56 = vadd.f32 1.0, %v5606_v38 }
 0x236   : > { %v5608_v31 = vpop.eup %5607  ;;  %5615 = vrcp.f32 %v1541_v44 }
 0x237   : > { %v5610_v7 = vpop.eup %5609  ;;  %5617 = vrcp.f32 %v1540_v56  ;;  %v1543_v28 = vadd.f32 1.0, %v5608_v31  ;;  %v2647_v56 = vld [vmem:[%s8255_s1 + $0x290] sm:$0xff]  ;;  %v2648_v31 = vld [vmem:[%s8255_s1 + $0x298] sm:$0xff] }
 0x238   : > { %v1542_v35 = vadd.f32 1.0, %v5610_v7  ;;  %v5612_v18 = vpop.eup %5611 }
 0x239   : > { %v1635_v48 = vmul.f32 %v5612_v18, %v6732_v46  ;;  %v2650_v18 = vld [vmem:[%s8255_s1 + $0x2a8] sm:$0xff] }
 0x23a   : > { %5619 = vrcp.f32 %v1542_v35  ;;  %v2649_v35 = vld [vmem:[%s8255_s1 + $0x2a0] sm:$0xff] }
 0x23b   : > { %5621 = vrcp.f32 %v1543_v28 }
 0x23f   : > { %v5614_v42 = vpop.eup %5613 }
 0x240   : > { %v1634_v49 = vmul.f32 %v5614_v42, %v6740_v17  ;;  %v5616_v14 = vpop.eup %5615  ;;  %v4883_v42 = vpack.c.bf16 %v2650_v18, %v2649_v35  ;;  %v2664_v35 = vld [vmem:[%s8255_s1 + $0x318] sm:$0xff] }
 0x241   : > { %v5618_v37 = vpop.eup %5617  ;;  %v1637_v47 = vmul.f32 %v5616_v14, %v6743_v10  ;;  %v2653_v14 = vld [vmem:[%s8255_s1 + $0x2c0] sm:$0xff] }
 0x242   : > { %4563 = vmatprep.mubr.f32.mxu1 %v1634_v49  ;;  %v1636_v36 = vmul.f32 %v5618_v37, %v6748_v63 }
 0x243   : > { %4564 = vmatmul.mubr.f32.gmra.mrb[28].mxu1 %v1635_v48  ;;  %v2654_v48 = vld [vmem:[%s8255_s1 + $0x2c8] sm:$0xff] }
 0x244   : > { %v5620_v39 = vpop.eup %5619  ;;  %4566 = vmatprep.mubr.f32.mxu1 %v1636_v36 }
 0x245   : > { %v5622_v57 = vpop.eup %5621  ;;  %v1638_v20 = vmul.f32 %v5620_v39, %v6761_v19 }
 0x246   : > { %v1639_v6 = vmul.f32 %v5622_v57, %v6758_v33  ;;  %v4889_v57 = vpack.c.bf16 %v2654_v48, %v2653_v14 }
 0x247   : > { %4567 = vmatmul.mubr.f32.gmra.mrb[30].mxu1 %v1637_v47 }
 0x248   : > { %4569 = vmatprep.mubr.f32.mxu1 %v1638_v20  ;;  %v2655_v20 = vld [vmem:[%s8255_s1 + $0x2d0] sm:$0xff] }
 0x24b   : > { %4570 = vmatmul.mubr.f32.gmra.mrb[32].mxu1 %v1639_v6  ;;  %v2656_v6 = vld [vmem:[%s8255_s1 + $0x2d8] sm:$0xff] }
 0x2a3   : > { %v4526_v53 = vpop.f32.mrb[2].mxu1 }
 0x2a4   : > { %v1733_v51 = vadd.f32 %v4526_v53, %v6779_v8  ;;  %v1727_v59 = vpop.f32.mrb[3].mxu1 }
 0x2a5   : > { %v1728_v54 = vadd.f32 %v6779_v8, %v1727_v59 }
 0x2a6   : > { %v1887_v4 = vmul.f32 %v1733_v51, %v6473_v12  ;;  %v4880_v12 = vpack.c.bf16 %v2648_v31, %v2647_v56 }
 0x2a7   : > { %v1886_v5 = vmul.f32 %v1728_v54, %v6475_v9 }
 0x2a8   : > { %v4529_v22 = vpop.f32.mrb[4].mxu1 }
 0x2a9   : > { %v1743_v44 = vadd.f32 %v4529_v22, %v6779_v8  ;;  %v1737_v38 = vpop.f32.mrb[5].mxu1  ;;  %4604 = vmatprep.mubr.f32.mxu0 %v1886_v5  ;;  %v4892_v5 = vpack.c.bf16 %v2656_v6, %v2655_v20  ;;  %v2668_v20 = vld [vmem:[%s8255_s1 + $0x338] sm:$0xff] }
 0x2aa   : > { %v1738_v7 = vadd.f32 %v6779_v8, %v1737_v38  ;;  %4605 = vmatmul.mubr.f32.vlgmr.msra.gmra.mrb[34].mxu0 %v1887_v4  ;;  %v2660_v38 = vld [vmem:[%s8255_s1 + $0x2f8] sm:$0xff] }
 0x2ab   : > { %4878 = vmatpush1.bf16.msra.mxu0 %v4877_v61  ;;  %v1889_v28 = vmul.f32 %v1743_v44, %v6483_v58  ;;  %v2652_v58 = vld [vmem:[%s8255_s1 + $0x2b8] sm:$0xff]  ;;  %v2657_v61 = vld [vmem:[%s8255_s1 + $0x2e0] sm:$0xff]  ;;  %v2659_v44 = vld [vmem:[%s8255_s1 + $0x2f0] sm:$0xff] }
 0x2ac   : > { %v1888_v9 = vmul.f32 %v1738_v7, %v6488_v50  ;;  %4879 = vmatprep.subr.bf16.mxu0 %v8258_v2  ;;  %v2651_v50 = vld [vmem:[%s8255_s1 + $0x2b0] sm:$0xff]  ;;  %v4898_v56 = vpack.c.bf16 %v2660_v38, %v2659_v44 }
 0x2ad   : > { %v4886_v49 = vpack.c.bf16 %v2652_v58, %v2651_v50 }
 0x2ae   : > { %4607 = vmatprep.mubr.f32.mxu0 %v1888_v9 }
 0x2af   : > { %4608 = vmatmul.mubr.f32.gmra.mrb[36].mxu0 %v1889_v28  ;;  %v2663_v28 = vld [vmem:[%s8255_s1 + $0x310] sm:$0xff] }
 0x2b0   : > { %4881 = vmatpush1.bf16.msra.mxu0 %v4880_v12  ;;  %v4904_v58 = vpack.c.bf16 %v2664_v35, %v2663_v28 }
 0x2b1   : > { %4882 = vmatprep.subr.bf16.mxu0 %v8258_v2 }
 0x2b4   : > { %4884 = vmatpush1.bf16.msra.mxu0 %v4883_v42 }
 0x2b5   : > { %4885 = vmatprep.subr.bf16.mxu0 %v8258_v2 }
 0x2b6   : > { %v4532_v37 = vpop.f32.mrb[6].mxu1 }
 0x2b7   : > { %v1753_v36 = vadd.f32 %v4532_v37, %v6779_v8  ;;  %v1747_v39 = vpop.f32.mrb[7].mxu1  ;;  %v2665_v37 = vld [vmem:[%s8255_s1 + $0x320] sm:$0xff] }
 0x2b8   : > { %v1748_v47 = vadd.f32 %v6779_v8, %v1747_v39  ;;  %4887 = vmatpush1.bf16.msra.mxu0 %v4886_v49 }
 0x2b9   : > { %4888 = vmatprep.subr.bf16.mxu0 %v8258_v2  ;;  %v1891_v59 = vmul.f32 %v1753_v36, %v6502_v26  ;;  %v2666_v36 = vld [vmem:[%s8255_s1 + $0x328] sm:$0xff] }
 0x2ba   : > { %v1890_v53 = vmul.f32 %v1748_v47, %v6505_v13  ;;  %v4535_v51 = vpop.f32.mrb[8].mxu1  ;;  %v2658_v13 = vld [vmem:[%s8255_s1 + $0x2e8] sm:$0xff]  ;;  %v4907_v47 = vpack.c.bf16 %v2666_v36, %v2665_v37 }
 0x2bb   : > { %v1763_v54 = vadd.f32 %v4535_v51, %v6779_v8  ;;  %v1757_v21 = vpop.f32.mrb[9].mxu1  ;;  %v4895_v22 = vpack.c.bf16 %v2658_v13, %v2657_v61  ;;  %v2671_v51 = vld [vmem:[%s8255_s1 + $0x350] sm:$0xff] }
 0x2bc   : > { %4610 = vmatprep.mubr.f32.mxu0 %v1890_v53  ;;  %v1758_v62 = vadd.f32 %v6779_v8, %v1757_v21  ;;  %4890 = vmatpush1.bf16.msra.mxu0 %v4889_v57  ;;  %v2667_v57 = vld [vmem:[%s8255_s1 + $0x330] sm:$0xff] }
 0x2bd   : > { %4611 = vmatmul.mubr.f32.gmra.mrb[38].mxu0 %v1891_v59  ;;  %4891 = vmatprep.subr.bf16.mxu0 %v8258_v2  ;;  %v1893_v4 = vmul.f32 %v1763_v54, %v6510_v45  ;;  %v2661_v45 = vld [vmem:[%s8255_s1 + $0x300] sm:$0xff]  ;;  %v4910_v6 = vpack.c.bf16 %v2668_v20, %v2667_v57  ;;  %v2672_v59 = vld [vmem:[%s8255_s1 + $0x358] sm:$0xff] }
 0x2be   : > { %v1892_v26 = vmul.f32 %v1758_v62, %v6513_v43  ;;  %v2662_v43 = vld [vmem:[%s8255_s1 + $0x308] sm:$0xff] }
 0x2bf   : > { %v4901_v31 = vpack.c.bf16 %v2662_v43, %v2661_v45 }
 0x2c0   : > { %4613 = vmatprep.mubr.f32.mxu0 %v1892_v26  ;;  %4893 = vmatpush1.bf16.msra.mxu0 %v4892_v5  ;;  %v4916_v5 = vpack.c.bf16 %v2672_v59, %v2671_v51 }
 0x2c1   : > { %4614 = vmatmul.mubr.f32.gmra.mrb[40].mxu0 %v1893_v4  ;;  %4894 = vmatprep.subr.bf16.mxu0 %v8258_v2 }
 0x2c4   : > { %4896 = vmatpush1.bf16.msra.mxu0 %v4895_v22 }
 0x2c5   : > { %4897 = vmatprep.subr.bf16.mxu0 %v8258_v2 }
 0x2c8   : > { %4899 = vmatpush1.bf16.msra.mxu0 %v4898_v56 }
 0x2c9   : > { %v4538_v7 = vpop.f32.mrb[10].mxu1  ;;  %4900 = vmatprep.subr.bf16.mxu0 %v8258_v2 }
 0x2ca   : > { %v1773_v9 = vadd.f32 %v4538_v7, %v6779_v8  ;;  %v1767_v12 = vpop.f32.mrb[11].mxu1 }
 0x2cb   : > { %v1768_v18 = vadd.f32 %v6779_v8, %v1767_v12 }
 0x2cc   : > { %4902 = vmatpush1.bf16.msra.mxu0 %v4901_v31  ;;  %v1895_v49 = vmul.f32 %v1773_v9, %v6569_v16 }
 0x2cd   : > { %v1894_v42 = vmul.f32 %v1768_v18, %v6580_v0  ;;  %v4541_v50 = vpop.f32.mrb[12].mxu1  ;;  %4903 = vmatprep.subr.bf16.mxu0 %v8258_v2 }
 0x2ce   : > { %v1783_v14 = vadd.f32 %v4541_v50, %v6779_v8  ;;  %v1777_v48 = vpop.f32.mrb[13].mxu1 }
 0x2cf   : > { %4616 = vmatprep.mubr.f32.mxu0 %v1894_v42  ;;  %v1778_v0 = vadd.f32 %v6779_v8, %v1777_v48 }
 0x2d0   : > { %4617 = vmatmul.mubr.f32.gmra.mrb[42].mxu0 %v1895_v49  ;;  %v1897_v16 = vmul.f32 %v1783_v14, %v6583_v3  ;;  %v2669_v3 = vld [vmem:[%s8255_s1 + $0x340] sm:$0xff] }
 0x2d1   : > { %v1896_v39 = vmul.f32 %v1778_v0, %v6587_v52  ;;  %4905 = vmatpush1.bf16.msra.mxu0 %v4904_v58  ;;  %v2670_v52 = vld [vmem:[%s8255_s1 + $0x348] sm:$0xff] }
 0x2d2   : > { %4906 = vmatprep.subr.bf16.mxu0 %v8258_v2  ;;  %v4913_v53 = vpack.c.bf16 %v2670_v52, %v2669_v3 }
 0x2d3   : > { %4619 = vmatprep.mubr.f32.mxu0 %v1896_v39  ;;  %v2675_v39 = vld [vmem:[%s8255_s1 + $0x370] sm:$0xff] }
 0x2d4   : > { %4620 = vmatmul.mubr.f32.gmra.mrb[44].mxu0 %v1897_v16  ;;  %v2677_v16 = vld [vmem:[%s8255_s1 + $0x380] sm:$0xff] }
 0x2d5   : > { %4908 = vmatpush1.bf16.msra.mxu0 %v4907_v47  ;;  %v2676_v47 = vld [vmem:[%s8255_s1 + $0x378] sm:$0xff] }
 0x2d6   : > { %4909 = vmatprep.subr.bf16.mxu0 %v8258_v2  ;;  %v4922_v3 = vpack.c.bf16 %v2676_v47, %v2675_v39  ;;  %v2697_v39 = vld [vmem:[%s8255_s1 + $0x420] sm:$0xff]  ;;  %v2698_v47 = vld [vmem:[%s8255_s1 + $0x428] sm:$0xff] }
 0x2d9   : > { %4911 = vmatpush1.bf16.msra.mxu0 %v4910_v6 }
 0x2da   : > { %4912 = vmatprep.subr.bf16.mxu0 %v8258_v2 }
 0x2dc   : > { %v4544_v54 = vpop.f32.mrb[14].mxu1 }
 0x2dd   : > { %v1793_v21 = vadd.f32 %v4544_v54, %v6779_v8  ;;  %v1787_v62 = vpop.f32.mrb[15].mxu1  ;;  %4914 = vmatpush1.bf16.msra.mxu0 %v4913_v53  ;;  %v2679_v54 = vld [vmem:[%s8255_s1 + $0x390] sm:$0xff] }
 0x2de   : > { %v1788_v61 = vadd.f32 %v6779_v8, %v1787_v62  ;;  %4915 = vmatprep.subr.bf16.mxu0 %v8258_v2 }
 0x2df   : > { %v1899_v4 = vmul.f32 %v1793_v21, %v6624_v27  ;;  %v2681_v21 = vld [vmem:[%s8255_s1 + $0x3a0] sm:$0xff] }
 0x2e0   : > { %v1898_v13 = vmul.f32 %v1788_v61, %v6627_v32  ;;  %v4547_v26 = vpop.f32.mrb[16].mxu1  ;;  %v2682_v61 = vld [vmem:[%s8255_s1 + $0x3a8] sm:$0xff] }
 0x2e1   : > { %v1803_v22 = vadd.f32 %v4547_v26, %v6779_v8  ;;  %v1797_v44 = vpop.f32.mrb[17].mxu1  ;;  %4917 = vmatpush1.bf16.msra.mxu0 %v4916_v5  ;;  %v4931_v26 = vpack.c.bf16 %v2682_v61, %v2681_v21  ;;  %v2707_v21 = vld [vmem:[%s8255_s1 + $0x470] sm:$0xff] }
 0x2e2   : > { %4622 = vmatprep.mubr.f32.mxu0 %v1898_v13  ;;  %v1798_v38 = vadd.f32 %v6779_v8, %v1797_v44  ;;  %4918 = vmatprep.subr.bf16.mxu0 %v8258_v2  ;;  %v2683_v44 = vld [vmem:[%s8255_s1 + $0x3b0] sm:$0xff] }
 0x2e3   : > { %4623 = vmatmul.mubr.f32.gmra.mrb[46].mxu0 %v1899_v4  ;;  %v1901_v43 = vmul.f32 %v1803_v22, %v6631_v40 }
 0x2e4   : > { %v1900_v56 = vmul.f32 %v1798_v38, %v6635_v29  ;;  %v4550_v45 = vpop.f32.mrb[18].mxu1  ;;  %v2684_v38 = vld [vmem:[%s8255_s1 + $0x3b8] sm:$0xff] }
 0x2e5   : > { %v1813_v32 = vadd.f32 %v4550_v45, %v6779_v8  ;;  %v1807_v31 = vpop.f32.mrb[19].mxu1 }
 0x2e6   : > { %4625 = vmatprep.mubr.f32.mxu0 %v1900_v56  ;;  %v1808_v27 = vadd.f32 %v6779_v8, %v1807_v31 }
 0x2e7   : > { %4626 = vmatmul.mubr.f32.gmra.mrb[48].mxu0 %v1901_v43  ;;  %v1903_v9 = vmul.f32 %v1813_v32, %v6643_v11 }
 0x2e8   : > { %v1902_v7 = vmul.f32 %v1808_v27, %v6654_v55 }
 0x2ea   : > { %4628 = vmatprep.mubr.f32.mxu0 %v1902_v7  ;;  %v2685_v7 = vld [vmem:[%s8255_s1 + $0x3c0] sm:$0xff] }
 0x2eb   : > { %4629 = vmatmul.mubr.f32.gmra.mrb[50].mxu0 %v1903_v9 }
 0x2f0   : > { %v4553_v12 = vpop.f32.mrb[20].mxu1 }
 0x2f1   : > { %v1823_v28 = vadd.f32 %v4553_v12, %v6779_v8  ;;  %v1817_v29 = vpop.f32.mrb[21].mxu1 }
 0x2f2   : > { %v1818_v35 = vadd.f32 %v6779_v8, %v1817_v29  ;;  %v5636_v29 = vld [vmem:[#allocation2] sm:$0xff] }
 0x2f3   : > { %v1905_v18 = vmul.f32 %v1823_v28, %v6671_v41  ;;  %v2674_v41 = vld [vmem:[%s8255_s1 + $0x368] sm:$0xff] }
 0x2f4   : > { %v1904_v40 = vmul.f32 %v1818_v35, %v6676_v30  ;;  %v2673_v30 = vld [vmem:[%s8255_s1 + $0x360] sm:$0xff]  ;;  %v2386_v35 = vrot.slane %v5636_v29, 1 }
 0x2f5   : > { %v4556_v42 = vpop.f32.mrb[22].mxu1  ;;  %v4919_v48 = vpack.c.bf16 %v2674_v41, %v2673_v30  ;;  %v2691_v30 = vld [vmem:[%s8255_s1 + $0x3f0] sm:$0xff]  ;;  %v2692_v41 = vld [vmem:[%s8255_s1 + $0x3f8] sm:$0xff] }
 0x2f6   : > { %4631 = vmatprep.mubr.f32.mxu0 %v1904_v40  ;;  %v1833_v50 = vadd.f32 %v4556_v42, %v6779_v8  ;;  %v1827_v58 = vpop.f32.mrb[23].mxu1  ;;  %v2285_v40 = vld [vmem:[#allocation2 + $0x10] sm:$0x3] }
 0x2f7   : > { %4632 = vmatmul.mubr.f32.gmra.mrb[52].mxu0 %v1905_v18  ;;  %v1828_v11 = vadd.f32 %v6779_v8, %v1827_v58  ;;  %v2687_v58 = vld [vmem:[%s8255_s1 + $0x3d0] sm:$0xff] }
 0x2f8   : > { %v1907_v49 = vmul.f32 %v1833_v50, %v6679_v25  ;;  %4920 = vmatpush1.bf16.msra.mxu0 %v4919_v48  ;;  %v2693_v48 = vld [vmem:[%s8255_s1 + $0x400] sm:$0xff] }
 0x2f9   : > { %v1906_v55 = vmul.f32 %v1828_v11, %v6690_v60  ;;  %4921 = vmatprep.subr.bf16.mxu0 %v8258_v2 }
 0x2fb   : > { %4634 = vmatprep.mubr.f32.mxu0 %v1906_v55  ;;  %v2690_v55 = vld [vmem:[%s8255_s1 + $0x3e8] sm:$0xff] }
 0x2fc   : > { %4635 = vmatmul.mubr.f32.gmra.mrb[54].mxu0 %v1907_v49 }
 0x2fd   : > { %4923 = vmatpush1.bf16.msra.mxu0 %v4922_v3  ;;  %v2701_v3 = vld [vmem:[%s8255_s1 + $0x440] sm:$0xff] }
 0x2fe   : > { %4924 = vmatprep.subr.bf16.mxu0 %v8258_v2 }
 0x304   : > { %v4559_v14 = vpop.f32.mrb[24].mxu1 }
 0x305   : > { %v1843_v37 = vadd.f32 %v4559_v14, %v6779_v8  ;;  %v1837_v36 = vpop.f32.mrb[25].mxu1  ;;  %v4946_v14 = vpack.c.bf16 %v2692_v41, %v2691_v30 }
 0x306   : > { %v1838_v0 = vadd.f32 %v6779_v8, %v1837_v36 }
 0x307   : > { %v1909_v57 = vmul.f32 %v1843_v37, %v6716_v1  ;;  %v2694_v37 = vld [vmem:[%s8255_s1 + $0x408] sm:$0xff] }
 0x308   : > { %v1908_v25 = vmul.f32 %v1838_v0, %v6719_v34  ;;  %v4562_v60 = vpop.f32.mrb[26].mxu1  ;;  %v2678_v34 = vld [vmem:[%s8255_s1 + $0x388] sm:$0xff]  ;;  %v4949_v36 = vpack.c.bf16 %v2694_v37, %v2693_v48  ;;  %v2695_v0 = vld [vmem:[%s8255_s1 + $0x410] sm:$0xff] }
 0x309   : > { %v1853_v20 = vadd.f32 %v4562_v60, %v6779_v8  ;;  %v1847_v6 = vpop.f32.mrb[27].mxu1  ;;  %v6948_v53 = vpack.c.bf16 %v2678_v34, %v2677_v16  ;;  %v4955_v16 = vpack.c.bf16 %v2698_v47, %v2697_v39  ;;  %v2702_v34 = vld [vmem:[%s8255_s1 + $0x448] sm:$0xff] }
 0x30a   : > { %4637 = vmatprep.mubr.f32.mxu0 %v1908_v25  ;;  %v1848_v52 = vadd.f32 %v6779_v8, %v1847_v6  ;;  %v2696_v25 = vld [vmem:[%s8255_s1 + $0x418] sm:$0xff] }
 0x30b   : > { %4638 = vmatmul.mubr.f32.gmra.mrb[56].mxu0 %v1909_v57  ;;  %5116 = vmatpush1.bf16.msra.mxu1 %v6948_v53  ;;  %v1911_v1 = vmul.f32 %v1853_v20, %v6724_v15  ;;  %v4952_v60 = vpack.c.bf16 %v2696_v25, %v2695_v0  ;;  %v2699_v57 = vld [vmem:[%s8255_s1 + $0x430] sm:$0xff]  ;;  %v2700_v20 = vld [vmem:[%s8255_s1 + $0x438] sm:$0xff]  ;;  %v5641_v25 = vld [vmem:[%s5769_s25 + $0x28] sm:$0xff] }
 0x30c   : > { %v1910_v51 = vmul.f32 %v1848_v52, %v6728_v24  ;;  %5101 = vmatprep.subr.bf16.mxu1 %v8258_v2  ;;  %v2680_v24 = vld [vmem:[%s8255_s1 + $0x398] sm:$0xff]  ;;  %v4958_v6 = vpack.c.bf16 %v2700_v20, %v2699_v57  ;;  %v4961_v52 = vpack.c.bf16 %v2702_v34, %v2701_v3 }
 0x30d   : > { %v4928_v5 = vpack.c.bf16 %v2680_v24, %v2679_v54  ;;  %v2706_v54 = vld [vmem:[%s8255_s1 + $0x468] sm:$0xff] }
 0x30e   : > { %4640 = vmatprep.mubr.f32.mxu0 %v1910_v51  ;;  %v2704_v51 = vld [vmem:[%s8255_s1 + $0x458] sm:$0xff] }
 0x30f   : > { %4641 = vmatmul.mubr.f32.gmra.mrb[58].mxu0 %v1911_v1  ;;  %5117 = vmatpush1.bf16.msra.mxu1 %v4928_v5 }
 0x310   : > { %5102 = vmatprep.subr.bf16.mxu1 %v8258_v2 }
 0x313   : > { %5118 = vmatpush1.bf16.msra.mxu1 %v4931_v26 }
 0x314   : > { %5103 = vmatprep.subr.bf16.mxu1 %v8258_v2 }
 0x316   : > { %v4565_v59 = vpop.f32.mrb[28].mxu1 }
 0x317   : > { %v1863_v15 = vadd.f32 %v4565_v59, %v6779_v8  ;;  %v1857_v62 = vpop.f32.mrb[29].mxu1  ;;  %v2705_v59 = vld [vmem:[%s8255_s1 + $0x460] sm:$0xff] }
 0x318   : > { %v1858_v13 = vadd.f32 %v6779_v8, %v1857_v62  ;;  %v4967_v24 = vpack.c.bf16 %v2706_v54, %v2705_v59 }
 0x319   : > { %v1913_v56 = vmul.f32 %v1863_v15, %v6732_v46  ;;  %v2686_v46 = vld [vmem:[%s8255_s1 + $0x3c8] sm:$0xff]  ;;  %v2708_v15 = vld [vmem:[%s8255_s1 + $0x478] sm:$0xff] }
 0x31a   : > { %v1912_v4 = vmul.f32 %v1858_v13, %v6740_v17  ;;  %v4568_v22 = vpop.f32.mrb[30].mxu1  ;;  %v4934_v17 = vpack.c.bf16 %v2684_v38, %v2683_v44  ;;  %v4937_v18 = vpack.c.bf16 %v2686_v46, %v2685_v7  ;;  %v4970_v62 = vpack.c.bf16 %v2708_v15, %v2707_v21  ;;  %v7095_v38 = vld [vmem:[%s8256_s2 + $0x4] ss:$0 sm:$0xff] }
 0x31b   : > { %v1873_v45 = vadd.f32 %v4568_v22, %v6779_v8  ;;  %v1867_v43 = vpop.f32.mrb[31].mxu1 }
 0x31c   : > { %4643 = vmatprep.mubr.f32.mxu0 %v1912_v4  ;;  %v1868_v32 = vadd.f32 %v6779_v8, %v1867_v43  ;;  %5119 = vmatpush1.bf16.msra.mxu1 %v4934_v17 }
 0x31d   : > { %4644 = vmatmul.mubr.f32.gmra.mrb[60].mxu0 %v1913_v56  ;;  %v1915_v9 = vmul.f32 %v1873_v45, %v6743_v10  ;;  %5104 = vmatprep.subr.bf16.mxu1 %v8258_v2  ;;  %v2389_v10 = vrot.slane %v2285_v40, 1  ;;  %v5637_v45 = vld [vmem:[%s5769_s25 + $0x8] sm:$0xff]  ;;  %v5640_v40 = vld [vmem:[%s5769_s25 + $0x10] sm:$0xff] }
 0x31e   : > { %v1914_v31 = vmul.f32 %v1868_v32, %v6748_v63  ;;  %v4571_v27 = vpop.f32.mrb[32].mxu1 }
 0x31f   : > { %v1883_v12 = vadd.f32 %v4571_v27, %v6779_v8  ;;  %v1877_v28 = vpop.f32.mrb[33].mxu1 }
 0x320   : > { %4646 = vmatprep.mubr.f32.mxu0 %v1914_v31  ;;  %v1878_v63 = vadd.f32 %v6779_v8, %v1877_v28  ;;  %5120 = vmatpush1.bf16.msra.mxu1 %v4937_v18  ;;  %v2390_v8 = vsel %vm2385_vm1, %v2386_v35, %v2389_v10  ;;  %v5638_v31 = vld [vmem:[%s5769_s25] sm:$0xff]  ;;  %v5639_v28 = vld [vmem:[%s5769_s25 + $0x18] sm:$0xff] }
 0x321   : > { %4647 = vmatmul.mubr.f32.gmra.mrb[62].mxu0 %v1915_v9  ;;  %v1917_v50 = vmul.f32 %v1883_v12, %v6758_v33  ;;  %5105 = vmatprep.subr.bf16.mxu1 %v8258_v2  ;;  %v2689_v33 = vld [vmem:[%s8255_s1 + $0x3e0] sm:$0xff] }
 0x322   : > { %v1916_v42 = vmul.f32 %v1878_v63, %v6761_v19  ;;  %v2688_v19 = vld [vmem:[%s8255_s1 + $0x3d8] sm:$0xff]  ;;  %v4943_v49 = vpack.c.bf16 %v2690_v55, %v2689_v33 }
 0x323   : > { %v4940_v11 = vpack.c.bf16 %v2688_v19, %v2687_v58 }
 0x324   : > { %4649 = vmatprep.mubr.f32.mxu0 %v1916_v42 }
 0x325   : > { %4650 = vmatmul.mubr.f32.gmra.mrb[64].mxu0 %v1917_v50  ;;  %5121 = vmatpush1.bf16.msra.mxu1 %v4940_v11 }
 0x326   : > { %2853 = vmatprep.mubr.f32.mxu0 %v2386_v35  ;;  %5106 = vmatprep.subr.bf16.mxu1 %v8258_v2 }
 0x329   : > { %2854 = vmatmul.mubr.f32.vlgmr.msra.gmra.mrb[66].mxu0 %v5636_v29  ;;  %5122 = vmatpush1.bf16.msra.mxu1 %v4943_v49 }
 0x32a   : > { %2858 = vmatprep.mubr.f32.mxu0 %v2390_v8  ;;  %4926 = vmatpush1.bf16.msra.mxu0 %v6948_v53  ;;  %v2703_v53 = vld [vmem:[%s8255_s1 + $0x450] sm:$0xff] }
 0x32b   : > { %4927 = vmatprep.subr.bf16.mxu0 %v8258_v2  ;;  %5107 = vmatprep.subr.bf16.mxu1 %v8258_v2  ;;  %v4964_v1 = vpack.c.bf16 %v2704_v51, %v2703_v53  ;;  %v5643_v51 = vld [vmem:[%s5769_s25 + $0x38] sm:$0xff] }
 0x32d   : > { %2859 = vmatmul.mubr.f32.gmra.mrb[68].mxu0 %v5636_v29  ;;  %5123 = vmatpush1.bf16.msra.mxu1 %v4946_v14 }
 0x32e   : > { %4929 = vmatpush1.bf16.msra.mxu0 %v4928_v5  ;;  %5108 = vmatprep.subr.bf16.mxu1 %v8258_v2  ;;  %v4042_v5 = vmul.f32 -1.442695, %v6705_v23 }
 0x32f   : > { %4930 = vmatprep.subr.bf16.mxu0 %v8258_v2 }
 0x330   : > { %5623 = vpow2.f32 %v4042_v5 }
 0x331   : > { %5124 = vmatpush1.bf16.msra.mxu1 %v4949_v36 }
 0x332   : > { %4932 = vmatpush1.bf16.msra.mxu0 %v4931_v26  ;;  %5109 = vmatprep.subr.bf16.mxu1 %v8258_v2  ;;  %v420_v26 = vlaneseq }
 0x333   : > { %4933 = vmatprep.subr.bf16.mxu0 %v8258_v2 }
 0x334   : > { %v421_v4 = vshrl.u32 %v420_v26, 7 }
 0x335   : > { %5125 = vmatpush1.bf16.msra.mxu1 %v4952_v60 }
 0x336   : > { %4935 = vmatpush1.bf16.msra.mxu0 %v4934_v17  ;;  %5110 = vmatprep.subr.bf16.mxu1 %v8258_v2  ;;  %v422_v22 = vsub.s32 0, %v421_v4 }
 0x337   : > { %4936 = vmatprep.subr.bf16.mxu0 %v8258_v2 }
 0x339   : > { %5126 = vmatpush1.bf16.msra.mxu1 %v4955_v16 }
 0x33a   : > { %4938 = vmatpush1.bf16.msra.mxu0 %v4937_v18  ;;  %5111 = vmatprep.subr.bf16.mxu1 %v8258_v2  ;;  %v5624_v61 = vpop.eup %5623 }
 0x33b   : > { %4939 = vmatprep.subr.bf16.mxu0 %v8258_v2  ;;  %v417_v13 = vadd.f32 1.0, %v5624_v61 }
 0x33d   : > { %5127 = vmatpush1.bf16.msra.mxu1 %v4958_v6  ;;  %5625 = vrcp.f32 %v417_v13 }
 0x33e   : > { %4941 = vmatpush1.bf16.msra.mxu0 %v4940_v11  ;;  %5112 = vmatprep.subr.bf16.mxu1 %v8258_v2 }
 0x33f   : > { %4942 = vmatprep.subr.bf16.mxu0 %v8258_v2 }
 0x341   : > { %5128 = vmatpush1.bf16.msra.mxu1 %v4961_v52 }
 0x342   : > { %4944 = vmatpush1.bf16.msra.mxu0 %v4943_v49  ;;  %5113 = vmatprep.subr.bf16.mxu1 %v8258_v2 }
 0x343   : > { %4945 = vmatprep.subr.bf16.mxu0 %v8258_v2 }
 0x345   : > { %5129 = vmatpush1.bf16.msra.mxu1 %v4964_v1 }
 0x346   : > { %4947 = vmatpush1.bf16.msra.mxu0 %v4946_v14  ;;  %5114 = vmatprep.subr.bf16.mxu1 %v8258_v2 }
 0x347   : > { %4948 = vmatprep.subr.bf16.mxu0 %v8258_v2  ;;  %v5626_v23 = vpop.eup %5625 }
 0x348   : > { %v7090_v44 = vrot.slane %v5626_v23, %v422_v22 }
 0x349   : > { %5130 = vmatpush1.bf16.msra.mxu1 %v4967_v24 }
 0x34a   : > { %4950 = vmatpush1.bf16.msra.mxu0 %v4949_v36  ;;  %5115 = vmatprep.subr.bf16.mxu1 %v8258_v2  ;;  %v425_v43 = vmul.f32 %v5637_v45, %v7090_v44  ;;  %v424_v27 = vmul.f32 %v5638_v31, %v7090_v44  ;;  %v427_v29 = vmul.f32 %v5639_v28, %v7090_v44 }
 0x34b   : > { %4951 = vmatprep.subr.bf16.mxu0 %v8258_v2  ;;  %v426_v18 = vmul.f32 %v5640_v40, %v7090_v44 }
 0x34d   : > { %5131 = vmatpush1.bf16.msra.mxu1 %v4970_v62 }
 0x34e   : > { %4953 = vmatpush1.bf16.msra.mxu0 %v4952_v60  ;;  %4972 = vmatprep.subr.bf16.mxu1 %v8258_v2  ;;  %v429_v60 = vmul.f32 %v5641_v25, %v7090_v44 }
 0x34f   : > { %4954 = vmatprep.subr.bf16.mxu0 %v8258_v2 }
 0x352   : > { %4956 = vmatpush1.bf16.msra.mxu0 %v4955_v16  ;;  %v5642_v16 = vld [vmem:[%s5769_s25 + $0x20] sm:$0xff] }
 0x353   : > { %4957 = vmatprep.subr.bf16.mxu0 %v8258_v2  ;;  %v428_v57 = vmul.f32 %v5642_v16, %v7090_v44 }
 0x356   : > { %4959 = vmatpush1.bf16.msra.mxu0 %v4958_v6 }
 0x357   : > { %4960 = vmatprep.subr.bf16.mxu0 %v8258_v2 }
 0x35a   : > { %4962 = vmatpush1.bf16.msra.mxu0 %v4961_v52 }
 0x35b   : > { %4963 = vmatprep.subr.bf16.mxu0 %v8258_v2 }
 0x35e   : > { %4965 = vmatpush1.bf16.msra.mxu0 %v4964_v1  ;;  %v431_v1 = vmul.f32 %v5643_v51, %v7090_v44  ;;  %v2773_v51 = vld [vmem:[%s8255_s1 + $0x680] sm:$0xff] }
 0x35f   : > { %4966 = vmatprep.subr.bf16.mxu0 %v8258_v2 }
 0x362   : > { %4968 = vmatpush1.bf16.msra.mxu0 %v4967_v24  ;;  %v5644_v24 = vld [vmem:[%s5769_s25 + $0x30] sm:$0xff] }
 0x363   : > { %4969 = vmatprep.subr.bf16.mxu0 %v8258_v2  ;;  %v430_v21 = vmul.f32 %v5644_v24, %v7090_v44 }
 0x366   : > { %4971 = vmatpush1.bf16.msra.mxu0 %v4970_v62 }
 0x37d   : > { %v4606_v56 = vpop.f32.mrb[34].mxu0 }
 0x37e   : > { %v2011_v32 = vadd.f32 %v4606_v56, %v7095_v38  ;;  %v2005_v17 = vpop.f32.mrb[35].mxu0 }
 0x37f   : > { %v2006_v7 = vadd.f32 %v7095_v38, %v2005_v17 }
 0x380   : > { %v2165_v46 = vadd.f32 %v2011_v32, %v425_v43 }
 0x381   : > { %v2164_v9 = vadd.f32 %v2006_v7, %v424_v27 }
 0x382   : > { %2252 = vst [vmem:[#allocation2 + $0x21] sm:$0xff] %v2165_v46  ;;  %v4609_v12 = vpop.f32.mrb[36].mxu0 }
 0x383   : > { %2251 = vst [vmem:[#allocation2 + $0x19] sm:$0xff] %v2164_v9  ;;  %v2021_v35 = vadd.f32 %v4609_v12, %v7095_v38  ;;  %v2015_v63 = vpop.f32.mrb[37].mxu0  ;;  %v5645_v9 = vld [vmem:[%s5769_s25 + $0x48] sm:$0xff] }
 0x384   : > { %v2016_v42 = vadd.f32 %v7095_v38, %v2015_v63  ;;  %v433_v12 = vmul.f32 %v5645_v9, %v7090_v44  ;;  %v5646_v63 = vld [vmem:[%s5769_s25 + $0x40] sm:$0xff] }
 0x385   : > { %v2167_v50 = vadd.f32 %v2021_v35, %v427_v29  ;;  %v432_v40 = vmul.f32 %v5646_v63, %v7090_v44  ;;  %v5651_v63 = vld [vmem:[%s5769_s25 + $0x78] sm:$0xff] }
 0x386   : > { %v2166_v10 = vadd.f32 %v2016_v42, %v426_v18 }
 0x387   : > { %2254 = vst [vmem:[#allocation2 + $0x39] sm:$0xff] %v2167_v50 }
 0x388   : > { %2253 = vst [vmem:[#allocation2 + $0x31] sm:$0xff] %v2166_v10 }
 0x389   : > { %v7109_v8 = vld [vmem:[#allocation2 + $0x28] sm:$0x3] }
 0x38a   : > { %v7111_v58 = vld [vmem:[#allocation2 + $0x18] sm:$0xff]  ;;  %v7113_v19 = vld [vmem:[#allocation2 + $0x20] sm:$0xff]  ;;  %v2394_v55 = vrot.slane %v7109_v8, 1 }
 0x38b   : > { %v2391_v33 = vrot.slane %v7111_v58, 1  ;;  %v2392_v11 = vrot.slane %v7113_v19, 1 }
 0x38d   : > { %v7119_v49 = vsel %vm2385_vm1, %v2391_v33, %v2392_v11  ;;  %v7124_v30 = vsel %vm2385_vm1, %v2392_v11, %v2394_v55  ;;  %v5647_v11 = vld [vmem:[%s5769_s25 + $0x58] sm:$0xff] }
 0x38e   : > { %2863 = vmatprep.mubr.f32.mxu0 %v7119_v49  ;;  %v7133_v0 = vld [vmem:[#allocation2 + $0x40] sm:$0x3]  ;;  %v435_v55 = vmul.f32 %v5647_v11, %v7090_v44 }
 0x38f   : > { %2864 = vmatmul.mubr.f32.gmra.mrb[70].mxu0 %v7111_v58  ;;  %v7126_v41 = vld [vmem:[#allocation2 + $0x30] sm:$0xff]  ;;  %v7128_v14 = vld [vmem:[#allocation2 + $0x38] sm:$0xff]  ;;  %v2399_v34 = vrot.slane %v7133_v0, 1 }
 0x390   : > { %v4612_v48 = vpop.f32.mrb[38].mxu0  ;;  %2868 = vmatprep.mubr.f32.mxu0 %v7124_v30  ;;  %v2396_v37 = vrot.slane %v7126_v41, 1  ;;  %v2397_v36 = vrot.slane %v7128_v14, 1 }
 0x391   : > { %v2031_v39 = vadd.f32 %v4612_v48, %v7095_v38  ;;  %v2025_v47 = vpop.f32.mrb[39].mxu0 }
 0x392   : > { %v2026_v20 = vadd.f32 %v7095_v38, %v2025_v47  ;;  %v7142_v6 = vsel %vm2385_vm1, %v2396_v37, %v2397_v36  ;;  %v7155_v5 = vsel %vm2385_vm1, %v2397_v36, %v2399_v34  ;;  %v5648_v36 = vld [vmem:[%s5769_s25 + $0x50] sm:$0xff] }
 0x393   : > { %v2169_v3 = vadd.f32 %v2031_v39, %v429_v60  ;;  %2869 = vmatmul.mubr.f32.gmra.mrb[72].mxu0 %v7113_v19  ;;  %v434_v25 = vmul.f32 %v5648_v36, %v7090_v44  ;;  %v5653_v36 = vld [vmem:[%s5769_s25 + $0x88] sm:$0xff] }
 0x394   : > { %v2168_v52 = vadd.f32 %v2026_v20, %v428_v57  ;;  %v4615_v53 = vpop.f32.mrb[40].mxu0  ;;  %2873 = vmatprep.mubr.f32.mxu0 %v7142_v6 }
 0x395   : > { %2256 = vst [vmem:[#allocation2 + $0x51] sm:$0xff] %v2169_v3  ;;  %v2041_v59 = vadd.f32 %v4615_v53, %v7095_v38  ;;  %v2035_v54 = vpop.f32.mrb[41].mxu0 }
 0x396   : > { %2255 = vst [vmem:[#allocation2 + $0x49] sm:$0xff] %v2168_v52  ;;  %v2036_v15 = vadd.f32 %v7095_v38, %v2035_v54 }
 0x397   : > { %v2171_v62 = vadd.f32 %v2041_v59, %v431_v1  ;;  %2874 = vmatmul.mubr.f32.gmra.mrb[74].mxu0 %v7126_v41  ;;  %v2774_v1 = vld [vmem:[%s8255_s1 + $0x688] sm:$0xff] }
 0x398   : > { %v2170_v61 = vadd.f32 %v2036_v15, %v430_v21  ;;  %2878 = vmatprep.mubr.f32.mxu0 %v7155_v5  ;;  %v7204_v54 = vpack.c.bf16 %v2774_v1, %v2773_v51 }
 0x399   : > { %2258 = vst [vmem:[#allocation2 + $0x69] sm:$0xff] %v2171_v62 }
 0x39a   : > { %2257 = vst [vmem:[#allocation2 + $0x61] sm:$0xff] %v2170_v61  ;;  %5069 = vmatprep.subr.bf16.mxu0 %v7204_v54 }
 0x39b   : > { %2879 = vmatmul.mubr.f32.gmra.mrb[76].mxu0 %v7128_v14 }
 0x39c   : > { %v2294_v13 = vld [vmem:[#allocation2 + $0x58] sm:$0x3] }
 0x39d   : > { %v7159_v26 = vld [vmem:[#allocation2 + $0x48] sm:$0xff]  ;;  %v7161_v4 = vld [vmem:[#allocation2 + $0x50] sm:$0xff]  ;;  %v2404_v56 = vrot.slane %v2294_v13, 1 }
 0x39e   : > { %v2401_v22 = vrot.slane %v7159_v26, 1  ;;  %v2402_v23 = vrot.slane %v7161_v4, 1 }
 0x3a0   : > { %v7166_v45 = vsel %vm2385_vm1, %v2401_v22, %v2402_v23  ;;  %v7171_v17 = vsel %vm2385_vm1, %v2402_v23, %v2404_v56  ;;  %v2297_v46 = vld [vmem:[#allocation2 + $0x70] sm:$0x3]  ;;  %v5649_v23 = vld [vmem:[%s5769_s25 + $0x68] sm:$0xff] }
 0x3a1   : > { %2883 = vmatprep.mubr.f32.mxu0 %v7166_v45  ;;  %v2295_v43 = vld [vmem:[#allocation2 + $0x60] sm:$0xff]  ;;  %v2296_v32 = vld [vmem:[#allocation2 + $0x68] sm:$0xff]  ;;  %v2409_v50 = vrot.slane %v2297_v46, 1  ;;  %v437_v56 = vmul.f32 %v5649_v23, %v7090_v44 }
 0x3a2   : > { %2884 = vmatmul.mubr.f32.gmra.mrb[78].mxu0 %v7159_v26  ;;  %v2406_v31 = vrot.slane %v2295_v43, 1  ;;  %v2407_v27 = vrot.slane %v2296_v32, 1 }
 0x3a3   : > { %v4618_v7 = vpop.f32.mrb[42].mxu0  ;;  %2888 = vmatprep.mubr.f32.mxu0 %v7171_v17 }
 0x3a4   : > { %v2051_v28 = vadd.f32 %v4618_v7, %v7095_v38  ;;  %v2045_v29 = vpop.f32.mrb[43].mxu0  ;;  %v7178_v35 = vsel %vm2385_vm1, %v2406_v31, %v2407_v27  ;;  %v7192_v47 = vsel %vm2385_vm1, %v2407_v27, %v2409_v50  ;;  %v5650_v27 = vld [vmem:[%s5769_s25 + $0x60] sm:$0xff]  ;;  %v5652_v50 = vld [vmem:[%s5769_s25 + $0x70] sm:$0xff] }
 0x3a5   : > { %v2046_v18 = vadd.f32 %v7095_v38, %v2045_v29  ;;  %v436_v7 = vmul.f32 %v5650_v27, %v7090_v44 }
 0x3a6   : > { %v2173_v42 = vadd.f32 %v2051_v28, %v433_v12  ;;  %2889 = vmatmul.mubr.f32.gmra.mrb[80].mxu0 %v7161_v4 }
 0x3a7   : > { %v2172_v10 = vadd.f32 %v2046_v18, %v432_v40  ;;  %v4621_v33 = vpop.f32.mrb[44].mxu0  ;;  %2893 = vmatprep.mubr.f32.mxu0 %v7178_v35  ;;  %v439_v40 = vmul.f32 %v5651_v63, %v7090_v44  ;;  %v5655_v63 = vld [vmem:[%s5769_s25 + $0x98] sm:$0xff] }
 0x3a8   : > { %2260 = vst [vmem:[#allocation2 + $0x81] sm:$0xff] %v2173_v42  ;;  %v2061_v48 = vadd.f32 %v4621_v33, %v7095_v38  ;;  %v2055_v37 = vpop.f32.mrb[45].mxu0 }
 0x3a9   : > { %2259 = vst [vmem:[#allocation2 + $0x79] sm:$0xff] %v2172_v10  ;;  %v2056_v60 = vadd.f32 %v7095_v38, %v2055_v37  ;;  %v438_v10 = vmul.f32 %v5652_v50, %v7090_v44 }
 0x3aa   : > { %v2175_v39 = vadd.f32 %v2061_v48, %v435_v55  ;;  %2894 = vmatmul.mubr.f32.gmra.mrb[82].mxu0 %v2295_v43 }
 0x3ab   : > { %v2174_v16 = vadd.f32 %v2056_v60, %v434_v25  ;;  %2898 = vmatprep.mubr.f32.mxu0 %v7192_v47  ;;  %v441_v25 = vmul.f32 %v5653_v36, %v7090_v44 }
 0x3ac   : > { %2262 = vst [vmem:[#allocation2 + $0x99] sm:$0xff] %v2175_v39 }
 0x3ad   : > { %2261 = vst [vmem:[#allocation2 + $0x91] sm:$0xff] %v2174_v16  ;;  %v5654_v16 = vld [vmem:[%s5769_s25 + $0x80] sm:$0xff] }
 0x3ae   : > { %2899 = vmatmul.mubr.f32.gmra.mrb[84].mxu0 %v2296_v32 }
 0x3af   : > { %v2300_v57 = vld [vmem:[#allocation2 + $0x88] sm:$0x3] }
 0x3b0   : > { %v2298_v20 = vld [vmem:[#allocation2 + $0x78] sm:$0xff]  ;;  %v2299_v3 = vld [vmem:[#allocation2 + $0x80] sm:$0xff]  ;;  %v2414_v53 = vrot.slane %v2300_v57, 1  ;;  %v440_v57 = vmul.f32 %v5654_v16, %v7090_v44 }
 0x3b1   : > { %v2411_v34 = vrot.slane %v2298_v20, 1  ;;  %v2412_v52 = vrot.slane %v2299_v3, 1 }
 0x3b3   : > { %v7202_v59 = vsel %vm2385_vm1, %v2411_v34, %v2412_v52  ;;  %v7208_v15 = vsel %vm2385_vm1, %v2412_v52, %v2414_v53  ;;  %v2303_v22 = vld [vmem:[#allocation2 + $0xa0] sm:$0x3] }
 0x3b4   : > { %2903 = vmatprep.mubr.f32.mxu0 %v7202_v59  ;;  %v2301_v24 = vld [vmem:[#allocation2 + $0x90] sm:$0xff]  ;;  %v2302_v21 = vld [vmem:[#allocation2 + $0x98] sm:$0xff]  ;;  %8288 = vst [vmem:[#allocation3_spill] sm:$0xff] %v7208_v15  ;;  %v2419_v12 = vrot.slane %v2303_v22, 1 }
 0x3b5   : > { %2904 = vmatmul.mubr.f32.gmra.mrb[86].mxu0 %v2298_v20  ;;  %v2416_v62 = vrot.slane %v2301_v24, 1  ;;  %v2417_v61 = vrot.slane %v2302_v21, 1 }
 0x3b6   : > { %v4624_v13 = vpop.f32.mrb[46].mxu0  ;;  %2908 = vmatprep.mubr.f32.mxu0 %v7208_v15 }
 0x3b7   : > { %v2071_v43 = vadd.f32 %v4624_v13, %v7095_v38  ;;  %v2065_v32 = vpop.f32.mrb[47].mxu0  ;;  %v7216_v31 = vsel %vm2385_vm1, %v2416_v62, %v2417_v61  ;;  %v7229_v55 = vsel %vm2385_vm1, %v2417_v61, %v2419_v12 }
 0x3b8   : > { %v2066_v46 = vadd.f32 %v7095_v38, %v2065_v32 }
 0x3b9   : > { %v2177_v9 = vadd.f32 %v2071_v43, %v437_v56  ;;  %2909 = vmatmul.mubr.f32.gmra.mrb[88].mxu0 %v2299_v3  ;;  %v2710_v56 = vld [vmem:[%s8255_s1 + $0x488] sm:$0xff] }
 0x3ba   : > { %v2176_v28 = vadd.f32 %v2066_v46, %v436_v7  ;;  %v4627_v29 = vpop.f32.mrb[48].mxu0  ;;  %2913 = vmatprep.mubr.f32.mxu0 %v7216_v31 }
 0x3bb   : > { %2264 = vst [vmem:[#allocation2 + $0xb1] sm:$0xff] %v2177_v9  ;;  %v2081_v18 = vadd.f32 %v4627_v29, %v7095_v38  ;;  %v2075_v42 = vpop.f32.mrb[49].mxu0  ;;  %v2711_v29 = vld [vmem:[%s8255_s1 + $0x490] sm:$0xff] }
 0x3bc   : > { %2263 = vst [vmem:[#allocation2 + $0xa9] sm:$0xff] %v2176_v28  ;;  %v2076_v33 = vadd.f32 %v7095_v38, %v2075_v42  ;;  %v5656_v42 = vld [vmem:[%s5769_s25 + $0x90] sm:$0xff] }
 0x3bd   : > { %v2179_v11 = vadd.f32 %v2081_v18, %v439_v40  ;;  %2914 = vmatmul.mubr.f32.gmra.mrb[90].mxu0 %v2301_v24  ;;  %v443_v40 = vmul.f32 %v5655_v63, %v7090_v44  ;;  %v442_v50 = vmul.f32 %v5656_v42, %v7090_v44 }
 0x3be   : > { %v2178_v48 = vadd.f32 %v2076_v33, %v438_v10  ;;  %2918 = vmatprep.mubr.f32.mxu0 %v7229_v55  ;;  %v4630_v37 = vpop.f32.mrb[50].mxu0 }
 0x3bf   : > { %2266 = vst [vmem:[#allocation2 + $0xc9] sm:$0xff] %v2179_v11  ;;  %v2091_v60 = vadd.f32 %v4630_v37, %v7095_v38  ;;  %v2085_v39 = vpop.f32.mrb[51].mxu0 }
 0x3c0   : > { %2265 = vst [vmem:[#allocation2 + $0xc1] sm:$0xff] %v2178_v48  ;;  %v2086_v20 = vadd.f32 %v7095_v38, %v2085_v39  ;;  %v2712_v48 = vld [vmem:[%s8255_s1 + $0x498] sm:$0xff] }
 0x3c1   : > { %v2181_v3 = vadd.f32 %v2091_v60, %v441_v25  ;;  %2919 = vmatmul.mubr.f32.gmra.mrb[92].mxu0 %v2302_v21  ;;  %v2709_v21 = vld [vmem:[%s8255_s1 + $0x480] sm:$0xff] }
 0x3c2   : > { %v2180_v34 = vadd.f32 %v2086_v20, %v440_v57  ;;  %v2306_v52 = vld [vmem:[#allocation2 + $0xb8] sm:$0x3]  ;;  %v4973_v28 = vpack.c.bf16 %v2710_v56, %v2709_v21 }
 0x3c3   : > { %2268 = vst [vmem:[#allocation2 + $0xe1] sm:$0xff] %v2181_v3  ;;  %v7238_v53 = vld [vmem:[#allocation2 + $0xa8] sm:$0xff]  ;;  %v7240_v51 = vld [vmem:[#allocation2 + $0xb0] sm:$0xff]  ;;  %v2424_v1 = vrot.slane %v2306_v52, 1  ;;  %v4976_v3 = vpack.c.bf16 %v2712_v48, %v2711_v29  ;;  %v2713_v52 = vld [vmem:[%s8255_s1 + $0x4a0] sm:$0xff] }
 0x3c4   : > { %2267 = vst [vmem:[#allocation2 + $0xd9] sm:$0xff] %v2180_v34  ;;  %v2421_v24 = vrot.slane %v7238_v53, 1  ;;  %v2422_v62 = vrot.slane %v7240_v51, 1 }
 0x3c6   : > { %v7245_v61 = vsel %vm2385_vm1, %v2421_v24, %v2422_v62  ;;  %v7252_v13 = vsel %vm2385_vm1, %v2422_v62, %v2424_v1  ;;  %v2309_v46 = vld [vmem:[#allocation2 + $0xd0] sm:$0x3]  ;;  %v2714_v1 = vld [vmem:[%s8255_s1 + $0x4a8] sm:$0xff] }
 0x3c7   : > { %2923 = vmatprep.mubr.f32.mxu0 %v7245_v61  ;;  %v2307_v22 = vld [vmem:[#allocation2 + $0xc0] sm:$0xff]  ;;  %v7254_v23 = vld [vmem:[#allocation2 + $0xc8] sm:$0xff]  ;;  %v2429_v36 = vrot.slane %v2309_v46, 1  ;;  %v2542_v60 = vrot.slane %v2309_v46, 2  ;;  %v4979_v63 = vpack.c.bf16 %v2714_v1, %v2713_v52 }
 0x3c8   : > { %2924 = vmatmul.mubr.f32.gmra.mrb[94].mxu0 %v7238_v53  ;;  %v2426_v43 = vrot.slane %v2307_v22, 1  ;;  %v2427_v32 = vrot.slane %v7254_v23, 1  ;;  %v2539_v27 = vrot.slane %v2307_v22, 2  ;;  %v2540_v7 = vrot.slane %v7254_v23, 2  ;;  %v5657_v62 = vld [vmem:[%s5769_s25 + $0xa8] sm:$0xff]  ;;  %v5658_v46 = vld [vmem:[%s5769_s25 + $0xa0] sm:$0xff] }
 0x3c9   : > { %2928 = vmatprep.mubr.f32.mxu0 %v7252_v13  ;;  %v445_v21 = vmul.f32 %v5657_v62, %v7090_v44  ;;  %v2720_v62 = vld [vmem:[%s8255_s1 + $0x4d8] sm:$0xff] }
 0x3ca   : > { %v4633_v9 = vpop.f32.mrb[52].mxu0  ;;  %v7264_v12 = vsel %vm2385_vm1, %v2426_v43, %v2427_v32  ;;  %v7285_v25 = vsel %vm2498_vm2, %v2539_v27, %v2540_v7  ;;  %v7300_v24 = vsel %vm2385_vm1, %v2427_v32, %v2429_v36  ;;  %v7306_v27 = vsel %vm2498_vm2, %v2540_v7, %v2542_v60  ;;  %v2715_v7 = vld [vmem:[%s8255_s1 + $0x4b0] sm:$0xff] }
 0x3cb   : > { %v2101_v18 = vadd.f32 %v4633_v9, %v7095_v38  ;;  %v2095_v10 = vpop.f32.mrb[53].mxu0  ;;  %v7274_v33 = vld [vmem:[#allocation2 + $0xd8] sm:$0xff]  ;;  %v7276_v11 = vld [vmem:[#allocation2 + $0xe0] sm:$0xff]  ;;  %v444_v9 = vmul.f32 %v5658_v46, %v7090_v44 }
 0x3cc   : > { %v2096_v37 = vadd.f32 %v7095_v38, %v2095_v10  ;;  %2929 = vmatmul.mubr.f32.gmra.mrb[96].mxu0 %v7240_v51  ;;  %3158 = vmatprep.mubr.f32.mxu1 %v7274_v33  ;;  %v2431_v57 = vrot.slane %v7274_v33, 1  ;;  %v2432_v20 = vrot.slane %v7276_v11, 1  ;;  %v2545_v10 = vrot.slane %v7276_v11, 2 }
 0x3cd   : > { %v2183_v39 = vadd.f32 %v2101_v18, %v443_v40  ;;  %2933 = vmatprep.mubr.f32.mxu0 %v7264_v12  ;;  %3159 = vmatmul.mubr.f32.vlgmr.msra.gmra.mrb[34].mxu1 %v7285_v25  ;;  %v2716_v18 = vld [vmem:[%s8255_s1 + $0x4b8] sm:$0xff] }
 0x3ce   : > { %v2182_v16 = vadd.f32 %v2096_v37, %v442_v50  ;;  %4974 = vmatpush1.bf16.msra.mxu1 %v4973_v28  ;;  %3163 = vmatprep.mubr.f32.mxu1 %v7276_v11  ;;  %v7314_v29 = vsel %vm2385_vm1, %v2431_v57, %v2432_v20  ;;  %v2544_v50 = vrot.slane %v7274_v33, 2  ;;  %v4982_v48 = vpack.c.bf16 %v2716_v18, %v2715_v7  ;;  %v2717_v37 = vld [vmem:[%s8255_s1 + $0x4c0] sm:$0xff] }
 0x3cf   : > { %2270 = vst [vmem:[#allocation2 + $0xf9] sm:$0xff] %v2183_v39  ;;  %v4636_v34 = vpop.f32.mrb[54].mxu0  ;;  %4975 = vmatprep.subr.bf16.mxu1 %v8258_v2  ;;  %v2718_v39 = vld [vmem:[%s8255_s1 + $0x4c8] sm:$0xff] }
 0x3d0   : > { %2269 = vst [vmem:[#allocation2 + $0xf1] sm:$0xff] %v2182_v16  ;;  %2934 = vmatmul.mubr.f32.gmra.mrb[98].mxu0 %v2307_v22  ;;  %v2111_v56 = vadd.f32 %v4636_v34, %v7095_v38  ;;  %v2105_v43 = vpop.f32.mrb[55].mxu0  ;;  %v2312_v22 = vld [vmem:[#allocation2 + $0xe8] sm:$0x3]  ;;  %v7341_v57 = vsel %vm2498_vm2, %v2544_v50, %v2545_v10 }
 0x3d1   : > { %2938 = vmatprep.mubr.f32.mxu0 %v7300_v24  ;;  %v2106_v28 = vadd.f32 %v7095_v38, %v2105_v43  ;;  %3164 = vmatmul.mubr.f32.gmra.mrb[36].mxu1 %v7306_v27  ;;  %v2434_v42 = vrot.slane %v2312_v22, 1 }
 0x3d2   : > { %v2185_v32 = vadd.f32 %v2111_v56, %v445_v21  ;;  %4977 = vmatpush1.bf16.msra.mxu1 %v4976_v3 }
 0x3d3   : > { %v2184_v40 = vadd.f32 %v2106_v28, %v444_v9  ;;  %4978 = vmatprep.subr.bf16.mxu1 %v8258_v2  ;;  %v7338_v16 = vsel %vm2385_vm1, %v2432_v20, %v2434_v42  ;;  %v2719_v20 = vld [vmem:[%s8255_s1 + $0x4d0] sm:$0xff] }
 0x3d4   : > { %2272 = vst [vmem:[#allocation2 + $0x111] sm:$0xff] %v2185_v32  ;;  %2939 = vmatmul.mubr.f32.gmra.mrb[100].mxu0 %v7254_v23  ;;  %v2547_v23 = vrot.slane %v2312_v22, 2  ;;  %v5660_v42 = vld [vmem:[%s5769_s25 + $0xb0] sm:$0xff] }
 0x3d5   : > { %2271 = vst [vmem:[#allocation2 + $0x109] sm:$0xff] %v2184_v40  ;;  %2943 = vmatprep.mubr.f32.mxu0 %v7314_v29  ;;  %v5659_v40 = vld [vmem:[%s5769_s25 + $0xb8] sm:$0xff]  ;;  %v446_v50 = vmul.f32 %v5660_v42, %v7090_v44 }
 0x3d6   : > { %4980 = vmatpush1.bf16.msra.mxu1 %v4979_v63  ;;  %v2315_v52 = vld [vmem:[#allocation2 + $0x100] sm:$0x3]  ;;  %v7359_v21 = vsel %vm2498_vm2, %v2545_v10, %v2547_v23  ;;  %v4988_v63 = vpack.c.bf16 %v2720_v62, %v2719_v20  ;;  %v447_v7 = vmul.f32 %v5659_v40, %v7090_v44 }
 0x3d7   : > { %v2313_v36 = vld [vmem:[#allocation2 + $0xf0] sm:$0xff]  ;;  %v7330_v60 = vld [vmem:[#allocation2 + $0xf8] sm:$0xff]  ;;  %4981 = vmatprep.subr.bf16.mxu1 %v8258_v2  ;;  %v2439_v56 = vrot.slane %v2315_v52, 1 }
 0x3d8   : > { %2944 = vmatmul.mubr.f32.gmra.mrb[102].mxu0 %v7274_v33  ;;  %3168 = vmatprep.mubr.f32.mxu1 %v2313_v36  ;;  %v2436_v3 = vrot.slane %v2313_v36, 1  ;;  %v2437_v34 = vrot.slane %v7330_v60, 1  ;;  %v4985_v33 = vpack.c.bf16 %v2718_v39, %v2717_v37  ;;  %v2549_v46 = vrot.slane %v2313_v36, 2  ;;  %v2722_v37 = vld [vmem:[%s8255_s1 + $0x4e8] sm:$0xff] }
 0x3d9   : > { %2948 = vmatprep.mubr.f32.mxu0 %v7338_v16  ;;  %3169 = vmatmul.mubr.f32.gmra.mrb[38].mxu1 %v7341_v57  ;;  %v2550_v9 = vrot.slane %v7330_v60, 2 }
 0x3da   : > { %3173 = vmatprep.mubr.f32.mxu1 %v7330_v60  ;;  %v7348_v1 = vsel %vm2385_vm1, %v2436_v3, %v2437_v34  ;;  %4983 = vmatpush1.bf16.msra.mxu1 %v4982_v48  ;;  %v2721_v48 = vld [vmem:[%s8255_s1 + $0x4e0] sm:$0xff]  ;;  %v7385_v39 = vsel %vm2385_vm1, %v2437_v34, %v2439_v56  ;;  %v5661_v56 = vld [vmem:[%s5769_s25 + $0xc8] sm:$0xff] }
 0x3db   : > { %4984 = vmatprep.subr.bf16.mxu1 %v8258_v2  ;;  %v7388_v3 = vsel %vm2498_vm2, %v2549_v46, %v2550_v9  ;;  %v2318_v62 = vld [vmem:[#allocation2 + $0x118] sm:$0x3]  ;;  %v4991_v34 = vpack.c.bf16 %v2722_v37, %v2721_v48 }
 0x3dc   : > { %2949 = vmatmul.mubr.f32.gmra.mrb[104].mxu0 %v7276_v11  ;;  %v7361_v43 = vld [vmem:[#allocation2 + $0x108] sm:$0xff]  ;;  %v7364_v28 = vld [vmem:[#allocation2 + $0x110] sm:$0xff]  ;;  %v2444_v48 = vrot.slane %v2318_v62, 1 }
 0x3dd   : > { %2953 = vmatprep.mubr.f32.mxu0 %v7348_v1  ;;  %3174 = vmatmul.mubr.f32.gmra.mrb[40].mxu1 %v7359_v21  ;;  %v2441_v11 = vrot.slane %v7361_v43, 1  ;;  %v2442_v32 = vrot.slane %v7364_v28, 1 }
 0x3de   : > { %v4639_v22 = vpop.f32.mrb[56].mxu0  ;;  %3178 = vmatprep.mubr.f32.mxu1 %v7361_v43  ;;  %4986 = vmatpush1.bf16.msra.mxu1 %v4985_v33  ;;  %v2552_v33 = vrot.slane %v2315_v52, 2  ;;  %v449_v52 = vmul.f32 %v5661_v56, %v7090_v44 }
 0x3df   : > { %v2121_v18 = vadd.f32 %v4639_v22, %v7095_v38  ;;  %v2115_v10 = vpop.f32.mrb[57].mxu0  ;;  %4987 = vmatprep.subr.bf16.mxu1 %v8258_v2 }
 0x3e0   : > { %v2116_v23 = vadd.f32 %v7095_v38, %v2115_v10  ;;  %2954 = vmatmul.mubr.f32.gmra.mrb[106].mxu0 %v2313_v36  ;;  %v7394_v36 = vsel %vm2385_vm1, %v2441_v11, %v2442_v32  ;;  %v2724_v11 = vld [vmem:[%s8255_s1 + $0x4f8] sm:$0xff]  ;;  %v7411_v10 = vsel %vm2498_vm2, %v2550_v9, %v2552_v33  ;;  %v7424_v9 = vsel %vm2385_vm1, %v2442_v32, %v2444_v48  ;;  %v2729_v48 = vld [vmem:[%s8255_s1 + $0x520] sm:$0xff] }
 0x3e1   : > { %v2187_v20 = vadd.f32 %v2121_v18, %v447_v7  ;;  %2958 = vmatprep.mubr.f32.mxu0 %v7385_v39  ;;  %3179 = vmatmul.mubr.f32.gmra.mrb[42].mxu1 %v7388_v3  ;;  %8289 = vst [vmem:[#allocation4_spill] sm:$0xff] %v7394_v36  ;;  %v2723_v18 = vld [vmem:[%s8255_s1 + $0x4f0] sm:$0xff]  ;;  %8290 = vst [vmem:[#allocation5_spill] sm:$0xff] %v7424_v9  ;;  %v2554_v33 = vrot.slane %v7361_v43, 2 }
 0x3e2   : > { %v2186_v22 = vadd.f32 %v2116_v23, %v446_v50  ;;  %v4642_v40 = vpop.f32.mrb[58].mxu0  ;;  %3183 = vmatprep.mubr.f32.mxu1 %v7364_v28  ;;  %4989 = vmatpush1.bf16.msra.mxu1 %v4988_v63  ;;  %v5662_v63 = vld [vmem:[%s5769_s25 + $0xc0] sm:$0xff] }
 0x3e3   : > { %2274 = vst [vmem:[#allocation2 + $0x129] sm:$0xff] %v2187_v20  ;;  %v2131_v46 = vadd.f32 %v4642_v40, %v7095_v38  ;;  %v2125_v7 = vpop.f32.mrb[59].mxu0  ;;  %4990 = vmatprep.subr.bf16.mxu1 %v8258_v2  ;;  %v448_v42 = vmul.f32 %v5662_v63, %v7090_v44  ;;  %v4994_v20 = vpack.c.bf16 %v2724_v11, %v2723_v18  ;;  %v2555_v40 = vrot.slane %v7364_v28, 2 }
 0x3e4   : > { %2273 = vst [vmem:[#allocation2 + $0x121] sm:$0xff] %v2186_v22  ;;  %v2126_v50 = vadd.f32 %v7095_v38, %v2125_v7  ;;  %2959 = vmatmul.mubr.f32.gmra.mrb[108].mxu0 %v7330_v60  ;;  %v2725_v22 = vld [vmem:[%s8255_s1 + $0x500] sm:$0xff]  ;;  %v2726_v60 = vld [vmem:[%s8255_s1 + $0x508] sm:$0xff]  ;;  %v2557_v18 = vrot.slane %v2318_v62, 2 }
 0x3e5   : > { %v2189_v37 = vadd.f32 %v2131_v46, %v449_v52  ;;  %2963 = vmatprep.mubr.f32.mxu0 %v7394_v36  ;;  %3184 = vmatmul.mubr.f32.gmra.mrb[44].mxu1 %v7411_v10  ;;  %v4997_v56 = vpack.c.bf16 %v2726_v60, %v2725_v22  ;;  %v2727_v52 = vld [vmem:[%s8255_s1 + $0x510] sm:$0xff]  ;;  %v7441_v32 = vsel %vm2498_vm2, %v2554_v33, %v2555_v40  ;;  %v2730_v22 = vld [vmem:[%s8255_s1 + $0x528] sm:$0xff]  ;;  %v8295_v36 = vmov 0.0|0.0  }
 0x3e6   : > { %v2188_v23 = vadd.f32 %v2126_v50, %v448_v42  ;;  %4992 = vmatpush1.bf16.msra.mxu1 %v4991_v34  ;;  %8291 = vst [vmem:[#allocation6_spill] sm:$0xff] %v7441_v32 }
 0x3e7   : > { %2276 = vst [vmem:[#allocation2 + $0x141] sm:$0xff] %v2189_v37  ;;  %4993 = vmatprep.subr.bf16.mxu1 %v8258_v2 }
 0x3e8   : > { %2275 = vst [vmem:[#allocation2 + $0x139] sm:$0xff] %v2188_v23  ;;  %2964 = vmatmul.mubr.f32.gmra.mrb[110].mxu0 %v7361_v43  ;;  %v2728_v43 = vld [vmem:[%s8255_s1 + $0x518] sm:$0xff] }
 0x3e9   : > { %2968 = vmatprep.mubr.f32.mxu0 %v7424_v9  ;;  %v5000_v50 = vpack.c.bf16 %v2728_v43, %v2727_v52 }
 0x3ea   : > { %4995 = vmatpush1.bf16.msra.mxu1 %v4994_v20  ;;  %v7429_v34 = vld [vmem:[#allocation2 + $0x130] sm:$0x3] }
 0x3eb   : > { %v2319_v46 = vld [vmem:[#allocation2 + $0x120] sm:$0xff]  ;;  %v7434_v7 = vld [vmem:[#allocation2 + $0x128] sm:$0xff]  ;;  %4996 = vmatprep.subr.bf16.mxu1 %v8258_v2  ;;  %v2449_v42 = vrot.slane %v7429_v34, 1 }
 0x3ec   : > { %3188 = vmatprep.mubr.f32.mxu1 %v2319_v46  ;;  %2969 = vmatmul.mubr.f32.gmra.mrb[112].mxu0 %v7364_v28  ;;  %v2446_v11 = vrot.slane %v2319_v46, 1  ;;  %v2447_v63 = vrot.slane %v7434_v7, 1  ;;  %v7456_v28 = vsel %vm2498_vm2, %v2555_v40, %v2557_v18  ;;  %v2559_v23 = vrot.slane %v2319_v46, 2  ;;  %v5663_v18 = vld [vmem:[%s5769_s25 + $0xd8] sm:$0xff] }
 0x3ed   : > { %3189 = vmatmul.mubr.f32.gmra.mrb[46].mxu1 %v7441_v32  ;;  %8293 = vst [vmem:[#allocation8_spill] sm:$0xff] %v7456_v28  ;;  %v451_v43 = vmul.f32 %v5663_v18, %v7090_v44 }
 0x3ee   : > { %3193 = vmatprep.mubr.f32.mxu1 %v7434_v7  ;;  %v7449_v62 = vsel %vm2385_vm1, %v2446_v11, %v2447_v63  ;;  %4998 = vmatpush1.bf16.msra.mxu1 %v4997_v56  ;;  %v7467_v33 = vsel %vm2385_vm1, %v2447_v63, %v2449_v42  ;;  %v2560_v56 = vrot.slane %v7434_v7, 2 }
 0x3ef   : > { %8292 = vst [vmem:[#allocation7_spill] sm:$0xff] %v7449_v62  ;;  %2973 = vmatprep.mubr.f32.mxu0 %v7449_v62  ;;  %v7458_v37 = vld [vmem:[#allocation2 + $0x138] sm:$0xff]  ;;  %v7460_v20 = vld [vmem:[#allocation2 + $0x140] sm:$0xff]  ;;  %4999 = vmatprep.subr.bf16.mxu1 %v8258_v2  ;;  %8294 = vst [vmem:[#allocation9_spill] sm:$0xff] %v7467_v33 }
 0x3f0   : > { %v4645_v60 = vpop.f32.mrb[60].mxu0  ;;  %2974 = vmatmul.mubr.f32.gmra.mrb[114].mxu0 %v2319_v46  ;;  %v2451_v40 = vrot.slane %v7458_v37, 1  ;;  %v2452_v52 = vrot.slane %v7460_v20, 1  ;;  %v5664_v2 = vld [vmem:[%s5769_s25 + $0xd0] sm:$0xff]  ;;  %v7479_v46 = vld [vmem:[#allocation2 + $0x148] sm:$0x3] }
 0x3f1   : > { %v2141_v11 = vadd.f32 %v4645_v60, %v7095_v38  ;;  %v450_v62 = vmul.f32 %v5664_v2, %v7090_v44  ;;  %v2135_v9 = vpop.f32.mrb[61].mxu0  ;;  %3194 = vmatmul.mubr.f32.gmra.mrb[48].mxu1 %v7456_v28  ;;  %2978 = vmatprep.mubr.f32.mxu0 %v7467_v33  ;;  %v5003_v60 = vpack.c.bf16 %v2730_v22, %v2729_v48  ;;  %v2731_v2 = vld [vmem:[%s8255_s1 + $0x530] sm:$0xff]  ;;  %v2732_v33 = vld [vmem:[%s8255_s1 + $0x538] sm:$0xff]  ;;  %v2454_v48 = vrot.slane %v7479_v46, 1  ;;  %v5665_v22 = vld [vmem:[%s5769_s25 + $0xe8] sm:$0xff] }
 0x3f2   : > { %v2136_v63 = vadd.f32 %v7095_v38, %v2135_v9  ;;  %3198 = vmatprep.mubr.f32.mxu1 %v7458_v37  ;;  %v7484_v42 = vsel %vm2385_vm1, %v2451_v40, %v2452_v52  ;;  %5001 = vmatpush1.bf16.msra.mxu1 %v5000_v50  ;;  %v7494_v28 = vsel %vm2498_vm2, %v2559_v23, %v2560_v56  ;;  %v2562_v50 = vrot.slane %v7429_v34, 2 }
 0x3f3   : > { %v2191_v18 = vadd.f32 %v2141_v11, %v451_v43  ;;  %5002 = vmatprep.subr.bf16.mxu1 %v8295_v36  ;;  %v453_v43 = vmul.f32 %v5665_v22, %v7090_v44  ;;  %v5006_v23 = vpack.c.bf16 %v2732_v33, %v2731_v2 }
 0x3f4   : > { %v2190_v9 = vadd.f32 %v2136_v63, %v450_v62  ;;  %v4648_v40 = vpop.f32.mrb[62].mxu0  ;;  %2979 = vmatmul.mubr.f32.gmra.mrb[116].mxu0 %v7434_v7  ;;  %v5666_v62 = vld [vmem:[%s5769_s25 + $0xe0] sm:$0xff]  ;;  %v7516_v22 = vsel %vm2498_vm2, %v2560_v56, %v2562_v50 }
 0x3f5   : > { %2278 = vst [vmem:[#allocation2 + $0x159] sm:$0xff] %v2191_v18  ;;  %3199 = vmatmul.mubr.f32.gmra.mrb[50].mxu1 %v7494_v28  ;;  %v2151_v11 = vadd.f32 %v4648_v40, %v7095_v38  ;;  %v2145_v32 = vpop.f32.mrb[63].mxu0  ;;  %2983 = vmatprep.mubr.f32.mxu0 %v7484_v42  ;;  %v452_v7 = vmul.f32 %v5666_v62, %v7090_v44  ;;  %v2733_v18 = vld [vmem:[%s8255_s1 + $0x540] sm:$0xff]  ;;  %v2564_v62 = vrot.slane %v7458_v37, 2 }
 0x3f6   : > { %2277 = vst [vmem:[#allocation2 + $0x151] sm:$0xff] %v2190_v9  ;;  %3203 = vmatprep.mubr.f32.mxu1 %v7460_v20  ;;  %v2146_v34 = vadd.f32 %v7095_v38, %v2145_v32  ;;  %5004 = vmatpush1.bf16.msra.mxu1 %v5003_v60  ;;  %v2734_v9 = vld [vmem:[%s8255_s1 + $0x548] sm:$0xff]  ;;  %v7520_v32 = vsel %vm2385_vm1, %v2452_v52, %v2454_v48  ;;  %v5667_v60 = vld [vmem:[%s5769_s25 + $0xf8] sm:$0xff]  ;;  %v2565_v52 = vrot.slane %v7460_v20, 2 }
 0x3f7   : > { %v2193_v63 = vadd.f32 %v2151_v11, %v453_v43  ;;  %5005 = vmatprep.subr.bf16.mxu1 %v8295_v36  ;;  %v455_v2 = vmul.f32 %v5667_v60, %v7090_v44  ;;  %v5668_v11 = vld [vmem:[%s5769_s25 + $0xf0] sm:$0xff] }
 0x3f8   : > { %v2192_v40 = vadd.f32 %v2146_v34, %v452_v7  ;;  %2984 = vmatmul.mubr.f32.gmra.mrb[118].mxu0 %v7458_v37  ;;  %v4651_v33 = vpop.f32.mrb[64].mxu0  ;;  %v454_v56 = vmul.f32 %v5668_v11, %v7090_v44  ;;  %v5009_v7 = vpack.c.bf16 %v2734_v9, %v2733_v18  ;;  %v2735_v34 = vld [vmem:[%s8255_s1 + $0x550] sm:$0xff]  ;;  %v7547_v9 = vsel %vm2498_vm2, %v2564_v62, %v2565_v52 }
 0x3f9   : > { %2280 = vst [vmem:[#allocation2 + $0x171] sm:$0xff] %v2193_v63  ;;  %3204 = vmatmul.mubr.f32.gmra.mrb[52].mxu1 %v7516_v22  ;;  %2988 = vmatprep.mubr.f32.mxu0 %v7520_v32  ;;  %v2161_v43 = vadd.f32 %v4651_v33, %v7095_v38  ;;  %v2155_v50 = vpop.f32.mrb[65].mxu0  ;;  %v2736_v63 = vld [vmem:[%s8255_s1 + $0x558] sm:$0xff] }
 0x3fa   : > { %2279 = vst [vmem:[#allocation2 + $0x169] sm:$0xff] %v2192_v40  ;;  %v2156_v48 = vadd.f32 %v7095_v38, %v2155_v50  ;;  %5007 = vmatpush1.bf16.msra.mxu1 %v5006_v23  ;;  %v2567_v23 = vrot.slane %v7479_v46, 2  ;;  %v5012_v18 = vpack.c.bf16 %v2736_v63, %v2735_v34  ;;  %v2738_v46 = vld [vmem:[%s8255_s1 + $0x568] sm:$0xff] }
 0x3fb   : > { %v2195_v33 = vadd.f32 %v2161_v43, %v455_v2  ;;  %5008 = vmatprep.subr.bf16.mxu1 %v8295_v36  ;;  %v2737_v43 = vld [vmem:[%s8255_s1 + $0x560] sm:$0xff] }
 0x3fc   : > { %v2194_v44 = vadd.f32 %v2156_v48, %v454_v56  ;;  %2989 = vmatmul.mubr.f32.gmra.mrb[120].mxu0 %v7460_v20  ;;  %v2327_v37 = vld [vmem:[#allocation2 + $0x160] sm:$0x3]  ;;  %v7565_v56 = vsel %vm2498_vm2, %v2565_v52, %v2567_v23  ;;  %v2739_v23 = vld [vmem:[%s8255_s1 + $0x570] sm:$0xff] }
 0x3fd   : > { %v7540_v40 = vld [vmem:[#allocation2 + $0x150] sm:$0xff]  ;;  %2282 = vst [vmem:[#allocation2 + $0x189] sm:$0xff] %v2195_v33  ;;  %v7542_v38 = vld [vmem:[#allocation2 + $0x158] sm:$0xff]  ;;  %v2459_v20 = vrot.slane %v2327_v37, 1 }
 0x3fe   : > { %8296 = vst [vmem:[#allocation10_spill] sm:$0xff] %v7540_v40  ;;  %8297 = vst [vmem:[#allocation11_spill] sm:$0xff] %v7542_v38  ;;  %3208 = vmatprep.mubr.f32.mxu1 %v7540_v40  ;;  %v2456_v60 = vrot.slane %v7540_v40, 1  ;;  %v2457_v2 = vrot.slane %v7542_v38, 1  ;;  %5010 = vmatpush1.bf16.msra.mxu1 %v5009_v7  ;;  %v2569_v62 = vrot.slane %v7540_v40, 2  ;;  %v5015_v7 = vpack.c.bf16 %v2738_v46, %v2737_v43 }
 0x3ff   : > { %2281 = vst [vmem:[#allocation2 + $0x181] sm:$0xff] %v2194_v44  ;;  %3209 = vmatmul.mubr.f32.gmra.mrb[54].mxu1 %v7547_v9  ;;  %5011 = vmatprep.subr.bf16.mxu1 %v8295_v36  ;;  %v2570_v63 = vrot.slane %v7542_v38, 2 }
 0x400   : > { %3213 = vmatprep.mubr.f32.mxu1 %v7542_v38  ;;  %v7561_v11 = vsel %vm2385_vm1, %v2456_v60, %v2457_v2  ;;  %v7574_v34 = vsel %vm2385_vm1, %v2457_v2, %v2459_v20  ;;  %v2330_v52 = vld [vmem:[#allocation2 + $0x178] sm:$0x3]  ;;  %v2572_v20 = vrot.slane %v2327_v37, 2 }
 0x401   : > { %2993 = vmatprep.mubr.f32.mxu0 %v7561_v11  ;;  %v7567_v50 = vld [vmem:[#allocation2 + $0x168] sm:$0xff]  ;;  %v7570_v48 = vld [vmem:[#allocation2 + $0x170] sm:$0xff]  ;;  %v2740_v60 = vld [vmem:[%s8255_s1 + $0x578] sm:$0xff]  ;;  %v2464_v43 = vrot.slane %v2330_v52, 1 }
 0x402   : > { %8298 = vst [vmem:[#allocation12_spill] sm:$0xff] %v7567_v50  ;;  %8299 = vst [vmem:[#allocation13_spill] sm:$0xff] %v7570_v48  ;;  %2994 = vmatmul.mubr.f32.gmra.mrb[122].mxu0 %v7540_v40  ;;  %v2461_v33 = vrot.slane %v7567_v50, 1  ;;  %v2462_v44 = vrot.slane %v7570_v48, 1  ;;  %5013 = vmatpush1.bf16.msra.mxu1 %v5012_v18  ;;  %v7593_v18 = vsel %vm2498_vm2, %v2569_v62, %v2570_v63  ;;  %v2574_v62 = vrot.slane %v7567_v50, 2 }
 0x403   : > { %3214 = vmatmul.mubr.f32.gmra.mrb[56].mxu1 %v7565_v56  ;;  %2998 = vmatprep.mubr.f32.mxu0 %v7574_v34  ;;  %v5018_v46 = vpack.c.bf16 %v2740_v60, %v2739_v23  ;;  %v7603_v40 = vsel %vm2498_vm2, %v2570_v63, %v2572_v20  ;;  %v7613_v23 = vld [vmem:[#allocation2] sm:$0xff]  ;;  %v2775_v20 = vld [vmem:[%s8255_s1 + $0x690] sm:$0xff] }
 0x404   : > { %3218 = vmatprep.mubr.f32.mxu1 %v7567_v50  ;;  %v7589_v2 = vsel %vm2385_vm1, %v2461_v33, %v2462_v44  ;;  %5014 = vmatprep.subr.bf16.mxu1 %v8295_v36  ;;  %v7607_v37 = vsel %vm2385_vm1, %v2462_v44, %v2464_v43  ;;  %8302 = vst [vmem:[#allocation16_spill] sm:$0xff] %v7613_v23  ;;  %v7616_v60 = vrot.slane %v7613_v23, 2  ;;  %v2577_v44 = vrot.slane %v2330_v52, 2  ;;  %v2776_v43 = vld [vmem:[%s8255_s1 + $0x698] sm:$0xff] }
 0x405   : > { %8300 = vst [vmem:[#allocation14_spill] sm:$0xff] %v7589_v2  ;;  %8301 = vst [vmem:[#allocation15_spill] sm:$0xff] %v7607_v37  ;;  %v2505_v23 = vrot.slane %v7113_v19, 2 }
 0x406   : > { %2999 = vmatmul.mubr.f32.gmra.mrb[124].mxu0 %v7542_v38  ;;  %5016 = vmatpush1.bf16.msra.mxu1 %v5015_v7  ;;  %v7600_v33 = vld [vmem:[#allocation2 + $0x180] sm:$0xff]  ;;  %v2575_v7 = vrot.slane %v7570_v48, 2  ;;  %v2742_v38 = vld [vmem:[%s8255_s1 + $0x588] sm:$0xff] }
 0x407   : > { %3219 = vmatmul.mubr.f32.gmra.mrb[58].mxu1 %v7593_v18  ;;  %3003 = vmatprep.mubr.f32.mxu0 %v7589_v2 }
 0x408   : > { %3223 = vmatprep.mubr.f32.mxu1 %v7570_v48  ;;  %5017 = vmatprep.subr.bf16.mxu1 %v8295_v36  ;;  %v7621_v63 = vsel %vm2498_vm2, %v2574_v62, %v2575_v7  ;;  %v2504_v62 = vrot.slane %v7111_v58, 2  ;;  %v7644_v2 = vsel %vm2498_vm2, %v2575_v7, %v2577_v44  ;;  %v2778_v7 = vld [vmem:[%s8255_s1 + $0x6a8] sm:$0xff] }
 0x409   : > { %8303 = vst [vmem:[#allocation17_spill] sm:$0xff] %v7621_v63 }
 0x40a   : > { %3004 = vmatmul.mubr.f32.gmra.mrb[126].mxu0 %v7567_v50  ;;  %5019 = vmatpush1.bf16.msra.mxu1 %v5018_v46  ;;  %v7631_v46 = vld [vmem:[#allocation2 + $0x188] sm:$0xff]  ;;  %v2741_v50 = vld [vmem:[%s8255_s1 + $0x580] sm:$0xff] }
 0x40b   : > { %3224 = vmatmul.mubr.f32.gmra.mrb[60].mxu1 %v7603_v40  ;;  %3008 = vmatprep.mubr.f32.mxu0 %v7607_v37  ;;  %v5072_v37 = vpack.c.bf16 %v2776_v43, %v2775_v20  ;;  %v2777_v20 = vld [vmem:[%s8255_s1 + $0x6a0] sm:$0xff]  ;;  %v5021_v44 = vpack.c.bf16 %v2742_v38, %v2741_v50  ;;  %v2509_v38 = vrot.slane %v7126_v41, 2  ;;  %v2779_v50 = vld [vmem:[%s8255_s1 + $0x6b0] sm:$0xff] }
 0x40c   : > { %3228 = vmatprep.mubr.f32.mxu1 %v7600_v33  ;;  %5020 = vmatprep.subr.bf16.mxu1 %v8295_v36  ;;  %v5076_v43 = vpack.c.bf16 %v2778_v7, %v2777_v20  ;;  %v2512_v20 = vrot.slane %v7133_v0, 2  ;;  %v2781_v7 = vld [vmem:[%s8255_s1 + $0x6c0] sm:$0xff]  ;;  %v2748_v0 = vld [vmem:[%s8255_s1 + $0x5b8] sm:$0xff] }
 0x40e   : > { %3009 = vmatmul.mubr.f32.gmra.mrb[128].mxu0 %v7570_v48  ;;  %v5670_v48 = vld [vmem:[#allocation2 + $0x10] sm:$0x3] }
 0x40f   : > { %3229 = vmatmul.mubr.f32.gmra.mrb[62].mxu1 %v7621_v63  ;;  %3078 = vmatprep.mubr.f32.mxu0 %v7111_v58  ;;  %v2502_v52 = vrot.slane %v5670_v48, 2  ;;  %v2506_v58 = vsel %vm2498_vm2, %v2504_v62, %v2505_v23  ;;  %v2507_v48 = vrot.slane %v7109_v8, 2  ;;  %v2744_v8 = vld [vmem:[%s8255_s1 + $0x598] sm:$0xff] }
 0x410   : > { %3233 = vmatprep.mubr.f32.mxu1 %v7631_v46 }
 0x411   : > { %v2503_v63 = vsel %vm2498_vm2, %v7616_v60, %v2502_v52  ;;  %v2508_v62 = vsel %vm2498_vm2, %v2505_v23, %v2507_v48  ;;  %v2780_v52 = vld [vmem:[%s8255_s1 + $0x6b8] sm:$0xff] }
 0x412   : > { %3079 = vmatmul.mubr.f32.vlgmr.msra.gmra.mrb[66].mxu0 %v7616_v60  ;;  %v7688_v48 = vld [vmem:[#allocation2 + $0x38] sm:$0xff] }
 0x413   : > { %3234 = vmatmul.mubr.f32.gmra.mrb[64].mxu1 %v7644_v2  ;;  %3083 = vmatprep.mubr.f32.mxu0 %v7113_v19  ;;  %v2743_v19 = vld [vmem:[%s8255_s1 + $0x590] sm:$0xff] }
 0x414   : > { %3303 = vmatprep.mubr.f32.mxu1 %v2506_v58  ;;  %5071 = vmatpush3.bf16.msra.mxu0 %v7204_v54  ;;  %v2510_v54 = vrot.slane %v7128_v14, 2  ;;  %v5080_v14 = vpack.c.bf16 %v2780_v52, %v2779_v50  ;;  %v2783_v50 = vld [vmem:[%s8255_s1 + $0x6d0] sm:$0xff] }
 0x415   : > { %5073 = vmatprep.subr.bf16.mxu0 %v5072_v37 }
 0x416   : > { %3084 = vmatmul.mubr.f32.gmra.mrb[68].mxu0 %v2503_v63  ;;  %v5024_v63 = vpack.c.bf16 %v2744_v8, %v2743_v19  ;;  %v7686_v23 = vsel %vm2498_vm2, %v2509_v38, %v2510_v54  ;;  %v7708_v19 = vsel %vm2498_vm2, %v2510_v54, %v2512_v20  ;;  %v2514_v8 = vrot.slane %v7159_v26, 2  ;;  %v2750_v54 = vld [vmem:[%s8255_s1 + $0x5c8] sm:$0xff]  ;;  %v2785_v20 = vld [vmem:[%s8255_s1 + $0x6e0] sm:$0xff] }
 0x417   : > { %3304 = vmatmul.mubr.f32.vlgmr.msra.gmra.mrb[66].mxu1 %v7119_v49  ;;  %3088 = vmatprep.mubr.f32.mxu0 %v7126_v41  ;;  %v2745_v49 = vld [vmem:[%s8255_s1 + $0x5a0] sm:$0xff]  ;;  %v2746_v41 = vld [vmem:[%s8255_s1 + $0x5a8] sm:$0xff]  ;;  %v2515_v38 = vrot.slane %v7161_v4, 2 }
 0x418   : > { %5022 = vmatpush1.bf16.msra.mxu1 %v5021_v44  ;;  %3308 = vmatprep.mubr.f32.mxu1 %v2508_v62 }
 0x419   : > { %5023 = vmatprep.subr.bf16.mxu1 %v8295_v36  ;;  %5075 = vmatpush3.bf16.msra.mxu0 %v5072_v37  ;;  %v2782_v37 = vld [vmem:[%s8255_s1 + $0x6c8] sm:$0xff] }
 0x41a   : > { %3089 = vmatmul.mubr.f32.gmra.mrb[70].mxu0 %v2506_v58  ;;  %5077 = vmatprep.subr.bf16.mxu0 %v5076_v43  ;;  %v2747_v58 = vld [vmem:[%s8255_s1 + $0x5b0] sm:$0xff]  ;;  %v5084_v44 = vpack.c.bf16 %v2782_v37, %v2781_v7  ;;  %v2752_v37 = vld [vmem:[%s8255_s1 + $0x5d8] sm:$0xff] }
 0x41b   : > { %3309 = vmatmul.mubr.f32.gmra.mrb[68].mxu1 %v7124_v30  ;;  %3093 = vmatprep.mubr.f32.mxu0 %v7688_v48  ;;  %v5027_v30 = vpack.c.bf16 %v2746_v41, %v2745_v49  ;;  %v5672_v49 = vld [vmem:[#allocation2 + $0x58] sm:$0x3] }
 0x41c   : > { %3313 = vmatprep.mubr.f32.mxu1 %v7686_v23  ;;  %5025 = vmatpush1.bf16.msra.mxu1 %v5024_v63  ;;  %v7730_v63 = vsel %vm2498_vm2, %v2514_v8, %v2515_v38  ;;  %v2517_v41 = vrot.slane %v5672_v49, 2 }
 0x41d   : > { %5026 = vmatprep.subr.bf16.mxu1 %v8295_v36  ;;  %5079 = vmatpush3.bf16.msra.mxu0 %v5076_v43  ;;  %v2784_v43 = vld [vmem:[%s8255_s1 + $0x6d8] sm:$0xff] }
 0x41e   : > { %3094 = vmatmul.mubr.f32.gmra.mrb[72].mxu0 %v2508_v62  ;;  %5081 = vmatprep.subr.bf16.mxu0 %v5080_v14  ;;  %v5030_v62 = vpack.c.bf16 %v2748_v0, %v2747_v58  ;;  %v5088_v52 = vpack.c.bf16 %v2784_v43, %v2783_v50  ;;  %v7750_v58 = vsel %vm2498_vm2, %v2515_v38, %v2517_v41  ;;  %v7752_v0 = vld [vmem:[#allocation2 + $0x60] sm:$0xff]  ;;  %v7756_v50 = vld [vmem:[#allocation2 + $0x68] sm:$0xff] }
 0x41f   : > { %3314 = vmatmul.mubr.f32.gmra.mrb[70].mxu1 %v7142_v6  ;;  %3098 = vmatprep.mubr.f32.mxu0 %v7159_v26  ;;  %v2749_v26 = vld [vmem:[%s8255_s1 + $0x5c0] sm:$0xff]  ;;  %v2519_v8 = vrot.slane %v7752_v0, 2  ;;  %v2520_v43 = vrot.slane %v7756_v50, 2 }
 0x420   : > { %3318 = vmatprep.mubr.f32.mxu1 %v7708_v19  ;;  %5028 = vmatpush1.bf16.msra.mxu1 %v5027_v30  ;;  %v5033_v7 = vpack.c.bf16 %v2750_v54, %v2749_v26  ;;  %v2753_v26 = vld [vmem:[%s8255_s1 + $0x5e0] sm:$0xff]  ;;  %v2754_v54 = vld [vmem:[%s8255_s1 + $0x5e8] sm:$0xff] }
 0x421   : > { %5029 = vmatprep.subr.bf16.mxu1 %v8295_v36  ;;  %5083 = vmatpush3.bf16.msra.mxu0 %v5080_v14  ;;  %v2786_v14 = vld [vmem:[%s8255_s1 + $0x6e8] sm:$0xff]  ;;  %v7776_v41 = vsel %vm2498_vm2, %v2519_v8, %v2520_v43  ;;  %v7792_v8 = vld [vmem:[#allocation2 + $0x78] sm:$0xff] }
 0x422   : > { %3099 = vmatmul.mubr.f32.gmra.mrb[74].mxu0 %v7686_v23  ;;  %5085 = vmatprep.subr.bf16.mxu0 %v5084_v44  ;;  %v5092_v30 = vpack.c.bf16 %v2786_v14, %v2785_v20  ;;  %v5675_v20 = vld [vmem:[#allocation2 + $0x70] sm:$0x3] }
 0x423   : > { %3319 = vmatmul.mubr.f32.gmra.mrb[72].mxu1 %v7155_v5  ;;  %3103 = vmatprep.mubr.f32.mxu0 %v7161_v4  ;;  %v2751_v4 = vld [vmem:[%s8255_s1 + $0x5d0] sm:$0xff]  ;;  %v2522_v14 = vrot.slane %v5675_v20, 2  ;;  %v5678_v20 = vld [vmem:[#allocation2 + $0x88] sm:$0x3] }
 0x424   : > { %3323 = vmatprep.mubr.f32.mxu1 %v7730_v63  ;;  %5031 = vmatpush1.bf16.msra.mxu1 %v5030_v62  ;;  %v2788_v62 = vld [vmem:[%s8255_s1 + $0x6f8] sm:$0xff]  ;;  %v5036_v38 = vpack.c.bf16 %v2752_v37, %v2751_v4 }
 0x425   : > { %5032 = vmatprep.subr.bf16.mxu1 %v8295_v36  ;;  %5087 = vmatpush3.bf16.msra.mxu0 %v5084_v44  ;;  %v2787_v44 = vld [vmem:[%s8255_s1 + $0x6f0] sm:$0xff]  ;;  %v2756_v4 = vld [vmem:[%s8255_s1 + $0x5f8] sm:$0xff]  ;;  %v7790_v37 = vsel %vm2498_vm2, %v2520_v43, %v2522_v14  ;;  %v2757_v43 = vld [vmem:[%s8255_s1 + $0x600] sm:$0xff]  ;;  %v2527_v14 = vrot.slane %v5678_v20, 2 }
 0x426   : > { %3104 = vmatmul.mubr.f32.gmra.mrb[76].mxu0 %v7708_v19  ;;  %5089 = vmatprep.subr.bf16.mxu0 %v5088_v52  ;;  %v5096_v49 = vpack.c.bf16 %v2788_v62, %v2787_v44  ;;  %v7796_v44 = vld [vmem:[#allocation2 + $0x80] sm:$0xff] }
 0x427   : > { %3324 = vmatmul.mubr.f32.gmra.mrb[74].mxu1 %v7166_v45  ;;  %3108 = vmatprep.mubr.f32.mxu0 %v7752_v0  ;;  %8304 = vst [vmem:[#allocation18_spill] sm:$0xff] %v7796_v44  ;;  %v2525_v62 = vrot.slane %v7796_v44, 2 }
 0x428   : > { %3328 = vmatprep.mubr.f32.mxu1 %v7750_v58  ;;  %5034 = vmatpush1.bf16.msra.mxu1 %v5033_v7  ;;  %v5039_v7 = vpack.c.bf16 %v2754_v54, %v2753_v26  ;;  %v2758_v26 = vld [vmem:[%s8255_s1 + $0x608] sm:$0xff] }
 0x429   : > { %5035 = vmatprep.subr.bf16.mxu1 %v8295_v36  ;;  %5091 = vmatpush3.bf16.msra.mxu0 %v5088_v52  ;;  %v2755_v52 = vld [vmem:[%s8255_s1 + $0x5f0] sm:$0xff] }
 0x42a   : > { %3109 = vmatmul.mubr.f32.gmra.mrb[78].mxu0 %v7730_v63  ;;  %5093 = vmatprep.subr.bf16.mxu0 %v5092_v30 }
 0x42b   : > { %3329 = vmatmul.mubr.f32.gmra.mrb[76].mxu1 %v7171_v17  ;;  %3113 = vmatprep.mubr.f32.mxu0 %v7756_v50 }
 0x42c   : > { %3333 = vmatprep.mubr.f32.mxu1 %v7776_v41  ;;  %5037 = vmatpush1.bf16.msra.mxu1 %v5036_v38  ;;  %v5042_v38 = vpack.c.bf16 %v2756_v4, %v2755_v52  ;;  %v2760_v52 = vld [vmem:[%s8255_s1 + $0x618] sm:$0xff]  ;;  %v7824_v4 = vsel %vm2498_vm2, %v2525_v62, %v2527_v14  ;;  %v2762_v14 = vld [vmem:[%s8255_s1 + $0x628] sm:$0xff] }
 0x42d   : > { %5038 = vmatprep.subr.bf16.mxu1 %v8295_v36  ;;  %5095 = vmatpush3.bf16.msra.mxu0 %v5092_v30  ;;  %v2524_v30 = vrot.slane %v7792_v8, 2 }
 0x42e   : > { %3114 = vmatmul.mubr.f32.gmra.mrb[80].mxu0 %v7750_v58  ;;  %5097 = vmatprep.subr.bf16.mxu0 %v5096_v49 }
 0x42f   : > { %3334 = vmatmul.mubr.f32.gmra.mrb[78].mxu1 %v7178_v35  ;;  %3118 = vmatprep.mubr.f32.mxu0 %v7792_v8  ;;  %v7810_v54 = vsel %vm2498_vm2, %v2524_v30, %v2525_v62  ;;  %v7826_v30 = vld [vmem:[#allocation2 + $0x90] sm:$0xff]  ;;  %v2761_v62 = vld [vmem:[%s8255_s1 + $0x620] sm:$0xff] }
 0x430   : > { %3338 = vmatprep.mubr.f32.mxu1 %v7790_v37  ;;  %5040 = vmatpush1.bf16.msra.mxu1 %v5039_v7  ;;  %v2759_v7 = vld [vmem:[%s8255_s1 + $0x610] sm:$0xff]  ;;  %8305 = vst [vmem:[#allocation19_spill] sm:$0xff] %v7826_v30 }
 0x431   : > { %5041 = vmatprep.subr.bf16.mxu1 %v8295_v36  ;;  %5099 = vmatpush3.bf16.msra.mxu0 %v5096_v49  ;;  %v5045_v49 = vpack.c.bf16 %v2758_v26, %v2757_v43  ;;  %v7830_v43 = vld [vmem:[#allocation2 + $0x98] sm:$0xff]  ;;  %v5048_v20 = vpack.c.bf16 %v2760_v52, %v2759_v7  ;;  %v5051_v52 = vpack.c.bf16 %v2762_v14, %v2761_v62  ;;  %v2535_v62 = vrot.slane %v7240_v51, 2  ;;  %v7874_v51 = vld [vmem:[#allocation2 + $0xb0] sm:$0xff] }
 0x432   : > { %3119 = vmatmul.mubr.f32.gmra.mrb[82].mxu0 %v7776_v41  ;;  %8306 = vst [vmem:[#allocation20_spill] sm:$0xff] %v7830_v43  ;;  %v2530_v26 = vrot.slane %v7830_v43, 2 }
 0x433   : > { %3339 = vmatmul.mubr.f32.gmra.mrb[80].mxu1 %v7192_v47  ;;  %3123 = vmatprep.mubr.f32.mxu0 %v7796_v44  ;;  %v2763_v44 = vld [vmem:[%s8255_s1 + $0x630] sm:$0xff] }
 0x434   : > { %3343 = vmatprep.mubr.f32.mxu1 %v7810_v54  ;;  %5043 = vmatpush1.bf16.msra.mxu1 %v5042_v38  ;;  %v2529_v38 = vrot.slane %v7826_v30, 2 }
 0x435   : > { %5044 = vmatprep.subr.bf16.mxu1 %v8295_v36 }
 0x436   : > { %3124 = vmatmul.mubr.f32.gmra.mrb[84].mxu0 %v7790_v37 }
 0x437   : > { %3344 = vmatmul.mubr.f32.gmra.mrb[82].mxu1 %v7202_v59  ;;  %3128 = vmatprep.mubr.f32.mxu0 %v7826_v30  ;;  %v7844_v30 = vsel %vm2498_vm2, %v2529_v38, %v2530_v26 }
 0x438   : > { %3348 = vmatprep.mubr.f32.mxu1 %v7824_v4  ;;  %5046 = vmatpush1.bf16.msra.mxu1 %v5045_v49  ;;  %v5681_v49 = vld [vmem:[#allocation2 + $0xa0] sm:$0x3] }
 0x439   : > { %5047 = vmatprep.subr.bf16.mxu1 %v8295_v36  ;;  %v2532_v7 = vrot.slane %v5681_v49, 2  ;;  %v2765_v49 = vld [vmem:[%s8255_s1 + $0x640] sm:$0xff] }
 0x43a   : > { %3129 = vmatmul.mubr.f32.gmra.mrb[86].mxu0 %v7810_v54 }
 0x43b   : > { %3349 = vmatmul.mubr.f32.gmra.mrb[84].mxu1 %v7208_v15  ;;  %3133 = vmatprep.mubr.f32.mxu0 %v7830_v43  ;;  %v2764_v15 = vld [vmem:[%s8255_s1 + $0x638] sm:$0xff]  ;;  %v7858_v38 = vsel %vm2498_vm2, %v2530_v26, %v2532_v7  ;;  %v2766_v26 = vld [vmem:[%s8255_s1 + $0x648] sm:$0xff] }
 0x43c   : > { %3353 = vmatprep.mubr.f32.mxu1 %v7844_v30  ;;  %5049 = vmatpush1.bf16.msra.mxu1 %v5048_v20  ;;  %v2534_v20 = vrot.slane %v7238_v53, 2  ;;  %v5054_v14 = vpack.c.bf16 %v2764_v15, %v2763_v44  ;;  %v5683_v15 = vld [vmem:[#allocation2 + $0xb8] sm:$0x3]  ;;  %v5057_v7 = vpack.c.bf16 %v2766_v26, %v2765_v49  ;;  %v2769_v49 = vld [vmem:[%s8255_s1 + $0x660] sm:$0xff]  ;;  %v2770_v26 = vld [vmem:[%s8255_s1 + $0x668] sm:$0xff] }
 0x43d   : > { %5050 = vmatprep.subr.bf16.mxu1 %v8295_v36  ;;  %v2537_v44 = vrot.slane %v5683_v15, 2  ;;  %v2768_v43 = vld [vmem:[%s8255_s1 + $0x658] sm:$0xff]  ;;  %v7887_v15 = vld [vmem:[#allocation2 + $0xc0] sm:$0xff] }
 0x43e   : > { %3134 = vmatmul.mubr.f32.gmra.mrb[88].mxu0 %v7824_v4 }
 0x43f   : > { %3354 = vmatmul.mubr.f32.gmra.mrb[86].mxu1 %v7216_v31  ;;  %3138 = vmatprep.mubr.f32.mxu0 %v7238_v53  ;;  %v2536_v53 = vsel %vm2498_vm2, %v2534_v20, %v2535_v62  ;;  %v2538_v20 = vsel %vm2498_vm2, %v2535_v62, %v2537_v44  ;;  %v7898_v62 = vld [vmem:[#allocation2 + $0xc8] sm:$0xff]  ;;  %v2771_v44 = vld [vmem:[%s8255_s1 + $0x670] sm:$0xff] }
 0x440   : > { %3358 = vmatprep.mubr.f32.mxu1 %v7858_v38  ;;  %5052 = vmatpush1.bf16.msra.mxu1 %v5051_v52  ;;  %v2767_v52 = vld [vmem:[%s8255_s1 + $0x650] sm:$0xff] }
 0x441   : > { %5053 = vmatprep.subr.bf16.mxu1 %v8295_v36 }
 0x442   : > { %3139 = vmatmul.mubr.f32.gmra.mrb[90].mxu0 %v7844_v30 }
 0x443   : > { %3359 = vmatmul.mubr.f32.gmra.mrb[88].mxu1 %v7229_v55  ;;  %3143 = vmatprep.mubr.f32.mxu0 %v7874_v51 }
 0x444   : > { %3363 = vmatprep.mubr.f32.mxu1 %v2536_v53  ;;  %5055 = vmatpush1.bf16.msra.mxu1 %v5054_v14  ;;  %v5060_v14 = vpack.c.bf16 %v2768_v43, %v2767_v52  ;;  %v5063_v43 = vpack.c.bf16 %v2770_v26, %v2769_v49 }
 0x445   : > { %5056 = vmatprep.subr.bf16.mxu1 %v8295_v36 }
 0x446   : > { %3144 = vmatmul.mubr.f32.gmra.mrb[92].mxu0 %v7858_v38 }
 0x447   : > { %3364 = vmatmul.mubr.f32.gmra.mrb[90].mxu1 %v7245_v61  ;;  %3148 = vmatprep.mubr.f32.mxu0 %v7887_v15 }
 0x448   : > { %3368 = vmatprep.mubr.f32.mxu1 %v2538_v20  ;;  %5058 = vmatpush1.bf16.msra.mxu1 %v5057_v7  ;;  %v2772_v7 = vld [vmem:[%s8255_s1 + $0x678] sm:$0xff] }
 0x449   : > { %5059 = vmatprep.subr.bf16.mxu1 %v8295_v36  ;;  %v5066_v52 = vpack.c.bf16 %v2772_v7, %v2771_v44 }
 0x44a   : > { %3149 = vmatmul.mubr.f32.gmra.mrb[94].mxu0 %v2536_v53 }
 0x44b   : > { %3369 = vmatmul.mubr.f32.gmra.mrb[92].mxu1 %v7252_v13  ;;  %3153 = vmatprep.mubr.f32.mxu0 %v7898_v62 }
 0x44c   : > { %3373 = vmatprep.mubr.f32.mxu1 %v7285_v25  ;;  %5061 = vmatpush1.bf16.msra.mxu1 %v5060_v14 }
 0x44d   : > { %5062 = vmatprep.subr.bf16.mxu1 %v8295_v36 }
 0x44e   : > { %3154 = vmatmul.mubr.f32.gmra.mrb[96].mxu0 %v2538_v20 }
 0x44f   : > { %3374 = vmatmul.mubr.f32.gmra.mrb[94].mxu1 %v7264_v12  ;;  %4684 = vmatprep.mubr.f32.mxu0 %v7686_v23  ;;  %v8308_v23 = vld [vmem:[#allocation4_spill] sm:$0xff] }
 0x450   : > { %3378 = vmatprep.mubr.f32.mxu1 %v7306_v27  ;;  %5064 = vmatpush1.bf16.msra.mxu1 %v5063_v43 }
 0x451   : > { %5065 = vmatprep.subr.bf16.mxu1 %v8295_v36  ;;  %v8307_v36 = vld [vmem:[#allocation6_spill] sm:$0xff] }
 0x452   : > { %4685 = vmatmul.mubr.f32.vlgmr.msra.gmra.mrb[130].mxu0 %v7708_v19  ;;  %v8309_v19 = vld [vmem:[#allocation8_spill] sm:$0xff] }
 0x453   : > { %3379 = vmatmul.mubr.f32.gmra.mrb[96].mxu1 %v7300_v24  ;;  %4687 = vmatprep.mubr.f32.mxu0 %v7730_v63  ;;  %v8310_v63 = vld [vmem:[#allocation5_spill] sm:$0xff] }
 0x454   : > { %3383 = vmatprep.mubr.f32.mxu1 %v7341_v57  ;;  %5067 = vmatpush1.bf16.msra.mxu1 %v5066_v52  ;;  %v5689_v52 = vld [vmem:[#allocation2 + $0xa8] sm:$0xff] }
 0x456   : > { %4688 = vmatmul.mubr.f32.gmra.mrb[132].mxu0 %v7750_v58  ;;  %v8311_v58 = vld [vmem:[#allocation7_spill] sm:$0xff] }
 0x457   : > { %3384 = vmatmul.mubr.f32.gmra.mrb[34].mxu1 %v7314_v29  ;;  %4690 = vmatprep.mubr.f32.mxu0 %v7776_v41  ;;  %v7974_v41 = vld [vmem:[#allocation2 + $0x1a8] sm:$0x3] }
 0x458   : > { %3388 = vmatprep.mubr.f32.mxu1 %v7359_v21 }
 0x45a   : > { %4691 = vmatmul.mubr.f32.gmra.mrb[134].mxu0 %v7790_v37  ;;  %v2641_v37 = vrot.slane %v7974_v41, 2 }
 0x45b   : > { %3389 = vmatmul.mubr.f32.gmra.mrb[36].mxu1 %v7338_v16  ;;  %4693 = vmatprep.mubr.f32.mxu0 %v7810_v54 }
 0x45c   : > { %3393 = vmatprep.mubr.f32.mxu1 %v7388_v3 }
 0x45e   : > { %4694 = vmatmul.mubr.f32.gmra.mrb[136].mxu0 %v7824_v4  ;;  %v2642_v4 = vsel %vm2498_vm2, %v7616_v60, %v2641_v37  ;;  %v5695_v37 = vld [vmem:[#allocation2 + $0x110] sm:$0xff] }
 0x45f   : > { %3394 = vmatmul.mubr.f32.gmra.mrb[38].mxu1 %v7348_v1  ;;  %4696 = vmatprep.mubr.f32.mxu0 %v7844_v30 }
 0x460   : > { %3398 = vmatprep.mubr.f32.mxu1 %v7411_v10 }
 0x462   : > { %4697 = vmatmul.mubr.f32.gmra.mrb[138].mxu0 %v7858_v38  ;;  %v5686_v38 = vld [vmem:[#allocation2 + $0x30] sm:$0xff] }
 0x463   : > { %3399 = vmatmul.mubr.f32.gmra.mrb[40].mxu1 %v7385_v39  ;;  %4699 = vmatprep.mubr.f32.mxu0 %v2536_v53  ;;  %v5687_v53 = vld [vmem:[#allocation2 + $0x48] sm:$0xff] }
 0x464   : > { %3403 = vmatprep.mubr.f32.mxu1 %v8307_v36 }
 0x466   : > { %4700 = vmatmul.mubr.f32.gmra.mrb[140].mxu0 %v2538_v20 }
 0x467   : > { %3404 = vmatmul.mubr.f32.gmra.mrb[42].mxu1 %v8308_v23  ;;  %4702 = vmatprep.mubr.f32.mxu0 %v7285_v25  ;;  %v8312_v25 = vld [vmem:[#allocation9_spill] sm:$0xff] }
 0x468   : > { %3408 = vmatprep.mubr.f32.mxu1 %v8309_v19 }
 0x46a   : > { %4703 = vmatmul.mubr.f32.gmra.mrb[142].mxu0 %v7306_v27  ;;  %v2621_v27 = vrot.slane %v7600_v33, 2 }
 0x46b   : > { %3409 = vmatmul.mubr.f32.gmra.mrb[44].mxu1 %v8310_v63  ;;  %4705 = vmatprep.mubr.f32.mxu0 %v7341_v57  ;;  %v2622_v57 = vrot.slane %v7631_v46, 2 }
 0x46c   : > { %3413 = vmatprep.mubr.f32.mxu1 %v7494_v28 }
 0x46e   : > { %4706 = vmatmul.mubr.f32.gmra.mrb[144].mxu0 %v7359_v21  ;;  %v2333_v21 = vld [vmem:[#allocation2 + $0x190] sm:$0x3] }
 0x46f   : > { %3414 = vmatmul.mubr.f32.gmra.mrb[46].mxu1 %v8311_v58  ;;  %4708 = vmatprep.mubr.f32.mxu0 %v7388_v3  ;;  %v8313_v3 = vld [vmem:[#allocation17_spill] sm:$0xff] }
 0x470   : > { %3418 = vmatprep.mubr.f32.mxu1 %v7516_v22 }
 0x472   : > { %4709 = vmatmul.mubr.f32.gmra.mrb[146].mxu0 %v7411_v10  ;;  %v2624_v10 = vrot.slane %v2333_v21, 2 }
 0x473   : > { %3419 = vmatmul.mubr.f32.gmra.mrb[48].mxu1 %v8312_v25  ;;  %4711 = vmatprep.mubr.f32.mxu0 %v8307_v36 }
 0x474   : > { %3423 = vmatprep.mubr.f32.mxu1 %v7547_v9 }
 0x476   : > { %4712 = vmatmul.mubr.f32.gmra.mrb[148].mxu0 %v8309_v19 }
 0x477   : > { %3424 = vmatmul.mubr.f32.gmra.mrb[50].mxu1 %v7484_v42  ;;  %4714 = vmatprep.mubr.f32.mxu0 %v7494_v28  ;;  %v2623_v28 = vsel %vm2498_vm2, %v2621_v27, %v2622_v57 }
 0x478   : > { %3428 = vmatprep.mubr.f32.mxu1 %v7565_v56 }
 0x47a   : > { %4715 = vmatmul.mubr.f32.gmra.mrb[150].mxu0 %v7516_v22  ;;  %v8314_v22 = vld [vmem:[#allocation14_spill] sm:$0xff] }
 0x47b   : > { %3429 = vmatmul.mubr.f32.gmra.mrb[52].mxu1 %v7520_v32  ;;  %4717 = vmatprep.mubr.f32.mxu0 %v7547_v9  ;;  %v2614_v9 = vrot.slane %v7600_v33, 1 }
 0x47c   : > { %3433 = vmatprep.mubr.f32.mxu1 %v7593_v18 }
 0x47e   : > { %4718 = vmatmul.mubr.f32.gmra.mrb[152].mxu0 %v7565_v56  ;;  %v2615_v56 = vrot.slane %v7631_v46, 1 }
 0x47f   : > { %3434 = vmatmul.mubr.f32.gmra.mrb[54].mxu1 %v7561_v11  ;;  %4720 = vmatprep.mubr.f32.mxu0 %v7593_v18  ;;  %v8315_v18 = vld [vmem:[#allocation15_spill] sm:$0xff] }
 0x480   : > { %3438 = vmatprep.mubr.f32.mxu1 %v7603_v40  ;;  %v7978_v54 = vsel %vm2385_vm1, %v2614_v9, %v2615_v56  ;;  %v5694_v9 = vld [vmem:[#allocation2 + $0x108] sm:$0xff] }
 0x482   : > { %4721 = vmatmul.mubr.f32.gmra.mrb[154].mxu0 %v7603_v40  ;;  %v2625_v40 = vsel %vm2498_vm2, %v2622_v57, %v2624_v10 }
 0x483   : > { %3439 = vmatmul.mubr.f32.gmra.mrb[56].mxu1 %v7574_v34  ;;  %4723 = vmatprep.mubr.f32.mxu0 %v8313_v3 }
 0x484   : > { %3443 = vmatprep.mubr.f32.mxu1 %v8313_v3 }
 0x486   : > { %4724 = vmatmul.mubr.f32.gmra.mrb[156].mxu0 %v7644_v2 }
 0x487   : > { %3444 = vmatmul.mubr.f32.gmra.mrb[58].mxu1 %v8314_v22  ;;  %4726 = vmatprep.mubr.f32.mxu0 %v2623_v28 }
 0x488   : > { %3448 = vmatprep.mubr.f32.mxu1 %v7644_v2  ;;  %v2617_v2 = vrot.slane %v2333_v21, 1 }
 0x48a   : > { %4727 = vmatmul.mubr.f32.gmra.mrb[158].mxu0 %v2625_v40  ;;  %v7984_v30 = vsel %vm2385_vm1, %v2615_v56, %v2617_v2 }
 0x48b   : > { %3449 = vmatmul.mubr.f32.gmra.mrb[60].mxu1 %v8315_v18  ;;  %4729 = vmatprep.mubr.f32.mxu0 %v7616_v60  ;;  %v5688_v60 = vld [vmem:[#allocation2 + $0x50] sm:$0xff] }
 0x48c   : > { %3453 = vmatprep.mubr.f32.mxu1 %v2623_v28  ;;  %v5693_v28 = vld [vmem:[#allocation2 + $0xf8] sm:$0xff] }
 0x48e   : > { %4730 = vmatmul.mubr.f32.gmra.mrb[160].mxu0 %v2642_v4  ;;  %v5696_v4 = vld [vmem:[#allocation2 + $0x120] sm:$0xff] }
 0x48f   : > { %3454 = vmatmul.mubr.f32.gmra.mrb[62].mxu1 %v7978_v54 }
 0x490   : > { %3458 = vmatprep.mubr.f32.mxu1 %v2625_v40 }
 0x493   : > { %3459 = vmatmul.mubr.f32.gmra.mrb[64].mxu1 %v7984_v30 }
 0x494   : > { %3528 = vmatprep.mubr.f32.mxu1 %v7142_v6 }
 0x497   : > { %3529 = vmatmul.mubr.f32.vlgmr.msra.gmra.mrb[66].mxu1 %v5686_v38 }
 0x498   : > { %3533 = vmatprep.mubr.f32.mxu1 %v7155_v5 }
 0x49b   : > { %3534 = vmatmul.mubr.f32.gmra.mrb[68].mxu1 %v7688_v48 }
 0x49c   : > { %3538 = vmatprep.mubr.f32.mxu1 %v7166_v45 }
 0x49f   : > { %3539 = vmatmul.mubr.f32.gmra.mrb[70].mxu1 %v5687_v53  ;;  %v5697_v53 = vld [vmem:[#allocation2 + $0x128] sm:$0xff] }
 0x4a0   : > { %3543 = vmatprep.mubr.f32.mxu1 %v7171_v17 }
 0x4a3   : > { %3544 = vmatmul.mubr.f32.gmra.mrb[72].mxu1 %v5688_v60  ;;  %v7992_v20 = vpop.f32.mrb[98].mxu0 }
 0x4a4   : > { %3548 = vmatprep.mubr.f32.mxu1 %v7178_v35  ;;  %v2937_v14 = vpop.f32.mrb[99].mxu0  ;;  %v8316_v35 = vld [vmem:[#allocation3_spill] sm:$0xff] }
 0x4a5   : > { %v5698_v14 = vld [vmem:[#allocation2 + $0x138] sm:$0xff] }
 0x4a7   : > { %3549 = vmatmul.mubr.f32.gmra.mrb[74].mxu1 %v7752_v0  ;;  %v7996_v6 = vpop.f32.mrb[100].mxu0  ;;  %v8317_v0 = vld [vmem:[#allocation18_spill] sm:$0xff] }
 0x4a8   : > { %3553 = vmatprep.mubr.f32.mxu1 %v7192_v47  ;;  %v2942_v5 = vpop.f32.mrb[101].mxu0 }
 0x4ab   : > { %3554 = vmatmul.mubr.f32.gmra.mrb[76].mxu1 %v7756_v50  ;;  %v8000_v45 = vpop.f32.mrb[102].mxu0  ;;  %v8318_v50 = vld [vmem:[#allocation19_spill] sm:$0xff] }
 0x4ac   : > { %3558 = vmatprep.mubr.f32.mxu1 %v7202_v59  ;;  %v2947_v17 = vpop.f32.mrb[103].mxu0 }
 0x4ad   : > { %v5699_v17 = vld [vmem:[#allocation2 + $0x140] sm:$0xff] }
 0x4af   : > { %3559 = vmatmul.mubr.f32.gmra.mrb[78].mxu1 %v7792_v8  ;;  %v8004_v48 = vpop.f32.mrb[104].mxu0  ;;  %v8319_v8 = vld [vmem:[#allocation20_spill] sm:$0xff] }
 0x4b0   : > { %3563 = vmatprep.mubr.f32.mxu1 %v8316_v35  ;;  %v2952_v49 = vpop.f32.mrb[105].mxu0 }
 0x4b1   : > { %v8326_v49 = vld [vmem:[#allocation10_spill] sm:$0xff] }
 0x4b3   : > { %3564 = vmatmul.mubr.f32.gmra.mrb[80].mxu1 %v8317_v0  ;;  %v8008_v26 = vpop.f32.mrb[106].mxu0 }
 0x4b4   : > { %3568 = vmatprep.mubr.f32.mxu1 %v7216_v31  ;;  %v2957_v47 = vpop.f32.mrb[107].mxu0 }
 0x4b5   : > { %v8327_v47 = vld [vmem:[#allocation11_spill] sm:$0xff] }
 0x4b7   : > { %3569 = vmatmul.mubr.f32.gmra.mrb[82].mxu1 %v8318_v50  ;;  %v8012_v43 = vpop.f32.mrb[108].mxu0 }
 0x4b8   : > { %3573 = vmatprep.mubr.f32.mxu1 %v7229_v55  ;;  %v2962_v59 = vpop.f32.mrb[109].mxu0 }
 0x4b9   : > { %v8328_v59 = vld [vmem:[#allocation12_spill] sm:$0xff] }
 0x4bb   : > { %3574 = vmatmul.mubr.f32.gmra.mrb[84].mxu1 %v8319_v8  ;;  %v8016_v44 = vpop.f32.mrb[110].mxu0 }
 0x4bc   : > { %3578 = vmatprep.mubr.f32.mxu1 %v7245_v61  ;;  %v2967_v7 = vpop.f32.mrb[111].mxu0 }
 0x4bd   : > { %v8329_v7 = vld [vmem:[#allocation13_spill] sm:$0xff] }
 0x4bf   : > { %3579 = vmatmul.mubr.f32.gmra.mrb[86].mxu1 %v5689_v52  ;;  %v8019_v36 = vpop.f32.mrb[112].mxu0  ;;  %v8330_v52 = vld [vmem:[#allocation16_spill] sm:$0xff] }
 0x4c0   : > { %3583 = vmatprep.mubr.f32.mxu1 %v7252_v13  ;;  %v2972_v31 = vpop.f32.mrb[113].mxu0 }
 0x4c1   : > { %v2631_v31 = vrot.slane %v8330_v52, 1 }
 0x4c3   : > { %3584 = vmatmul.mubr.f32.gmra.mrb[88].mxu1 %v7874_v51  ;;  %v8023_v19 = vpop.f32.mrb[114].mxu0  ;;  %v5690_v51 = vld [vmem:[#allocation2 + $0xd8] sm:$0xff] }
 0x4c4   : > { %3588 = vmatprep.mubr.f32.mxu1 %v7264_v12  ;;  %v2977_v55 = vpop.f32.mrb[115].mxu0 }
 0x4c7   : > { %3589 = vmatmul.mubr.f32.gmra.mrb[90].mxu1 %v7887_v15  ;;  %v8027_v27 = vpop.f32.mrb[116].mxu0  ;;  %v5691_v15 = vld [vmem:[#allocation2 + $0xe0] sm:$0xff] }
 0x4c8   : > { %3593 = vmatprep.mubr.f32.mxu1 %v7300_v24  ;;  %v2982_v61 = vpop.f32.mrb[117].mxu0 }
 0x4cb   : > { %3594 = vmatmul.mubr.f32.gmra.mrb[92].mxu1 %v7898_v62  ;;  %v8031_v57 = vpop.f32.mrb[118].mxu0  ;;  %v5692_v62 = vld [vmem:[#allocation2 + $0xf0] sm:$0xff] }
 0x4cc   : > { %8320 = vst [vmem:[#allocation6_spill] sm:$0xff] %v8031_v57  ;;  %3598 = vmatprep.mubr.f32.mxu1 %v7314_v29  ;;  %v2987_v13 = vpop.f32.mrb[119].mxu0 }
 0x4cf   : > { %3599 = vmatmul.mubr.f32.gmra.mrb[94].mxu1 %v5690_v51  ;;  %v8034_v21 = vpop.f32.mrb[120].mxu0 }
 0x4d0   : > { %8321 = vst [vmem:[#allocation4_spill] sm:$0xff] %v8034_v21  ;;  %3603 = vmatprep.mubr.f32.mxu1 %v7338_v16  ;;  %v2992_v12 = vpop.f32.mrb[121].mxu0 }
 0x4d3   : > { %3604 = vmatmul.mubr.f32.gmra.mrb[96].mxu1 %v5691_v15 }
 0x4d4   : > { %3608 = vmatprep.mubr.f32.mxu1 %v7348_v1 }
 0x4d5   : > { %v8038_v24 = vpop.f32.mrb[122].mxu0 }
 0x4d6   : > { %8322 = vst [vmem:[#allocation8_spill] sm:$0xff] %v8038_v24  ;;  %v2997_v3 = vpop.f32.mrb[123].mxu0 }
 0x4d7   : > { %3609 = vmatmul.mubr.f32.gmra.mrb[34].mxu1 %v5692_v62 }
 0x4d8   : > { %3613 = vmatprep.mubr.f32.mxu1 %v7385_v39 }
 0x4d9   : > { %v8041_v29 = vpop.f32.mrb[124].mxu0 }
 0x4da   : > { %8323 = vst [vmem:[#allocation5_spill] sm:$0xff] %v8041_v29  ;;  %v3002_v10 = vpop.f32.mrb[125].mxu0 }
 0x4db   : > { %3614 = vmatmul.mubr.f32.gmra.mrb[36].mxu1 %v5693_v28 }
 0x4dc   : > { %3618 = vmatprep.mubr.f32.mxu1 %v8308_v23 }
 0x4dd   : > { %v8044_v16 = vpop.f32.mrb[126].mxu0 }
 0x4de   : > { %8324 = vst [vmem:[#allocation7_spill] sm:$0xff] %v8044_v16  ;;  %v3007_v40 = vpop.f32.mrb[127].mxu0 }
 0x4df   : > { %3619 = vmatmul.mubr.f32.gmra.mrb[38].mxu1 %v5694_v9 }
 0x4e0   : > { %3623 = vmatprep.mubr.f32.mxu1 %v8310_v63 }
 0x4e1   : > { %v8047_v1 = vpop.f32.mrb[128].mxu0 }
 0x4e2   : > { %8325 = vst [vmem:[#allocation9_spill] sm:$0xff] %v8047_v1  ;;  %v3012_v56 = vpop.f32.mrb[129].mxu0 }
 0x4e3   : > { %3624 = vmatmul.mubr.f32.gmra.mrb[40].mxu1 %v5695_v37 }
 0x4e4   : > { %3628 = vmatprep.mubr.f32.mxu1 %v8311_v58 }
 0x4e5   : > { %v8050_v39 = vpop.f32.mrb[66].mxu0 }
 0x4e6   : > { %v3082_v2 = vpop.f32.mrb[67].mxu0 }
 0x4e7   : > { %3629 = vmatmul.mubr.f32.gmra.mrb[42].mxu1 %v5696_v4 }
 0x4e8   : > { %3633 = vmatprep.mubr.f32.mxu1 %v8312_v25 }
 0x4e9   : > { %v8053_v23 = vpop.f32.mrb[68].mxu0 }
 0x4ea   : > { %v3087_v38 = vpop.f32.mrb[69].mxu0 }
 0x4eb   : > { %3634 = vmatmul.mubr.f32.gmra.mrb[44].mxu1 %v5697_v53 }
 0x4ec   : > { %3638 = vmatprep.mubr.f32.mxu1 %v7484_v42 }
 0x4ed   : > { %v8056_v63 = vpop.f32.mrb[70].mxu0 }
 0x4ee   : > { %v3092_v60 = vpop.f32.mrb[71].mxu0 }
 0x4ef   : > { %3639 = vmatmul.mubr.f32.gmra.mrb[46].mxu1 %v5698_v14 }
 0x4f0   : > { %3643 = vmatprep.mubr.f32.mxu1 %v7520_v32 }
 0x4f1   : > { %v8059_v58 = vpop.f32.mrb[72].mxu0 }
 0x4f2   : > { %v3097_v5 = vpop.f32.mrb[73].mxu0 }
 0x4f3   : > { %3644 = vmatmul.mubr.f32.gmra.mrb[48].mxu1 %v5699_v17 }
 0x4f4   : > { %3648 = vmatprep.mubr.f32.mxu1 %v7561_v11 }
 0x4f5   : > { %v8062_v25 = vpop.f32.mrb[74].mxu0 }
 0x4f6   : > { %v3102_v35 = vpop.f32.mrb[75].mxu0 }
 0x4f7   : > { %3649 = vmatmul.mubr.f32.gmra.mrb[50].mxu1 %v8326_v49 }
 0x4f8   : > { %3653 = vmatprep.mubr.f32.mxu1 %v7574_v34 }
 0x4f9   : > { %v8066_v42 = vpop.f32.mrb[76].mxu0 }
 0x4fa   : > { %v3107_v0 = vpop.f32.mrb[77].mxu0 }
 0x4fb   : > { %3654 = vmatmul.mubr.f32.gmra.mrb[52].mxu1 %v8327_v47 }
 0x4fc   : > { %3658 = vmatprep.mubr.f32.mxu1 %v8314_v22 }
 0x4fd   : > { %v8070_v32 = vpop.f32.mrb[78].mxu0 }
 0x4fe   : > { %v3112_v50 = vpop.f32.mrb[79].mxu0 }
 0x4ff   : > { %3659 = vmatmul.mubr.f32.gmra.mrb[54].mxu1 %v8328_v59 }
 0x500   : > { %3663 = vmatprep.mubr.f32.mxu1 %v8315_v18  ;;  %v2634_v18 = vrot.slane %v7974_v41, 1 }
 0x501   : > { %v8074_v11 = vpop.f32.mrb[80].mxu0 }
 0x502   : > { %v3117_v8 = vpop.f32.mrb[81].mxu0 }
 0x503   : > { %3664 = vmatmul.mubr.f32.gmra.mrb[56].mxu1 %v8329_v7 }
 0x504   : > { %3668 = vmatprep.mubr.f32.mxu1 %v7978_v54  ;;  %v2635_v54 = vsel %vm2385_vm1, %v2631_v31, %v2634_v18 }
 0x505   : > { %v8078_v34 = vpop.f32.mrb[82].mxu0 }
 0x506   : > { %v3122_v55 = vpop.f32.mrb[83].mxu0 }
 0x507   : > { %3669 = vmatmul.mubr.f32.gmra.mrb[58].mxu1 %v7600_v33 }
 0x508   : > { %3673 = vmatprep.mubr.f32.mxu1 %v7984_v30 }
 0x509   : > { %v8083_v22 = vpop.f32.mrb[84].mxu0 }
 0x50a   : > { %v3127_v61 = vpop.f32.mrb[85].mxu0 }
 0x50b   : > { %3674 = vmatmul.mubr.f32.gmra.mrb[60].mxu1 %v7631_v46 }
 0x50c   : > { %3678 = vmatprep.mubr.f32.mxu1 %v2631_v31 }
 0x50d   : > { %v8087_v13 = vpop.f32.mrb[86].mxu0 }
 0x50e   : > { %v3132_v51 = vpop.f32.mrb[87].mxu0 }
 0x50f   : > { %3679 = vmatmul.mubr.f32.gmra.mrb[62].mxu1 %v8330_v52 }
 0x510   : > { %3683 = vmatprep.mubr.f32.mxu1 %v2635_v54 }
 0x511   : > { %v8091_v12 = vpop.f32.mrb[88].mxu0 }
 0x512   : > { %v3137_v33 = vpop.f32.mrb[89].mxu0 }
 0x513   : > { %3684 = vmatmul.mubr.f32.gmra.mrb[64].mxu1 %v8330_v52 }
 0x515   : > { %v8094_v30 = vpop.f32.mrb[90].mxu0 }
 0x516   : > { %v3142_v41 = vpop.f32.mrb[91].mxu0 }
 0x519   : > { %v8096_v15 = vpop.f32.mrb[92].mxu0 }
 0x51a   : > { %v3147_v46 = vpop.f32.mrb[93].mxu0 }
 0x51d   : > { %v8098_v3 = vpop.f32.mrb[94].mxu0 }
 0x51e   : > { %v3152_v62 = vpop.f32.mrb[95].mxu0 }
 0x521   : > { %v8100_v10 = vpop.f32.mrb[96].mxu0 }
 0x522   : > { %v3157_v28 = vpop.f32.mrb[97].mxu0 }
 0x525   : > { %v4686_v40 = vpop.f32.mrb[130].mxu0 }
 0x526   : > { %v3755_v9 = vpop.f32.mrb[131].mxu0 }
 0x529   : > { %v4689_v56 = vpop.f32.mrb[132].mxu0 }
 0x52a   : > { %v3765_v37 = vpop.f32.mrb[133].mxu0 }
 0x52d   : > { %v4692_v2 = vpop.f32.mrb[134].mxu0 }
 0x52e   : > { %v3775_v4 = vpop.f32.mrb[135].mxu0 }
 0x531   : > { %v8102_v38 = vpop.f32.mrb[136].mxu0 }
 0x532   : > { %v8104_v53 = vpop.f32.mrb[137].mxu0 }
 0x535   : > { %v8106_v60 = vpop.f32.mrb[138].mxu0 }
 0x536   : > { %v8108_v14 = vpop.f32.mrb[139].mxu0 }
 0x539   : > { %v8110_v5 = vpop.f32.mrb[140].mxu0 }
 0x53a   : > { %v8112_v17 = vpop.f32.mrb[141].mxu0 }
 0x53d   : > { %v8114_v35 = vpop.f32.mrb[142].mxu0 }
 0x53e   : > { %v8116_v49 = vpop.f32.mrb[143].mxu0 }
 0x541   : > { %v8118_v0 = vpop.f32.mrb[144].mxu0 }
 0x542   : > { %v8120_v47 = vpop.f32.mrb[145].mxu0 }
 0x545   : > { %v8122_v50 = vpop.f32.mrb[146].mxu0 }
 0x546   : > { %v8124_v59 = vpop.f32.mrb[147].mxu0 }
 0x549   : > { %v8126_v8 = vpop.f32.mrb[148].mxu0 }
 0x54a   : > { %v8128_v7 = vpop.f32.mrb[149].mxu0 }
 0x54d   : > { %v8130_v52 = vpop.f32.mrb[150].mxu0 }
 0x54e   : > { %v8132_v31 = vpop.f32.mrb[151].mxu0 }
 0x551   : > { %v8134_v55 = vpop.f32.mrb[152].mxu0 }
 0x552   : > { %v8136_v18 = vpop.f32.mrb[153].mxu0 }
 0x555   : > { %v8138_v61 = vpop.f32.mrb[154].mxu0 }
 0x556   : > { %8331 = vst [vmem:[#allocation17_spill] sm:$0xff] %v8138_v61  ;;  %v8140_v54 = vpop.f32.mrb[155].mxu0 }
 0x559   : > { %v8142_v51 = vpop.f32.mrb[156].mxu0 }
 0x55a   : > { %8332 = vst [vmem:[#allocation14_spill] sm:$0xff] %v8142_v51  ;;  %v8144_v33 = vpop.f32.mrb[157].mxu0 }
 0x55b   : > { %8333 = vst [vmem:[#allocation15_spill] sm:$0xff] %v8144_v33 }
 0x55d   : > { %v8146_v41 = vpop.f32.mrb[158].mxu0 }
 0x55e   : > { %8334 = vst [vmem:[#allocation3_spill] sm:$0xff] %v8146_v41  ;;  %v8148_v46 = vpop.f32.mrb[159].mxu0 }
 0x55f   : > { %8335 = vst [vmem:[#allocation18_spill] sm:$0xff] %v8148_v46 }
 0x561   : > { %v8150_v62 = vpop.f32.mrb[160].mxu0 }
 0x562   : > { %8336 = vst [vmem:[#allocation19_spill] sm:$0xff] %v8150_v62  ;;  %v8152_v28 = vpop.f32.mrb[161].mxu0 }
 0x563   : > { %8337 = vst [vmem:[#allocation20_spill] sm:$0xff] %v8152_v28 }
 0x56a   : > { %v3530_v1 = vpop.f32.mrb[66].mxu1 }
 0x56b   : > { %v5132_v16 = vadd.f32 %v3530_v1, %v8050_v39  ;;  %v3532_v29 = vpop.f32.mrb[67].mxu1 }
 0x56d   : > { %v3756_v24 = vadd.f32 %v5132_v16, %v3755_v9 }
 0x56e   : > { %v3535_v41 = vpop.f32.mrb[68].mxu1 }
 0x56f   : > { %v3914_v46 = vmax.f32 %v3756_v24, 0.0  ;;  %v5133_v62 = vadd.f32 %v3535_v41, %v8053_v23  ;;  %v3537_v51 = vpop.f32.mrb[69].mxu1 }
 0x571   : > { %3946 = vst [vmem:[%s8160_s9] sm:$0xff] %v3914_v46  ;;  %v3761_v28 = vadd.f32 %v5133_v62, %v4686_v40 }
 0x572   : > { %v3540_v21 = vpop.f32.mrb[70].mxu1 }
 0x573   : > { %v3915_v29 = vmax.f32 %v3761_v28, 0.0  ;;  %v5134_v16 = vadd.f32 %v3540_v21, %v8056_v63  ;;  %v3542_v1 = vpop.f32.mrb[71].mxu1 }
 0x575   : > { %3947 = vst [vmem:[%s8160_s9 + $0x8] sm:$0xff] %v3915_v29  ;;  %v3766_v39 = vadd.f32 %v5134_v16, %v3765_v37 }
 0x576   : > { %v3545_v9 = vpop.f32.mrb[72].mxu1 }
 0x577   : > { %v3916_v33 = vmax.f32 %v3766_v39, 0.0  ;;  %v5135_v57 = vadd.f32 %v3545_v9, %v8059_v58  ;;  %v3547_v61 = vpop.f32.mrb[73].mxu1 }
 0x579   : > { %3948 = vst [vmem:[%s8160_s9 + $0x10] sm:$0xff] %v3916_v33  ;;  %v3771_v24 = vadd.f32 %v5135_v57, %v4689_v56 }
 0x57a   : > { %v3550_v23 = vpop.f32.mrb[74].mxu1 }
 0x57b   : > { %v3917_v51 = vmax.f32 %v3771_v24, 0.0  ;;  %v5136_v40 = vadd.f32 %v3550_v23, %v8062_v25  ;;  %v3552_v41 = vpop.f32.mrb[75].mxu1 }
 0x57d   : > { %3949 = vst [vmem:[%s8160_s9 + $0x18] sm:$0xff] %v3917_v51  ;;  %v3776_v46 = vadd.f32 %v5136_v40, %v3775_v4 }
 0x57e   : > { %v3555_v21 = vpop.f32.mrb[76].mxu1 }
 0x57f   : > { %v3918_v63 = vmax.f32 %v3776_v46, 0.0  ;;  %v5137_v37 = vadd.f32 %v3555_v21, %v8066_v42  ;;  %v3557_v62 = vpop.f32.mrb[77].mxu1 }
 0x581   : > { %3950 = vst [vmem:[%s8160_s9 + $0x20] sm:$0xff] %v3918_v63  ;;  %v3781_v28 = vadd.f32 %v5137_v37, %v4692_v2 }
 0x582   : > { %v3560_v58 = vpop.f32.mrb[78].mxu1 }
 0x583   : > { %v3919_v61 = vmax.f32 %v3781_v28, 0.0  ;;  %v5138_v57 = vadd.f32 %v3560_v58, %v8070_v32  ;;  %v3562_v56 = vpop.f32.mrb[79].mxu1 }
 0x585   : > { %3951 = vst [vmem:[%s8160_s9 + $0x28] sm:$0xff] %v3919_v61  ;;  %v3786_v25 = vadd.f32 %v5138_v57, %v8104_v53 }
 0x586   : > { %v3565_v33 = vpop.f32.mrb[80].mxu1 }
 0x587   : > { %v3920_v4 = vmax.f32 %v3786_v25, 0.0  ;;  %v5139_v29 = vadd.f32 %v3565_v33, %v8074_v11  ;;  %v3567_v16 = vpop.f32.mrb[81].mxu1 }
 0x589   : > { %3952 = vst [vmem:[%s8160_s9 + $0x30] sm:$0xff] %v3920_v4  ;;  %v3791_v42 = vadd.f32 %v5139_v29, %v8102_v38 }
 0x58a   : > { %v3570_v1 = vpop.f32.mrb[82].mxu1 }
 0x58b   : > { %v3921_v2 = vmax.f32 %v3791_v42, 0.0  ;;  %v5140_v39 = vadd.f32 %v3570_v1, %v8078_v34  ;;  %v3572_v9 = vpop.f32.mrb[83].mxu1 }
 0x58d   : > { %3953 = vst [vmem:[%s8160_s9 + $0x38] sm:$0xff] %v3921_v2  ;;  %v3796_v32 = vadd.f32 %v5140_v39, %v8108_v14 }
 0x58e   : > { %v3575_v24 = vpop.f32.mrb[84].mxu1 }
 0x58f   : > { %v3922_v53 = vmax.f32 %v3796_v32, 0.0  ;;  %v5141_v23 = vadd.f32 %v3575_v24, %v8083_v22  ;;  %v3577_v51 = vpop.f32.mrb[85].mxu1 }
 0x591   : > { %3954 = vst [vmem:[%s8160_s9 + $0x40] sm:$0xff] %v3922_v53  ;;  %v3801_v11 = vadd.f32 %v5141_v23, %v8106_v60 }
 0x592   : > { %v3580_v40 = vpop.f32.mrb[86].mxu1 }
 0x593   : > { %v3923_v38 = vmax.f32 %v3801_v11, 0.0  ;;  %v5142_v41 = vadd.f32 %v3580_v40, %v8087_v13  ;;  %v3582_v46 = vpop.f32.mrb[87].mxu1 }
 0x595   : > { %3955 = vst [vmem:[%s8160_s9 + $0x48] sm:$0xff] %v3923_v38  ;;  %v3806_v34 = vadd.f32 %v5142_v41, %v8112_v17 }
 0x596   : > { %v3585_v21 = vpop.f32.mrb[88].mxu1 }
 0x597   : > { %v3924_v14 = vmax.f32 %v3806_v34, 0.0  ;;  %v5143_v63 = vadd.f32 %v3585_v21, %v8091_v12  ;;  %v3587_v37 = vpop.f32.mrb[89].mxu1 }
 0x599   : > { %3956 = vst [vmem:[%s8160_s9 + $0x50] sm:$0xff] %v3924_v14  ;;  %v3811_v22 = vadd.f32 %v5143_v63, %v8110_v5 }
 0x59a   : > { %v3590_v62 = vpop.f32.mrb[90].mxu1 }
 0x59b   : > { %v3925_v60 = vmax.f32 %v3811_v22, 0.0  ;;  %v5144_v28 = vadd.f32 %v3590_v62, %v8094_v30  ;;  %v3592_v58 = vpop.f32.mrb[91].mxu1 }
 0x59d   : > { %3957 = vst [vmem:[%s8160_s9 + $0x58] sm:$0xff] %v3925_v60  ;;  %v3816_v13 = vadd.f32 %v5144_v28, %v8116_v49 }
 0x59e   : > { %v3595_v61 = vpop.f32.mrb[92].mxu1 }
 0x59f   : > { %v3926_v17 = vmax.f32 %v3816_v13, 0.0  ;;  %v5145_v57 = vadd.f32 %v3595_v61, %v8096_v15  ;;  %v3597_v56 = vpop.f32.mrb[93].mxu1 }
 0x5a1   : > { %3958 = vst [vmem:[%s8160_s9 + $0x60] sm:$0xff] %v3926_v17  ;;  %v3821_v12 = vadd.f32 %v5145_v57, %v8114_v35 }
 0x5a2   : > { %v3600_v25 = vpop.f32.mrb[94].mxu1 }
 0x5a3   : > { %v3927_v5 = vmax.f32 %v3821_v12, 0.0  ;;  %v5146_v33 = vadd.f32 %v3600_v25, %v8098_v3  ;;  %v3602_v4 = vpop.f32.mrb[95].mxu1 }
 0x5a5   : > { %3959 = vst [vmem:[%s8160_s9 + $0x68] sm:$0xff] %v3927_v5  ;;  %v3826_v30 = vadd.f32 %v5146_v33, %v8120_v47  ;;  %v8339_v33 = vld [vmem:[#allocation6_spill] sm:$0xff] }
 0x5a6   : > { %v3605_v29 = vpop.f32.mrb[96].mxu1 }
 0x5a7   : > { %v3928_v49 = vmax.f32 %v3826_v30, 0.0  ;;  %v5147_v16 = vadd.f32 %v3605_v29, %v8100_v10  ;;  %v3607_v42 = vpop.f32.mrb[97].mxu1 }
 0x5a9   : > { %3960 = vst [vmem:[%s8160_s9 + $0x70] sm:$0xff] %v3928_v49  ;;  %v3831_v15 = vadd.f32 %v5147_v16, %v8118_v0  ;;  %v8341_v16 = vld [vmem:[#allocation4_spill] sm:$0xff] }
 0x5aa   : > { %v3610_v1 = vpop.f32.mrb[34].mxu1 }
 0x5ab   : > { %v3929_v35 = vmax.f32 %v3831_v15, 0.0  ;;  %v5148_v2 = vadd.f32 %v3610_v1, %v7992_v20  ;;  %v3612_v39 = vpop.f32.mrb[35].mxu1 }
 0x5ac   : > { %v8343_v39 = vld [vmem:[#allocation8_spill] sm:$0xff] }
 0x5ad   : > { %3961 = vst [vmem:[%s8160_s9 + $0x78] sm:$0xff] %v3929_v35  ;;  %v3836_v3 = vadd.f32 %v5148_v2, %v8124_v59 }
 0x5ae   : > { %v3615_v9 = vpop.f32.mrb[36].mxu1 }
 0x5af   : > { %v3930_v47 = vmax.f32 %v3836_v3, 0.0  ;;  %v5149_v32 = vadd.f32 %v3615_v9, %v7996_v6  ;;  %v3617_v24 = vpop.f32.mrb[37].mxu1 }
 0x5b1   : > { %3962 = vst [vmem:[%s8160_s9 + $0x80] sm:$0xff] %v3930_v47  ;;  %v3841_v10 = vadd.f32 %v5149_v32, %v8122_v50  ;;  %v8344_v47 = vld [vmem:[#allocation18_spill] sm:$0xff] }
 0x5b2   : > { %v3620_v53 = vpop.f32.mrb[38].mxu1 }
 0x5b3   : > { %v3931_v0 = vmax.f32 %v3841_v10, 0.0  ;;  %v5150_v23 = vadd.f32 %v3620_v53, %v8000_v45  ;;  %v3622_v51 = vpop.f32.mrb[39].mxu1  ;;  %v8345_v53 = vld [vmem:[#allocation5_spill] sm:$0xff] }
 0x5b4   : > { %v8346_v51 = vld [vmem:[#allocation3_spill] sm:$0xff] }
 0x5b5   : > { %3963 = vst [vmem:[%s8160_s9 + $0x88] sm:$0xff] %v3931_v0  ;;  %v3846_v20 = vadd.f32 %v5150_v23, %v8128_v7 }
 0x5b6   : > { %v3625_v11 = vpop.f32.mrb[40].mxu1 }
 0x5b7   : > { %v3932_v59 = vmax.f32 %v3846_v20, 0.0  ;;  %v5151_v40 = vadd.f32 %v3625_v11, %v8004_v48  ;;  %v3627_v38 = vpop.f32.mrb[41].mxu1 }
 0x5b9   : > { %3964 = vst [vmem:[%s8160_s9 + $0x90] sm:$0xff] %v3932_v59  ;;  %v3851_v6 = vadd.f32 %v5151_v40, %v8126_v8  ;;  %v8347_v40 = vld [vmem:[#allocation7_spill] sm:$0xff] }
 0x5ba   : > { %v3630_v41 = vpop.f32.mrb[42].mxu1 }
 0x5bb   : > { %v3933_v50 = vmax.f32 %v3851_v6, 0.0  ;;  %v5152_v46 = vadd.f32 %v3630_v41, %v8008_v26  ;;  %v3632_v34 = vpop.f32.mrb[43].mxu1  ;;  %v8348_v41 = vld [vmem:[#allocation20_spill] sm:$0xff] }
 0x5bd   : > { %3965 = vst [vmem:[%s8160_s9 + $0x98] sm:$0xff] %v3933_v50  ;;  %v3856_v45 = vadd.f32 %v5152_v46, %v8132_v31 }
 0x5be   : > { %v3635_v21 = vpop.f32.mrb[44].mxu1 }
 0x5bf   : > { %v3934_v7 = vmax.f32 %v3856_v45, 0.0  ;;  %v5153_v14 = vadd.f32 %v3635_v21, %v8012_v43  ;;  %v3637_v63 = vpop.f32.mrb[45].mxu1  ;;  %v8349_v45 = vld [vmem:[#allocation9_spill] sm:$0xff] }
 0x5c1   : > { %3966 = vst [vmem:[%s8160_s9 + $0xa0] sm:$0xff] %v3934_v7  ;;  %v3861_v48 = vadd.f32 %v5153_v14, %v8130_v52  ;;  %v8350_v14 = vld [vmem:[#allocation19_spill] sm:$0xff] }
 0x5c2   : > { %v3640_v37 = vpop.f32.mrb[46].mxu1 }
 0x5c3   : > { %v3935_v8 = vmax.f32 %v3861_v48, 0.0  ;;  %v5154_v22 = vadd.f32 %v3640_v37, %v8016_v44  ;;  %v3642_v62 = vpop.f32.mrb[47].mxu1 }
 0x5c5   : > { %3967 = vst [vmem:[%s8160_s9 + $0xa8] sm:$0xff] %v3935_v8  ;;  %v3866_v26 = vadd.f32 %v5154_v22, %v8136_v18 }
 0x5c6   : > { %v3645_v60 = vpop.f32.mrb[48].mxu1 }
 0x5c7   : > { %v3936_v31 = vmax.f32 %v3866_v26, 0.0  ;;  %v5155_v28 = vadd.f32 %v3645_v60, %v8019_v36  ;;  %v3647_v58 = vpop.f32.mrb[49].mxu1  ;;  %v8338_v36 = vld [vmem:[#allocation17_spill] sm:$0xff] }
 0x5c9   : > { %3968 = vst [vmem:[%s8160_s9 + $0xb0] sm:$0xff] %v3936_v31  ;;  %v3871_v43 = vadd.f32 %v5155_v28, %v8134_v55 }
 0x5ca   : > { %v3650_v13 = vpop.f32.mrb[50].mxu1 }
 0x5cb   : > { %v3937_v52 = vmax.f32 %v3871_v43, 0.0  ;;  %v5156_v61 = vadd.f32 %v3650_v13, %v8023_v19  ;;  %v3652_v17 = vpop.f32.mrb[51].mxu1  ;;  %v8340_v19 = vld [vmem:[#allocation15_spill] sm:$0xff] }
 0x5cd   : > { %3969 = vst [vmem:[%s8160_s9 + $0xb8] sm:$0xff] %v3937_v52  ;;  %v3876_v44 = vadd.f32 %v5156_v61, %v8140_v54 }
 0x5ce   : > { %v3655_v57 = vpop.f32.mrb[52].mxu1 }
 0x5cf   : > { %v3938_v18 = vmax.f32 %v3876_v44, 0.0  ;;  %v5157_v56 = vadd.f32 %v3655_v57, %v8027_v27  ;;  %v3657_v12 = vpop.f32.mrb[53].mxu1  ;;  %v8342_v27 = vld [vmem:[#allocation14_spill] sm:$0xff] }
 0x5d1   : > { %3970 = vst [vmem:[%s8160_s9 + $0xc0] sm:$0xff] %v3938_v18  ;;  %v3881_v25 = vadd.f32 %v5157_v56, %v8338_v36 }
 0x5d2   : > { %v3660_v5 = vpop.f32.mrb[54].mxu1 }
 0x5d3   : > { %v3939_v55 = vmax.f32 %v3881_v25, 0.0  ;;  %v5158_v4 = vadd.f32 %v3660_v5, %v8339_v33  ;;  %v3662_v30 = vpop.f32.mrb[55].mxu1 }
 0x5d5   : > { %3971 = vst [vmem:[%s8160_s9 + $0xc8] sm:$0xff] %v3939_v55  ;;  %v3886_v29 = vadd.f32 %v5158_v4, %v8340_v19 }
 0x5d6   : > { %v3665_v49 = vpop.f32.mrb[56].mxu1 }
 0x5d7   : > { %v3940_v54 = vmax.f32 %v3886_v29, 0.0  ;;  %v5159_v42 = vadd.f32 %v3665_v49, %v8341_v16  ;;  %v3667_v15 = vpop.f32.mrb[57].mxu1 }
 0x5d9   : > { %3972 = vst [vmem:[%s8160_s9 + $0xd0] sm:$0xff] %v3940_v54  ;;  %v3891_v1 = vadd.f32 %v5159_v42, %v8342_v27 }
 0x5da   : > { %v3670_v35 = vpop.f32.mrb[58].mxu1 }
 0x5db   : > { %v3941_v2 = vmax.f32 %v3891_v1, 0.0  ;;  %v5160_v3 = vadd.f32 %v3670_v35, %v8343_v39  ;;  %v3672_v9 = vpop.f32.mrb[59].mxu1 }
 0x5dd   : > { %3973 = vst [vmem:[%s8160_s9 + $0xd8] sm:$0xff] %v3941_v2  ;;  %v3896_v32 = vadd.f32 %v5160_v3, %v8344_v47 }
 0x5de   : > { %v3675_v24 = vpop.f32.mrb[60].mxu1 }
 0x5df   : > { %v3942_v10 = vmax.f32 %v3896_v32, 0.0  ;;  %v5161_v0 = vadd.f32 %v3675_v24, %v8345_v53  ;;  %v3677_v23 = vpop.f32.mrb[61].mxu1 }
 0x5e1   : > { %3974 = vst [vmem:[%s8160_s9 + $0xe0] sm:$0xff] %v3942_v10  ;;  %v3901_v20 = vadd.f32 %v5161_v0, %v8346_v51 }
 0x5e2   : > { %v3680_v11 = vpop.f32.mrb[62].mxu1 }
 0x5e3   : > { %v3943_v59 = vmax.f32 %v3901_v20, 0.0  ;;  %v5162_v38 = vadd.f32 %v3680_v11, %v8347_v40  ;;  %v3682_v6 = vpop.f32.mrb[63].mxu1 }
 0x5e5   : > { %3975 = vst [vmem:[%s8160_s9 + $0xe8] sm:$0xff] %v3943_v59  ;;  %v3906_v50 = vadd.f32 %v5162_v38, %v8348_v41 }
 0x5e6   : > { %v3685_v46 = vpop.f32.mrb[64].mxu1 }
 0x5e7   : > { %v3944_v34 = vmax.f32 %v3906_v50, 0.0  ;;  %v5163_v21 = vadd.f32 %v3685_v46, %v8349_v45  ;;  %v3687_v7 = vpop.f32.mrb[65].mxu1 }
 0x5e9   : > { %3976 = vst [vmem:[%s8160_s9 + $0xf0] sm:$0xff] %v3944_v34  ;;  %v3911_v63 = vadd.f32 %v5163_v21, %v8350_v14 }
 0x5eb   : > { %v3945_v48 = vmax.f32 %v3911_v63, 0.0 }
 0x5ed   : > { %3977 = vst [vmem:[%s8160_s9 + $0xf8] sm:$0xff] %v3945_v48 }
 0x5ee PF: > { %s13_s12 = sadd.s32 1, %s5706_s12  }
 0x5ef   : > { %p10_p4 = scmp.ge.s32.totalorder %s13_s12, 4  }
 0x5f1   :  { %12 = sbr.rel (!%p10_p4) target bundleno = 1 (0x1), region = 63 }

</bundles_post_ra>
